<compile_context>
chip_gen: v5e
topology: v5e:2x2
jax: 0.10.0
libtpu: 0.0.40
codegen_flags: <defaults>
</compile_context>

<pallas_src>
import numpy as np
import jax
import jax.numpy as jnp
from jax import lax
from jax.experimental import pallas as pl
from jax.experimental.pallas import tpu as pltpu

# ----------------------------------------------------------------------------
# Geometry (matches the demo shapes: state (B, 4, 16, 16))
# ----------------------------------------------------------------------------
CIN = 4            # state channels
FEAT = 16          # resnet feature channels
MID = 8            # ASPP branch channels
ACT_DIM = 6        # actor action dim
H = W = 16         # full-res spatial
HW = H * W         # 256 (lane-dense)
HF = WF = 8        # feature-map spatial (after stride-2 conv1)
NV = HF * WF       # 64 valid feature positions
CV = 16            # canvas side: 8x8 map embedded with a 4-wide zero ring
NCV = CV * CV      # 256 canvas lanes
PAD = 4            # canvas ring width (>= max ASPP dilation)
MARGIN = 128       # extended-slab margin (>= max tap shift 17*4 = 68)

# stride-2 conv1 tap index -> (parity, shift) along each spatial axis
_S2 = ((1, -1), (0, 0), (1, 0))


# ----------------------------------------------------------------------------
# The fused kernel (one grid step per batch element)
# ----------------------------------------------------------------------------
def _mask_deeplab_kernel(
    sp_ref,            # (1, 4, CIN, NCV) f32 : parity canvases of the state
    vmask_ref,         # (1, NCV) f32         : 1.0 on the valid 8x8 region
    w1_ref, b1_ref,    # (FEAT, 9*CIN) bf16, (FEAT, 1) f32   resnet conv1 (s2)
    w2_ref, b2_ref,    # (FEAT, 9*FEAT) bf16, (FEAT, 1)      resnet conv2
    wa1_ref, ba1_ref,  # (MID, FEAT), (MID, 1)               ASPP 1x1
    wa2_ref, ba2_ref,  # (MID, 9*FEAT), (MID, 1)             ASPP 3x3 d=2
    wa3_ref, ba3_ref,  # (MID, 9*FEAT), (MID, 1)             ASPP 3x3 d=4
    wap_ref, bap_ref,  # (MID, FEAT), (MID, 1)               ASPP image pool
    wps_ref, wpp_ref, bp_ref,   # (MID, 3*MID), (MID, MID), (MID, 1)  projection
    wc_ref, bc_ref,    # (1, MID), (1, 1)                    classifier
    kall_ref,          # (NCV, 5*NCV) bf16  bilinear: [full-res | 4 parity canv]
    wfc_ref, bfc_ref,  # (ACT_DIM, FEAT), (ACT_DIM, 1)       actor head
    mask_ref,          # out (1, 1, HW) f32
    act_ref,           # out (1, ACT_DIM, 1) f32
):
    vmask = vmask_ref[...]                                   # (1, NCV)

    def ext(x):                                              # (R, NCV)->(R, 512)
        z = jnp.zeros((x.shape[0], MARGIN), x.dtype)
        return jnp.concatenate([z, x, z], axis=1)

    def conv3x3(canvas, w, b, dil):
        """stride-1 3x3 conv (pad == dil) on a canvas map; relu + re-zero ring."""
        xe = ext(canvas)
        slabs = []
        for i in range(3):
            for j in range(3):
                s = ((i - 1) * CV + (j - 1)) * dil
                slabs.append(xe[:, MARGIN + s: MARGIN + s + NCV])
        cols = jnp.concatenate(slabs, axis=0).astype(jnp.bfloat16)   # (9R, NCV)
        y = jnp.dot(w, cols, preferred_element_type=jnp.float32) + b
        return jnp.maximum(y, 0.0) * vmask

    def conv1_s2(par):
        """stride-2 3x3 conv (pad 1) from the 4 parity canvases of a 16x16 map."""
        exts = [ext(par[k]) for k in range(4)]
        slabs = []
        for i in range(3):
            pi, ri = _S2[i]
            for j in range(3):
                pj, rj = _S2[j]
                s = ri * CV + rj
                slabs.append(exts[2 * pi + pj][:, MARGIN + s: MARGIN + s + NCV])
        cols = jnp.concatenate(slabs, axis=0).astype(jnp.bfloat16)   # (9*CIN, NCV)
        y = jnp.dot(w1_ref[...], cols,
                    preferred_element_type=jnp.float32) + b1_ref[...]
        return jnp.maximum(y, 0.0) * vmask

    def resnet(par):
        h1 = conv1_s2(par)                                           # (FEAT, NCV)
        return conv3x3(h1, w2_ref[...], b2_ref[...], 1)              # (FEAT, NCV)

    state_par = [sp_ref[0, k] for k in range(4)]                     # 4x(CIN,NCV)

    # -------------------- actor.resnet(state) --------------------
    f = resnet(state_par)                                            # (FEAT, NCV)

    # -------------------------- ASPP -----------------------------
    f_bf = f.astype(jnp.bfloat16)
    br1 = jnp.maximum(jnp.dot(wa1_ref[...], f_bf,
                              preferred_element_type=jnp.float32) + ba1_ref[...],
                      0.0)                                           # (MID, NCV)
    br2 = conv3x3(f, wa2_ref[...], ba2_ref[...], 2)
    br3 = conv3x3(f, wa3_ref[...], ba3_ref[...], 4)
    pooled = (jnp.sum(f, axis=1, keepdims=True) * (1.0 / NV)).astype(jnp.bfloat16)
    gp = jnp.maximum(jnp.dot(wap_ref[...], pooled,
                             preferred_element_type=jnp.float32) + bap_ref[...],
                     0.0)                                            # (MID, 1)
    cat = jnp.concatenate([br1, br2, br3], axis=0).astype(jnp.bfloat16)
    proj = jnp.dot(wps_ref[...], cat, preferred_element_type=jnp.float32)
    proj = proj + jnp.dot(wpp_ref[...], gp.astype(jnp.bfloat16),
                          preferred_element_type=jnp.float32)        # pool branch
    proj = jnp.maximum(proj + bp_ref[...], 0.0)                      # (MID, NCV)
    logits = (jnp.dot(wc_ref[...], proj.astype(jnp.bfloat16),
                      preferred_element_type=jnp.float32) + bc_ref[...])  # (1,NCV)

    # --- bilinear upsample + sigmoid: full-res mask AND 4 parity-canvas masks ---
    up = jnp.dot(logits.astype(jnp.bfloat16), kall_ref[...],
                 preferred_element_type=jnp.float32)                 # (1, 5*NCV)
    sig = jax.nn.sigmoid(up)
    mask_ref[0] = sig[:, 0:HW]                                       # (1, 256)

    # -------- masked = state * mask ; act = actor(masked) --------
    masked_par = [state_par[k] * sig[:, NCV * (k + 1): NCV * (k + 2)]
                  for k in range(4)]                                 # zero ring kept
    f2 = resnet(masked_par)                                          # (FEAT, NCV)
    pooled2 = (jnp.sum(f2, axis=1, keepdims=True) * (1.0 / NV)).astype(jnp.bfloat16)
    act = jnp.tanh(jnp.dot(wfc_ref[...], pooled2,
                           preferred_element_type=jnp.float32) + bfc_ref[...])
    act_ref[0] = act                                                 # (ACT_DIM, 1)


# ----------------------------------------------------------------------------
# Host-side constants (interpolation matrix, canvas mask, bilinear weights)
# ----------------------------------------------------------------------------
def _bilinear_matrix(out_size, in_size):
    """PyTorch align_corners=False bilinear interpolation matrix (out, in)."""
    M = np.zeros((out_size, in_size), dtype=np.float32)
    if in_size == 1:
        M[:, 0] = 1.0
        return M
    scale = in_size / out_size
    for i in range(out_size):
        src = max((i + 0.5) * scale - 0.5, 0.0)
        lo = min(int(np.floor(src)), in_size - 1)
        hi = min(lo + 1, in_size - 1)
        frac = src - lo
        M[i, lo] += 1.0 - frac
        M[i, hi] += frac
    return M


def _build_interp_matrix():
    """(NCV, 5*NCV): low-res canvas logits -> [full-res 16x16 | 4 parity canvases]."""
    Mh = _bilinear_matrix(H, HF)
    Mw = _bilinear_matrix(W, WF)
    k_full = np.zeros((NCV, HW), np.float32)
    k_par = np.zeros((4, NCV, NCV), np.float32)
    for ly in range(HF):
        for lx in range(WF):
            row = (PAD + ly) * CV + (PAD + lx)          # low-res canvas position
            k_full[row] = np.outer(Mh[:, ly], Mw[:, lx]).reshape(-1)
            for p in range(2):
                for q in range(2):
                    canvas = np.zeros((CV, CV), np.float32)
                    canvas[PAD:PAD + HF, PAD:PAD + WF] = np.outer(Mh[p::2, ly],
                                                                  Mw[q::2, lx])
                    k_par[2 * p + q, row] = canvas.reshape(-1)
    return np.concatenate([k_full] + [k_par[i] for i in range(4)], axis=1)


def _canvas_mask():
    m = np.zeros((CV, CV), np.float32)
    m[PAD:PAD + HF, PAD:PAD + WF] = 1.0
    return m.reshape(1, NCV)


# ----------------------------------------------------------------------------
# Synthetic frozen Actor + ASPP parameters (kernel-ready layouts, built once)
# ----------------------------------------------------------------------------
def init_params(key=jax.random.PRNGKey(42)):
    ks = jax.random.split(key, 9)

    def w(k, shape, scale=0.1):
        v = scale * jax.random.normal(k, shape, dtype=jnp.float32)
        # round through bf16 so the kernel (bf16 MXU operands) and the f32
        # reference share numerically identical weights
        return v.astype(jnp.bfloat16).astype(jnp.float32)

    conv1_w = w(ks[0], (FEAT, CIN, 3, 3))
    conv2_w = w(ks[1], (FEAT, FEAT, 3, 3))
    a1_w = w(ks[2], (MID, FEAT))
    a2_w = w(ks[3], (MID, FEAT, 3, 3))
    a3_w = w(ks[4], (MID, FEAT, 3, 3))
    ap_w = w(ks[5], (MID, FEAT))
    wp_w = w(ks[6], (MID, 4 * MID))
    wc_w = w(ks[7], (1, MID))
    fc_w = w(ks[8], (ACT_DIM, FEAT))

    torch_params = dict(conv1=conv1_w, conv2=conv2_w, a1=a1_w, a2=a2_w, a3=a3_w,
                        ap=ap_w, wp=wp_w, wc=wc_w, fc=fc_w)

    def tap_mat(wt):   # (O, Ci, 3, 3) -> (O, 9*Ci): tap-major / channel-minor
        O, Ci, kh, kw = wt.shape
        return jnp.transpose(wt, (0, 2, 3, 1)).reshape(O, kh * kw * Ci).astype(
            jnp.bfloat16)

    def zcol(n):
        return jnp.zeros((n, 1), jnp.float32)

    kernel_params = dict(
        vmask=jnp.asarray(_canvas_mask()),
        w1=tap_mat(conv1_w), b1=zcol(FEAT),
        w2=tap_mat(conv2_w), b2=zcol(FEAT),
        wa1=a1_w.astype(jnp.bfloat16), ba1=zcol(MID),
        wa2=tap_mat(a2_w), ba2=zcol(MID),
        wa3=tap_mat(a3_w), ba3=zcol(MID),
        wap=ap_w.astype(jnp.bfloat16), bap=zcol(MID),
        wps=wp_w[:, :3 * MID].astype(jnp.bfloat16),
        wpp=wp_w[:, 3 * MID:].astype(jnp.bfloat16),
        bp=zcol(MID),
        wc=wc_w.astype(jnp.bfloat16), bc=zcol(1),
        kall=jnp.asarray(_build_interp_matrix()).astype(jnp.bfloat16),
        wfc=fc_w.astype(jnp.bfloat16), bfc=zcol(ACT_DIM),
    )
    return torch_params, kernel_params


_WEIGHT_NAMES = ["vmask", "w1", "b1", "w2", "b2", "wa1", "ba1", "wa2", "ba2",
                 "wa3", "ba3", "wap", "bap", "wps", "wpp", "bp", "wc", "bc",
                 "kall", "wfc", "bfc"]


# ----------------------------------------------------------------------------
# Module forward (td3 branch): one fused pallas_call
# ----------------------------------------------------------------------------
def mask_deeplabv3_forward(state, params):
    B, C, Hs, Ws = state.shape
    assert (C, Hs, Ws) == (CIN, H, W)

    # Parity-canvas layout of the state (cheap, one-time XLA layout prep):
    # sp[b, 2p+q, c, (4+r)*16 + (4+s)] = state[b, c, 2r+p, 2s+q], zero ring of 4.
    sp = state.reshape(B, C, HF, 2, WF, 2).transpose(0, 3, 5, 1, 2, 4)
    sp = sp.reshape(B, 4, C, HF, WF)
    sp = jnp.pad(sp, ((0, 0), (0, 0), (0, 0), (PAD, PAD), (PAD, PAD)))
    sp = sp.reshape(B, 4, C, NCV).astype(jnp.float32)

    def bspec(shape):          # weight operand, identical block every grid step
        return pl.BlockSpec(shape, lambda b: (0,) * len(shape))

    weights = [params[n] for n in _WEIGHT_NAMES]
    in_specs = [pl.BlockSpec((1, 4, C, NCV), lambda b: (b, 0, 0, 0))]
    in_specs += [bspec(wgt.shape) for wgt in weights]

    mask_flat, act_col = pl.pallas_call(
        _mask_deeplab_kernel,
        grid=(B,),
        in_specs=in_specs,
        out_specs=[
            pl.BlockSpec((1, 1, HW), lambda b: (b, 0, 0)),
            pl.BlockSpec((1, ACT_DIM, 1), lambda b: (b, 0, 0)),
        ],
        out_shape=(
            jax.ShapeDtypeStruct((B, 1, HW), jnp.float32),
            jax.ShapeDtypeStruct((B, ACT_DIM, 1), jnp.float32),
        ),
        compiler_params=pltpu.CompilerParams(
            dimension_semantics=("parallel",),   # B=2 -> both TensorCores on v7x
        ),
    )(sp, *weights)

    mask = mask_flat.reshape(B, 1, H, W)
    act = act_col.reshape(B, ACT_DIM)
    return act, mask


# ----------------------------------------------------------------------------
# Pure-JAX reference (same synthetic nets) for a correctness check
# ----------------------------------------------------------------------------
def reference_forward(state, tp):
    def conv(x, wt, stride=1, dil=1, pad=0):
        return lax.conv_general_dilated(
            x, wt, window_strides=(stride, stride),
            padding=((pad, pad), (pad, pad)), rhs_dilation=(dil, dil),
            dimension_numbers=("NCHW", "OIHW", "NCHW"))

    def relu(v):
        return jnp.maximum(v, 0.0)

    def resnet(x):
        h = relu(conv(x, tp["conv1"], stride=2, pad=1))
        return relu(conv(h, tp["conv2"], stride=1, pad=1))

    f = resnet(state)                                         # (B, FEAT, 8, 8)
    b1 = relu(jnp.einsum("of,bfyx->boyx", tp["a1"], f))
    b2 = relu(conv(f, tp["a2"], dil=2, pad=2))
    b3 = relu(conv(f, tp["a3"], dil=4, pad=4))
    gp = relu(jnp.einsum("of,bf->bo", tp["ap"], f.mean(axis=(2, 3))))
    gp = gp[:, :, None, None] * jnp.ones((1, 1, HF, WF), jnp.float32)
    cat = jnp.concatenate([b1, b2, b3, gp], axis=1)
    proj = relu(jnp.einsum("oc,bcyx->boyx", tp["wp"], cat))
    logits = jnp.einsum("oc,bcyx->boyx", tp["wc"], proj)      # (B, 1, 8, 8)

    Mh = jnp.asarray(_bilinear_matrix(H, HF))
    Mw = jnp.asarray(_bilinear_matrix(W, WF))
    up = jnp.einsum("Yy,bcyx,Xx->bcYX", Mh, logits, Mw)
    mask = jax.nn.sigmoid(up)
    masked = state * mask
    f2 = resnet(masked)
    act = jnp.tanh(jnp.einsum("of,bf->bo", tp["fc"], f2.mean(axis=(2, 3))))
    return act, mask


# ----------------------------------------------------------------------------
# Demo
# ----------------------------------------------------------------------------
if __name__ == "__main__":
    B = 2
    state = jax.random.normal(jax.random.PRNGKey(0), (B, CIN, H, W),
                              dtype=jnp.float32)
    torch_p, kern_p = init_params()

    fwd = jax.jit(mask_deeplabv3_forward)
    act, mask = fwd(state, kern_p)
    jax.block_until_ready((act, mask))

    assert act.shape == (B, ACT_DIM)
    assert mask.shape == (B, 1, H, W)
    assert bool(jnp.all(jnp.isfinite(act))) and bool(jnp.all(jnp.isfinite(mask)))
    assert bool(jnp.all((mask >= 0.0) & (mask <= 1.0)))

    act_ref, mask_ref = reference_forward(state, torch_p)
    assert float(jnp.max(jnp.abs(act - act_ref))) < 3e-2
    assert float(jnp.max(jnp.abs(mask - mask_ref))) < 3e-2
    print("KERNEL_OK")
</pallas_src>

<mosaic_0001>
module attributes {stable_mosaic.version = 11 : i64} {
  func.func @_mask_deeplab_kernel(%arg0: i32, %arg1: memref<1x4x4x256xf32, #tpu.memory_space<vmem>>, %arg2: memref<1x256xf32, #tpu.memory_space<vmem>>, %arg3: memref<16x36xbf16, #tpu.memory_space<vmem>>, %arg4: memref<16x1xf32, #tpu.memory_space<vmem>>, %arg5: memref<16x144xbf16, #tpu.memory_space<vmem>>, %arg6: memref<16x1xf32, #tpu.memory_space<vmem>>, %arg7: memref<8x16xbf16, #tpu.memory_space<vmem>>, %arg8: memref<8x1xf32, #tpu.memory_space<vmem>>, %arg9: memref<8x144xbf16, #tpu.memory_space<vmem>>, %arg10: memref<8x1xf32, #tpu.memory_space<vmem>>, %arg11: memref<8x144xbf16, #tpu.memory_space<vmem>>, %arg12: memref<8x1xf32, #tpu.memory_space<vmem>>, %arg13: memref<8x16xbf16, #tpu.memory_space<vmem>>, %arg14: memref<8x1xf32, #tpu.memory_space<vmem>>, %arg15: memref<8x24xbf16, #tpu.memory_space<vmem>>, %arg16: memref<8x8xbf16, #tpu.memory_space<vmem>>, %arg17: memref<8x1xf32, #tpu.memory_space<vmem>>, %arg18: memref<1x8xbf16, #tpu.memory_space<vmem>>, %arg19: memref<1x1xf32, #tpu.memory_space<vmem>>, %arg20: memref<256x1280xbf16, #tpu.memory_space<vmem>>, %arg21: memref<6x16xbf16, #tpu.memory_space<vmem>>, %arg22: memref<6x1xf32, #tpu.memory_space<vmem>>, %arg23: memref<1x1x256xf32, #tpu.memory_space<vmem>>, %arg24: memref<1x6x1xf32, #tpu.memory_space<vmem>>) attributes {dimension_semantics = [#tpu.dimension_semantics<parallel>], iteration_bounds = array<i64: 2>, scalar_prefetch = 0 : i64, scratch_operands = 0 : i64, tpu.core_type = #tpu.core_type<tc>, window_params = [{transform_indices = @transform_0, window_bounds = array<i64: 1, 4, 4, 256>}, {pipeline_mode = #tpu.pipeline_mode<synchronous>, transform_indices = @transform_1, window_bounds = array<i64: 1, 256>}, {pipeline_mode = #tpu.pipeline_mode<synchronous>, transform_indices = @transform_2, window_bounds = array<i64: 16, 36>}, {pipeline_mode = #tpu.pipeline_mode<synchronous>, transform_indices = @transform_3, window_bounds = array<i64: 16, 1>}, {pipeline_mode = #tpu.pipeline_mode<synchronous>, transform_indices = @transform_4, window_bounds = array<i64: 16, 144>}, {pipeline_mode = #tpu.pipeline_mode<synchronous>, transform_indices = @transform_5, window_bounds = array<i64: 16, 1>}, {pipeline_mode = #tpu.pipeline_mode<synchronous>, transform_indices = @transform_6, window_bounds = array<i64: 8, 16>}, {pipeline_mode = #tpu.pipeline_mode<synchronous>, transform_indices = @transform_7, window_bounds = array<i64: 8, 1>}, {pipeline_mode = #tpu.pipeline_mode<synchronous>, transform_indices = @transform_8, window_bounds = array<i64: 8, 144>}, {pipeline_mode = #tpu.pipeline_mode<synchronous>, transform_indices = @transform_9, window_bounds = array<i64: 8, 1>}, {pipeline_mode = #tpu.pipeline_mode<synchronous>, transform_indices = @transform_10, window_bounds = array<i64: 8, 144>}, {pipeline_mode = #tpu.pipeline_mode<synchronous>, transform_indices = @transform_11, window_bounds = array<i64: 8, 1>}, {pipeline_mode = #tpu.pipeline_mode<synchronous>, transform_indices = @transform_12, window_bounds = array<i64: 8, 16>}, {pipeline_mode = #tpu.pipeline_mode<synchronous>, transform_indices = @transform_13, window_bounds = array<i64: 8, 1>}, {pipeline_mode = #tpu.pipeline_mode<synchronous>, transform_indices = @transform_14, window_bounds = array<i64: 8, 24>}, {pipeline_mode = #tpu.pipeline_mode<synchronous>, transform_indices = @transform_15, window_bounds = array<i64: 8, 8>}, {pipeline_mode = #tpu.pipeline_mode<synchronous>, transform_indices = @transform_16, window_bounds = array<i64: 8, 1>}, {pipeline_mode = #tpu.pipeline_mode<synchronous>, transform_indices = @transform_17, window_bounds = array<i64: 1, 8>}, {pipeline_mode = #tpu.pipeline_mode<synchronous>, transform_indices = @transform_18, window_bounds = array<i64: 1, 1>}, {pipeline_mode = #tpu.pipeline_mode<synchronous>, transform_indices = @transform_19, window_bounds = array<i64: 256, 1280>}, {pipeline_mode = #tpu.pipeline_mode<synchronous>, transform_indices = @transform_20, window_bounds = array<i64: 6, 16>}, {pipeline_mode = #tpu.pipeline_mode<synchronous>, transform_indices = @transform_21, window_bounds = array<i64: 6, 1>}, {transform_indices = @transform_22, window_bounds = array<i64: 1, 1, 256>}, {transform_indices = @transform_23, window_bounds = array<i64: 1, 6, 1>}]} {
    %c0 = arith.constant 0 : index
    %c0_0 = arith.constant 0 : index
    %0 = vector.load %arg2[%c0, %c0_0] : memref<1x256xf32, #tpu.memory_space<vmem>>, vector<1x256xf32>
    %c0_1 = arith.constant 0 : index
    %c0_2 = arith.constant 0 : index
    %c0_3 = arith.constant 0 : index
    %c0_4 = arith.constant 0 : index
    %1 = vector.load %arg1[%c0_1, %c0_2, %c0_3, %c0_4] : memref<1x4x4x256xf32, #tpu.memory_space<vmem>>, vector<1x1x4x256xf32>
    %2 = vector.shape_cast %1 : vector<1x1x4x256xf32> to vector<4x256xf32>
    %c0_5 = arith.constant 0 : index
    %c1 = arith.constant 1 : index
    %c0_6 = arith.constant 0 : index
    %c0_7 = arith.constant 0 : index
    %3 = vector.load %arg1[%c0_5, %c1, %c0_6, %c0_7] : memref<1x4x4x256xf32, #tpu.memory_space<vmem>>, vector<1x1x4x256xf32>
    %4 = vector.shape_cast %3 : vector<1x1x4x256xf32> to vector<4x256xf32>
    %c0_8 = arith.constant 0 : index
    %c2 = arith.constant 2 : index
    %c0_9 = arith.constant 0 : index
    %c0_10 = arith.constant 0 : index
    %5 = vector.load %arg1[%c0_8, %c2, %c0_9, %c0_10] : memref<1x4x4x256xf32, #tpu.memory_space<vmem>>, vector<1x1x4x256xf32>
    %6 = vector.shape_cast %5 : vector<1x1x4x256xf32> to vector<4x256xf32>
    %c0_11 = arith.constant 0 : index
    %c3 = arith.constant 3 : index
    %c0_12 = arith.constant 0 : index
    %c0_13 = arith.constant 0 : index
    %7 = vector.load %arg1[%c0_11, %c3, %c0_12, %c0_13] : memref<1x4x4x256xf32, #tpu.memory_space<vmem>>, vector<1x1x4x256xf32>
    %8 = vector.shape_cast %7 : vector<1x1x4x256xf32> to vector<4x256xf32>
    %cst = arith.constant 0.000000e+00 : f32
    %9 = vector.broadcast %cst : f32 to vector<4x128xf32>
    %10 = tpu.concatenate %9, %2, %9 in 1 : vector<4x128xf32>, vector<4x256xf32>, vector<4x128xf32> -> vector<4x512xf32>
    %cst_14 = arith.constant 0.000000e+00 : f32
    %11 = vector.broadcast %cst_14 : f32 to vector<4x128xf32>
    %12 = tpu.concatenate %11, %4, %11 in 1 : vector<4x128xf32>, vector<4x256xf32>, vector<4x128xf32> -> vector<4x512xf32>
    %cst_15 = arith.constant 0.000000e+00 : f32
    %13 = vector.broadcast %cst_15 : f32 to vector<4x128xf32>
    %14 = tpu.concatenate %13, %6, %13 in 1 : vector<4x128xf32>, vector<4x256xf32>, vector<4x128xf32> -> vector<4x512xf32>
    %cst_16 = arith.constant 0.000000e+00 : f32
    %15 = vector.broadcast %cst_16 : f32 to vector<4x128xf32>
    %16 = tpu.concatenate %15, %8, %15 in 1 : vector<4x128xf32>, vector<4x256xf32>, vector<4x128xf32> -> vector<4x512xf32>
    %17 = vector.extract_strided_slice %16 {offsets = [0, 111], sizes = [4, 256], strides = [1, 1]} : vector<4x512xf32> to vector<4x256xf32>
    %18 = vector.extract_strided_slice %14 {offsets = [0, 112], sizes = [4, 256], strides = [1, 1]} : vector<4x512xf32> to vector<4x256xf32>
    %19 = vector.extract_strided_slice %16 {offsets = [0, 112], sizes = [4, 256], strides = [1, 1]} : vector<4x512xf32> to vector<4x256xf32>
    %20 = vector.extract_strided_slice %12 {offsets = [0, 127], sizes = [4, 256], strides = [1, 1]} : vector<4x512xf32> to vector<4x256xf32>
    %21 = vector.extract_strided_slice %10 {offsets = [0, 128], sizes = [4, 256], strides = [1, 1]} : vector<4x512xf32> to vector<4x256xf32>
    %22 = vector.extract_strided_slice %12 {offsets = [0, 128], sizes = [4, 256], strides = [1, 1]} : vector<4x512xf32> to vector<4x256xf32>
    %23 = vector.extract_strided_slice %16 {offsets = [0, 127], sizes = [4, 256], strides = [1, 1]} : vector<4x512xf32> to vector<4x256xf32>
    %24 = vector.extract_strided_slice %14 {offsets = [0, 128], sizes = [4, 256], strides = [1, 1]} : vector<4x512xf32> to vector<4x256xf32>
    %25 = vector.extract_strided_slice %16 {offsets = [0, 128], sizes = [4, 256], strides = [1, 1]} : vector<4x512xf32> to vector<4x256xf32>
    %26 = tpu.concatenate %17, %18, %19, %20, %21, %22, %23, %24, %25 in 0 : vector<4x256xf32>, vector<4x256xf32>, vector<4x256xf32>, vector<4x256xf32>, vector<4x256xf32>, vector<4x256xf32>, vector<4x256xf32>, vector<4x256xf32>, vector<4x256xf32> -> vector<36x256xf32>
    %27 = arith.truncf %26 : vector<36x256xf32> to vector<36x256xbf16>
    %c0_17 = arith.constant 0 : index
    %c0_18 = arith.constant 0 : index
    %28 = vector.load %arg3[%c0_17, %c0_18] : memref<16x36xbf16, #tpu.memory_space<vmem>>, vector<16x36xbf16>
    %cst_19 = arith.constant dense<0.000000e+00> : vector<16x256xf32>
    %29 = tpu.matmul %28, %27, %cst_19 {dimension_numbers = #tpu.dot_dimension_numbers<[1], [0], [0], [1], [0, 0, 1, 1], [], []>} : vector<16x36xbf16>, vector<36x256xbf16>, vector<16x256xf32> -> vector<16x256xf32>
    %c0_20 = arith.constant 0 : index
    %c0_21 = arith.constant 0 : index
    %30 = vector.load %arg4[%c0_20, %c0_21] : memref<16x1xf32, #tpu.memory_space<vmem>>, vector<16x1xf32>
    %31 = vector.broadcast %30 : vector<16x1xf32> to vector<16x256xf32>
    %32 = arith.addf %29, %31 : vector<16x256xf32>
    %cst_22 = arith.constant 0.000000e+00 : f32
    %33 = vector.broadcast %cst_22 : f32 to vector<16x256xf32>
    %34 = arith.maximumf %32, %33 : vector<16x256xf32>
    %35 = vector.broadcast %0 : vector<1x256xf32> to vector<16x256xf32>
    %36 = arith.mulf %34, %35 : vector<16x256xf32>
    %c0_23 = arith.constant 0 : index
    %c0_24 = arith.constant 0 : index
    %37 = vector.load %arg5[%c0_23, %c0_24] : memref<16x144xbf16, #tpu.memory_space<vmem>>, vector<16x144xbf16>
    %c0_25 = arith.constant 0 : index
    %c0_26 = arith.constant 0 : index
    %38 = vector.load %arg6[%c0_25, %c0_26] : memref<16x1xf32, #tpu.memory_space<vmem>>, vector<16x1xf32>
    %cst_27 = arith.constant 0.000000e+00 : f32
    %39 = vector.broadcast %cst_27 : f32 to vector<16x128xf32>
    %40 = tpu.concatenate %39, %36, %39 in 1 : vector<16x128xf32>, vector<16x256xf32>, vector<16x128xf32> -> vector<16x512xf32>
    %41 = vector.extract_strided_slice %40 {offsets = [0, 111], sizes = [16, 256], strides = [1, 1]} : vector<16x512xf32> to vector<16x256xf32>
    %42 = vector.extract_strided_slice %40 {offsets = [0, 112], sizes = [16, 256], strides = [1, 1]} : vector<16x512xf32> to vector<16x256xf32>
    %43 = vector.extract_strided_slice %40 {offsets = [0, 113], sizes = [16, 256], strides = [1, 1]} : vector<16x512xf32> to vector<16x256xf32>
    %44 = vector.extract_strided_slice %40 {offsets = [0, 127], sizes = [16, 256], strides = [1, 1]} : vector<16x512xf32> to vector<16x256xf32>
    %45 = vector.extract_strided_slice %40 {offsets = [0, 128], sizes = [16, 256], strides = [1, 1]} : vector<16x512xf32> to vector<16x256xf32>
    %46 = vector.extract_strided_slice %40 {offsets = [0, 129], sizes = [16, 256], strides = [1, 1]} : vector<16x512xf32> to vector<16x256xf32>
    %47 = vector.extract_strided_slice %40 {offsets = [0, 143], sizes = [16, 256], strides = [1, 1]} : vector<16x512xf32> to vector<16x256xf32>
    %48 = vector.extract_strided_slice %40 {offsets = [0, 144], sizes = [16, 256], strides = [1, 1]} : vector<16x512xf32> to vector<16x256xf32>
    %49 = vector.extract_strided_slice %40 {offsets = [0, 145], sizes = [16, 256], strides = [1, 1]} : vector<16x512xf32> to vector<16x256xf32>
    %50 = tpu.concatenate %41, %42, %43, %44, %45, %46, %47, %48, %49 in 0 : vector<16x256xf32>, vector<16x256xf32>, vector<16x256xf32>, vector<16x256xf32>, vector<16x256xf32>, vector<16x256xf32>, vector<16x256xf32>, vector<16x256xf32>, vector<16x256xf32> -> vector<144x256xf32>
    %51 = arith.truncf %50 : vector<144x256xf32> to vector<144x256xbf16>
    %cst_28 = arith.constant dense<0.000000e+00> : vector<16x256xf32>
    %52 = tpu.matmul %37, %51, %cst_28 {dimension_numbers = #tpu.dot_dimension_numbers<[1], [0], [0], [1], [0, 0, 1, 1], [], []>} : vector<16x144xbf16>, vector<144x256xbf16>, vector<16x256xf32> -> vector<16x256xf32>
    %53 = vector.broadcast %38 : vector<16x1xf32> to vector<16x256xf32>
    %54 = arith.addf %52, %53 : vector<16x256xf32>
    %cst_29 = arith.constant 0.000000e+00 : f32
    %55 = vector.broadcast %cst_29 : f32 to vector<16x256xf32>
    %56 = arith.maximumf %54, %55 : vector<16x256xf32>
    %57 = vector.broadcast %0 : vector<1x256xf32> to vector<16x256xf32>
    %58 = arith.mulf %56, %57 : vector<16x256xf32>
    %59 = arith.truncf %58 : vector<16x256xf32> to vector<16x256xbf16>
    %c0_30 = arith.constant 0 : index
    %c0_31 = arith.constant 0 : index
    %60 = vector.load %arg7[%c0_30, %c0_31] : memref<8x16xbf16, #tpu.memory_space<vmem>>, vector<8x16xbf16>
    %cst_32 = arith.constant dense<0.000000e+00> : vector<8x256xf32>
    %61 = tpu.matmul %60, %59, %cst_32 {dimension_numbers = #tpu.dot_dimension_numbers<[1], [0], [0], [1], [0, 0, 1, 1], [], []>} : vector<8x16xbf16>, vector<16x256xbf16>, vector<8x256xf32> -> vector<8x256xf32>
    %c0_33 = arith.constant 0 : index
    %c0_34 = arith.constant 0 : index
    %62 = vector.load %arg8[%c0_33, %c0_34] : memref<8x1xf32, #tpu.memory_space<vmem>>, vector<8x1xf32>
    %63 = vector.broadcast %62 : vector<8x1xf32> to vector<8x256xf32>
    %64 = arith.addf %61, %63 : vector<8x256xf32>
    %cst_35 = arith.constant 0.000000e+00 : f32
    %65 = vector.broadcast %cst_35 : f32 to vector<8x256xf32>
    %66 = arith.maximumf %64, %65 : vector<8x256xf32>
    %c0_36 = arith.constant 0 : index
    %c0_37 = arith.constant 0 : index
    %67 = vector.load %arg9[%c0_36, %c0_37] : memref<8x144xbf16, #tpu.memory_space<vmem>>, vector<8x144xbf16>
    %c0_38 = arith.constant 0 : index
    %c0_39 = arith.constant 0 : index
    %68 = vector.load %arg10[%c0_38, %c0_39] : memref<8x1xf32, #tpu.memory_space<vmem>>, vector<8x1xf32>
    %cst_40 = arith.constant 0.000000e+00 : f32
    %69 = vector.broadcast %cst_40 : f32 to vector<16x128xf32>
    %70 = tpu.concatenate %69, %58, %69 in 1 : vector<16x128xf32>, vector<16x256xf32>, vector<16x128xf32> -> vector<16x512xf32>
    %71 = vector.extract_strided_slice %70 {offsets = [0, 94], sizes = [16, 256], strides = [1, 1]} : vector<16x512xf32> to vector<16x256xf32>
    %72 = vector.extract_strided_slice %70 {offsets = [0, 96], sizes = [16, 256], strides = [1, 1]} : vector<16x512xf32> to vector<16x256xf32>
    %73 = vector.extract_strided_slice %70 {offsets = [0, 98], sizes = [16, 256], strides = [1, 1]} : vector<16x512xf32> to vector<16x256xf32>
    %74 = vector.extract_strided_slice %70 {offsets = [0, 126], sizes = [16, 256], strides = [1, 1]} : vector<16x512xf32> to vector<16x256xf32>
    %75 = vector.extract_strided_slice %70 {offsets = [0, 128], sizes = [16, 256], strides = [1, 1]} : vector<16x512xf32> to vector<16x256xf32>
    %76 = vector.extract_strided_slice %70 {offsets = [0, 130], sizes = [16, 256], strides = [1, 1]} : vector<16x512xf32> to vector<16x256xf32>
    %77 = vector.extract_strided_slice %70 {offsets = [0, 158], sizes = [16, 256], strides = [1, 1]} : vector<16x512xf32> to vector<16x256xf32>
    %78 = vector.extract_strided_slice %70 {offsets = [0, 160], sizes = [16, 256], strides = [1, 1]} : vector<16x512xf32> to vector<16x256xf32>
    %79 = vector.extract_strided_slice %70 {offsets = [0, 162], sizes = [16, 256], strides = [1, 1]} : vector<16x512xf32> to vector<16x256xf32>
    %80 = tpu.concatenate %71, %72, %73, %74, %75, %76, %77, %78, %79 in 0 : vector<16x256xf32>, vector<16x256xf32>, vector<16x256xf32>, vector<16x256xf32>, vector<16x256xf32>, vector<16x256xf32>, vector<16x256xf32>, vector<16x256xf32>, vector<16x256xf32> -> vector<144x256xf32>
    %81 = arith.truncf %80 : vector<144x256xf32> to vector<144x256xbf16>
    %cst_41 = arith.constant dense<0.000000e+00> : vector<8x256xf32>
    %82 = tpu.matmul %67, %81, %cst_41 {dimension_numbers = #tpu.dot_dimension_numbers<[1], [0], [0], [1], [0, 0, 1, 1], [], []>} : vector<8x144xbf16>, vector<144x256xbf16>, vector<8x256xf32> -> vector<8x256xf32>
    %83 = vector.broadcast %68 : vector<8x1xf32> to vector<8x256xf32>
    %84 = arith.addf %82, %83 : vector<8x256xf32>
    %cst_42 = arith.constant 0.000000e+00 : f32
    %85 = vector.broadcast %cst_42 : f32 to vector<8x256xf32>
    %86 = arith.maximumf %84, %85 : vector<8x256xf32>
    %87 = vector.broadcast %0 : vector<1x256xf32> to vector<8x256xf32>
    %88 = arith.mulf %86, %87 : vector<8x256xf32>
    %c0_43 = arith.constant 0 : index
    %c0_44 = arith.constant 0 : index
    %89 = vector.load %arg11[%c0_43, %c0_44] : memref<8x144xbf16, #tpu.memory_space<vmem>>, vector<8x144xbf16>
    %c0_45 = arith.constant 0 : index
    %c0_46 = arith.constant 0 : index
    %90 = vector.load %arg12[%c0_45, %c0_46] : memref<8x1xf32, #tpu.memory_space<vmem>>, vector<8x1xf32>
    %cst_47 = arith.constant 0.000000e+00 : f32
    %91 = vector.broadcast %cst_47 : f32 to vector<16x128xf32>
    %92 = tpu.concatenate %91, %58, %91 in 1 : vector<16x128xf32>, vector<16x256xf32>, vector<16x128xf32> -> vector<16x512xf32>
    %93 = vector.extract_strided_slice %92 {offsets = [0, 60], sizes = [16, 256], strides = [1, 1]} : vector<16x512xf32> to vector<16x256xf32>
    %94 = vector.extract_strided_slice %92 {offsets = [0, 64], sizes = [16, 256], strides = [1, 1]} : vector<16x512xf32> to vector<16x256xf32>
    %95 = vector.extract_strided_slice %92 {offsets = [0, 68], sizes = [16, 256], strides = [1, 1]} : vector<16x512xf32> to vector<16x256xf32>
    %96 = vector.extract_strided_slice %92 {offsets = [0, 124], sizes = [16, 256], strides = [1, 1]} : vector<16x512xf32> to vector<16x256xf32>
    %97 = vector.extract_strided_slice %92 {offsets = [0, 128], sizes = [16, 256], strides = [1, 1]} : vector<16x512xf32> to vector<16x256xf32>
    %98 = vector.extract_strided_slice %92 {offsets = [0, 132], sizes = [16, 256], strides = [1, 1]} : vector<16x512xf32> to vector<16x256xf32>
    %99 = vector.extract_strided_slice %92 {offsets = [0, 188], sizes = [16, 256], strides = [1, 1]} : vector<16x512xf32> to vector<16x256xf32>
    %100 = vector.extract_strided_slice %92 {offsets = [0, 192], sizes = [16, 256], strides = [1, 1]} : vector<16x512xf32> to vector<16x256xf32>
    %101 = vector.extract_strided_slice %92 {offsets = [0, 196], sizes = [16, 256], strides = [1, 1]} : vector<16x512xf32> to vector<16x256xf32>
    %102 = tpu.concatenate %93, %94, %95, %96, %97, %98, %99, %100, %101 in 0 : vector<16x256xf32>, vector<16x256xf32>, vector<16x256xf32>, vector<16x256xf32>, vector<16x256xf32>, vector<16x256xf32>, vector<16x256xf32>, vector<16x256xf32>, vector<16x256xf32> -> vector<144x256xf32>
    %103 = arith.truncf %102 : vector<144x256xf32> to vector<144x256xbf16>
    %cst_48 = arith.constant dense<0.000000e+00> : vector<8x256xf32>
    %104 = tpu.matmul %89, %103, %cst_48 {dimension_numbers = #tpu.dot_dimension_numbers<[1], [0], [0], [1], [0, 0, 1, 1], [], []>} : vector<8x144xbf16>, vector<144x256xbf16>, vector<8x256xf32> -> vector<8x256xf32>
    %105 = vector.broadcast %90 : vector<8x1xf32> to vector<8x256xf32>
    %106 = arith.addf %104, %105 : vector<8x256xf32>
    %cst_49 = arith.constant 0.000000e+00 : f32
    %107 = vector.broadcast %cst_49 : f32 to vector<8x256xf32>
    %108 = arith.maximumf %106, %107 : vector<8x256xf32>
    %109 = vector.broadcast %0 : vector<1x256xf32> to vector<8x256xf32>
    %110 = arith.mulf %108, %109 : vector<8x256xf32>
    %cst_50 = arith.constant dense<0.000000e+00> : vector<16xf32>
    %111 = vector.multi_reduction <add>, %58, %cst_50 [1] : vector<16x256xf32> to vector<16xf32>
    %112 = vector.shape_cast %111 : vector<16xf32> to vector<16x1xf32>
    %cst_51 = arith.constant 1.562500e-02 : f32
    %113 = vector.broadcast %cst_51 : f32 to vector<16x1xf32>
    %114 = arith.mulf %112, %113 : vector<16x1xf32>
    %115 = arith.truncf %114 : vector<16x1xf32> to vector<16x1xbf16>
    %c0_52 = arith.constant 0 : index
    %c0_53 = arith.constant 0 : index
    %116 = vector.load %arg13[%c0_52, %c0_53] : memref<8x16xbf16, #tpu.memory_space<vmem>>, vector<8x16xbf16>
    %cst_54 = arith.constant dense<0.000000e+00> : vector<8x1xf32>
    %117 = tpu.matmul %116, %115, %cst_54 {dimension_numbers = #tpu.dot_dimension_numbers<[1], [0], [0], [1], [0, 0, 1, 1], [], []>} : vector<8x16xbf16>, vector<16x1xbf16>, vector<8x1xf32> -> vector<8x1xf32>
    %c0_55 = arith.constant 0 : index
    %c0_56 = arith.constant 0 : index
    %118 = vector.load %arg14[%c0_55, %c0_56] : memref<8x1xf32, #tpu.memory_space<vmem>>, vector<8x1xf32>
    %119 = arith.addf %117, %118 : vector<8x1xf32>
    %cst_57 = arith.constant 0.000000e+00 : f32
    %120 = vector.broadcast %cst_57 : f32 to vector<8x1xf32>
    %121 = arith.maximumf %119, %120 : vector<8x1xf32>
    %122 = tpu.concatenate %66, %88, %110 in 0 : vector<8x256xf32>, vector<8x256xf32>, vector<8x256xf32> -> vector<24x256xf32>
    %123 = arith.truncf %122 : vector<24x256xf32> to vector<24x256xbf16>
    %c0_58 = arith.constant 0 : index
    %c0_59 = arith.constant 0 : index
    %124 = vector.load %arg15[%c0_58, %c0_59] : memref<8x24xbf16, #tpu.memory_space<vmem>>, vector<8x24xbf16>
    %cst_60 = arith.constant dense<0.000000e+00> : vector<8x256xf32>
    %125 = tpu.matmul %124, %123, %cst_60 {dimension_numbers = #tpu.dot_dimension_numbers<[1], [0], [0], [1], [0, 0, 1, 1], [], []>} : vector<8x24xbf16>, vector<24x256xbf16>, vector<8x256xf32> -> vector<8x256xf32>
    %c0_61 = arith.constant 0 : index
    %c0_62 = arith.constant 0 : index
    %126 = vector.load %arg16[%c0_61, %c0_62] : memref<8x8xbf16, #tpu.memory_space<vmem>>, vector<8x8xbf16>
    %127 = arith.truncf %121 : vector<8x1xf32> to vector<8x1xbf16>
    %cst_63 = arith.constant dense<0.000000e+00> : vector<8x1xf32>
    %128 = tpu.matmul %126, %127, %cst_63 {dimension_numbers = #tpu.dot_dimension_numbers<[1], [0], [0], [1], [0, 0, 1, 1], [], []>} : vector<8x8xbf16>, vector<8x1xbf16>, vector<8x1xf32> -> vector<8x1xf32>
    %129 = vector.broadcast %128 : vector<8x1xf32> to vector<8x256xf32>
    %130 = arith.addf %125, %129 : vector<8x256xf32>
    %c0_64 = arith.constant 0 : index
    %c0_65 = arith.constant 0 : index
    %131 = vector.load %arg17[%c0_64, %c0_65] : memref<8x1xf32, #tpu.memory_space<vmem>>, vector<8x1xf32>
    %132 = vector.broadcast %131 : vector<8x1xf32> to vector<8x256xf32>
    %133 = arith.addf %130, %132 : vector<8x256xf32>
    %cst_66 = arith.constant 0.000000e+00 : f32
    %134 = vector.broadcast %cst_66 : f32 to vector<8x256xf32>
    %135 = arith.maximumf %133, %134 : vector<8x256xf32>
    %c0_67 = arith.constant 0 : index
    %c0_68 = arith.constant 0 : index
    %136 = vector.load %arg18[%c0_67, %c0_68] : memref<1x8xbf16, #tpu.memory_space<vmem>>, vector<1x8xbf16>
    %137 = arith.truncf %135 : vector<8x256xf32> to vector<8x256xbf16>
    %cst_69 = arith.constant dense<0.000000e+00> : vector<1x256xf32>
    %138 = tpu.matmul %136, %137, %cst_69 {dimension_numbers = #tpu.dot_dimension_numbers<[1], [0], [0], [1], [0, 0, 1, 1], [], []>} : vector<1x8xbf16>, vector<8x256xbf16>, vector<1x256xf32> -> vector<1x256xf32>
    %c0_70 = arith.constant 0 : index
    %c0_71 = arith.constant 0 : index
    %139 = vector.load %arg19[%c0_70, %c0_71] : memref<1x1xf32, #tpu.memory_space<vmem>>, vector<1x1xf32>
    %140 = vector.broadcast %139 : vector<1x1xf32> to vector<1x256xf32>
    %141 = arith.addf %138, %140 : vector<1x256xf32>
    %142 = arith.truncf %141 : vector<1x256xf32> to vector<1x256xbf16>
    %c0_72 = arith.constant 0 : index
    %c0_73 = arith.constant 0 : index
    %143 = vector.load %arg20[%c0_72, %c0_73] : memref<256x1280xbf16, #tpu.memory_space<vmem>>, vector<256x1280xbf16>
    %cst_74 = arith.constant dense<0.000000e+00> : vector<1x1280xf32>
    %144 = tpu.matmul %142, %143, %cst_74 {dimension_numbers = #tpu.dot_dimension_numbers<[1], [0], [0], [1], [0, 0, 1, 1], [], []>} : vector<1x256xbf16>, vector<256x1280xbf16>, vector<1x1280xf32> -> vector<1x1280xf32>
    %145 = arith.negf %144 : vector<1x1280xf32>
    %146 = math.exp %145 : vector<1x1280xf32>
    %cst_75 = arith.constant 1.000000e+00 : f32
    %147 = vector.broadcast %cst_75 : f32 to vector<1x1280xf32>
    %148 = arith.addf %147, %146 : vector<1x1280xf32>
    %149 = arith.divf %147, %148 : vector<1x1280xf32>
    %150 = vector.extract_strided_slice %149 {offsets = [0, 0], sizes = [1, 256], strides = [1, 1]} : vector<1x1280xf32> to vector<1x256xf32>
    %c0_76 = arith.constant 0 : index
    %c0_77 = arith.constant 0 : index
    %c0_78 = arith.constant 0 : index
    %151 = vector.load %arg23[%c0_76, %c0_77, %c0_78] : memref<1x1x256xf32, #tpu.memory_space<vmem>>, vector<1x1x256xf32>
    %152 = vector.shape_cast %151 : vector<1x1x256xf32> to vector<1x256xf32>
    %153 = vector.shape_cast %150 : vector<1x256xf32> to vector<1x1x256xf32>
    tpu.vector_store %arg23[%c0_76, %c0_77, %c0_78], %153 {strides = array<i32>} : memref<1x1x256xf32, #tpu.memory_space<vmem>>, vector<1x1x256xf32>,
    %154 = vector.extract_strided_slice %149 {offsets = [0, 256], sizes = [1, 256], strides = [1, 1]} : vector<1x1280xf32> to vector<1x256xf32>
    %155 = vector.broadcast %154 : vector<1x256xf32> to vector<4x256xf32>
    %156 = arith.mulf %2, %155 : vector<4x256xf32>
    %157 = vector.extract_strided_slice %149 {offsets = [0, 512], sizes = [1, 256], strides = [1, 1]} : vector<1x1280xf32> to vector<1x256xf32>
    %158 = vector.broadcast %157 : vector<1x256xf32> to vector<4x256xf32>
    %159 = arith.mulf %4, %158 : vector<4x256xf32>
    %160 = vector.extract_strided_slice %149 {offsets = [0, 768], sizes = [1, 256], strides = [1, 1]} : vector<1x1280xf32> to vector<1x256xf32>
    %161 = vector.broadcast %160 : vector<1x256xf32> to vector<4x256xf32>
    %162 = arith.mulf %6, %161 : vector<4x256xf32>
    %163 = vector.extract_strided_slice %149 {offsets = [0, 1024], sizes = [1, 256], strides = [1, 1]} : vector<1x1280xf32> to vector<1x256xf32>
    %164 = vector.broadcast %163 : vector<1x256xf32> to vector<4x256xf32>
    %165 = arith.mulf %8, %164 : vector<4x256xf32>
    %cst_79 = arith.constant 0.000000e+00 : f32
    %166 = vector.broadcast %cst_79 : f32 to vector<4x128xf32>
    %167 = tpu.concatenate %166, %156, %166 in 1 : vector<4x128xf32>, vector<4x256xf32>, vector<4x128xf32> -> vector<4x512xf32>
    %cst_80 = arith.constant 0.000000e+00 : f32
    %168 = vector.broadcast %cst_80 : f32 to vector<4x128xf32>
    %169 = tpu.concatenate %168, %159, %168 in 1 : vector<4x128xf32>, vector<4x256xf32>, vector<4x128xf32> -> vector<4x512xf32>
    %cst_81 = arith.constant 0.000000e+00 : f32
    %170 = vector.broadcast %cst_81 : f32 to vector<4x128xf32>
    %171 = tpu.concatenate %170, %162, %170 in 1 : vector<4x128xf32>, vector<4x256xf32>, vector<4x128xf32> -> vector<4x512xf32>
    %cst_82 = arith.constant 0.000000e+00 : f32
    %172 = vector.broadcast %cst_82 : f32 to vector<4x128xf32>
    %173 = tpu.concatenate %172, %165, %172 in 1 : vector<4x128xf32>, vector<4x256xf32>, vector<4x128xf32> -> vector<4x512xf32>
    %174 = vector.extract_strided_slice %173 {offsets = [0, 111], sizes = [4, 256], strides = [1, 1]} : vector<4x512xf32> to vector<4x256xf32>
    %175 = vector.extract_strided_slice %171 {offsets = [0, 112], sizes = [4, 256], strides = [1, 1]} : vector<4x512xf32> to vector<4x256xf32>
    %176 = vector.extract_strided_slice %173 {offsets = [0, 112], sizes = [4, 256], strides = [1, 1]} : vector<4x512xf32> to vector<4x256xf32>
    %177 = vector.extract_strided_slice %169 {offsets = [0, 127], sizes = [4, 256], strides = [1, 1]} : vector<4x512xf32> to vector<4x256xf32>
    %178 = vector.extract_strided_slice %167 {offsets = [0, 128], sizes = [4, 256], strides = [1, 1]} : vector<4x512xf32> to vector<4x256xf32>
    %179 = vector.extract_strided_slice %169 {offsets = [0, 128], sizes = [4, 256], strides = [1, 1]} : vector<4x512xf32> to vector<4x256xf32>
    %180 = vector.extract_strided_slice %173 {offsets = [0, 127], sizes = [4, 256], strides = [1, 1]} : vector<4x512xf32> to vector<4x256xf32>
    %181 = vector.extract_strided_slice %171 {offsets = [0, 128], sizes = [4, 256], strides = [1, 1]} : vector<4x512xf32> to vector<4x256xf32>
    %182 = vector.extract_strided_slice %173 {offsets = [0, 128], sizes = [4, 256], strides = [1, 1]} : vector<4x512xf32> to vector<4x256xf32>
    %183 = tpu.concatenate %174, %175, %176, %177, %178, %179, %180, %181, %182 in 0 : vector<4x256xf32>, vector<4x256xf32>, vector<4x256xf32>, vector<4x256xf32>, vector<4x256xf32>, vector<4x256xf32>, vector<4x256xf32>, vector<4x256xf32>, vector<4x256xf32> -> vector<36x256xf32>
    %184 = arith.truncf %183 : vector<36x256xf32> to vector<36x256xbf16>
    %c0_83 = arith.constant 0 : index
    %c0_84 = arith.constant 0 : index
    %185 = vector.load %arg3[%c0_83, %c0_84] : memref<16x36xbf16, #tpu.memory_space<vmem>>, vector<16x36xbf16>
    %cst_85 = arith.constant dense<0.000000e+00> : vector<16x256xf32>
    %186 = tpu.matmul %185, %184, %cst_85 {dimension_numbers = #tpu.dot_dimension_numbers<[1], [0], [0], [1], [0, 0, 1, 1], [], []>} : vector<16x36xbf16>, vector<36x256xbf16>, vector<16x256xf32> -> vector<16x256xf32>
    %c0_86 = arith.constant 0 : index
    %c0_87 = arith.constant 0 : index
    %187 = vector.load %arg4[%c0_86, %c0_87] : memref<16x1xf32, #tpu.memory_space<vmem>>, vector<16x1xf32>
    %188 = vector.broadcast %187 : vector<16x1xf32> to vector<16x256xf32>
    %189 = arith.addf %186, %188 : vector<16x256xf32>
    %cst_88 = arith.constant 0.000000e+00 : f32
    %190 = vector.broadcast %cst_88 : f32 to vector<16x256xf32>
    %191 = arith.maximumf %189, %190 : vector<16x256xf32>
    %192 = vector.broadcast %0 : vector<1x256xf32> to vector<16x256xf32>
    %193 = arith.mulf %191, %192 : vector<16x256xf32>
    %c0_89 = arith.constant 0 : index
    %c0_90 = arith.constant 0 : index
    %194 = vector.load %arg5[%c0_89, %c0_90] : memref<16x144xbf16, #tpu.memory_space<vmem>>, vector<16x144xbf16>
    %c0_91 = arith.constant 0 : index
    %c0_92 = arith.constant 0 : index
    %195 = vector.load %arg6[%c0_91, %c0_92] : memref<16x1xf32, #tpu.memory_space<vmem>>, vector<16x1xf32>
    %cst_93 = arith.constant 0.000000e+00 : f32
    %196 = vector.broadcast %cst_93 : f32 to vector<16x128xf32>
    %197 = tpu.concatenate %196, %193, %196 in 1 : vector<16x128xf32>, vector<16x256xf32>, vector<16x128xf32> -> vector<16x512xf32>
    %198 = vector.extract_strided_slice %197 {offsets = [0, 111], sizes = [16, 256], strides = [1, 1]} : vector<16x512xf32> to vector<16x256xf32>
    %199 = vector.extract_strided_slice %197 {offsets = [0, 112], sizes = [16, 256], strides = [1, 1]} : vector<16x512xf32> to vector<16x256xf32>
    %200 = vector.extract_strided_slice %197 {offsets = [0, 113], sizes = [16, 256], strides = [1, 1]} : vector<16x512xf32> to vector<16x256xf32>
    %201 = vector.extract_strided_slice %197 {offsets = [0, 127], sizes = [16, 256], strides = [1, 1]} : vector<16x512xf32> to vector<16x256xf32>
    %202 = vector.extract_strided_slice %197 {offsets = [0, 128], sizes = [16, 256], strides = [1, 1]} : vector<16x512xf32> to vector<16x256xf32>
    %203 = vector.extract_strided_slice %197 {offsets = [0, 129], sizes = [16, 256], strides = [1, 1]} : vector<16x512xf32> to vector<16x256xf32>
    %204 = vector.extract_strided_slice %197 {offsets = [0, 143], sizes = [16, 256], strides = [1, 1]} : vector<16x512xf32> to vector<16x256xf32>
    %205 = vector.extract_strided_slice %197 {offsets = [0, 144], sizes = [16, 256], strides = [1, 1]} : vector<16x512xf32> to vector<16x256xf32>
    %206 = vector.extract_strided_slice %197 {offsets = [0, 145], sizes = [16, 256], strides = [1, 1]} : vector<16x512xf32> to vector<16x256xf32>
    %207 = tpu.concatenate %198, %199, %200, %201, %202, %203, %204, %205, %206 in 0 : vector<16x256xf32>, vector<16x256xf32>, vector<16x256xf32>, vector<16x256xf32>, vector<16x256xf32>, vector<16x256xf32>, vector<16x256xf32>, vector<16x256xf32>, vector<16x256xf32> -> vector<144x256xf32>
    %208 = arith.truncf %207 : vector<144x256xf32> to vector<144x256xbf16>
    %cst_94 = arith.constant dense<0.000000e+00> : vector<16x256xf32>
    %209 = tpu.matmul %194, %208, %cst_94 {dimension_numbers = #tpu.dot_dimension_numbers<[1], [0], [0], [1], [0, 0, 1, 1], [], []>} : vector<16x144xbf16>, vector<144x256xbf16>, vector<16x256xf32> -> vector<16x256xf32>
    %210 = vector.broadcast %195 : vector<16x1xf32> to vector<16x256xf32>
    %211 = arith.addf %209, %210 : vector<16x256xf32>
    %cst_95 = arith.constant 0.000000e+00 : f32
    %212 = vector.broadcast %cst_95 : f32 to vector<16x256xf32>
    %213 = arith.maximumf %211, %212 : vector<16x256xf32>
    %214 = vector.broadcast %0 : vector<1x256xf32> to vector<16x256xf32>
    %215 = arith.mulf %213, %214 : vector<16x256xf32>
    %cst_96 = arith.constant dense<0.000000e+00> : vector<16xf32>
    %216 = vector.multi_reduction <add>, %215, %cst_96 [1] : vector<16x256xf32> to vector<16xf32>
    %217 = vector.shape_cast %216 : vector<16xf32> to vector<16x1xf32>
    %cst_97 = arith.constant 1.562500e-02 : f32
    %218 = vector.broadcast %cst_97 : f32 to vector<16x1xf32>
    %219 = arith.mulf %217, %218 : vector<16x1xf32>
    %220 = arith.truncf %219 : vector<16x1xf32> to vector<16x1xbf16>
    %c0_98 = arith.constant 0 : index
    %c0_99 = arith.constant 0 : index
    %221 = vector.load %arg21[%c0_98, %c0_99] : memref<6x16xbf16, #tpu.memory_space<vmem>>, vector<6x16xbf16>
    %cst_100 = arith.constant dense<0.000000e+00> : vector<6x1xf32>
    %222 = tpu.matmul %221, %220, %cst_100 {dimension_numbers = #tpu.dot_dimension_numbers<[1], [0], [0], [1], [0, 0, 1, 1], [], []>} : vector<6x16xbf16>, vector<16x1xbf16>, vector<6x1xf32> -> vector<6x1xf32>
    %c0_101 = arith.constant 0 : index
    %c0_102 = arith.constant 0 : index
    %223 = vector.load %arg22[%c0_101, %c0_102] : memref<6x1xf32, #tpu.memory_space<vmem>>, vector<6x1xf32>
    %224 = arith.addf %222, %223 : vector<6x1xf32>
    %225 = math.tanh %224 : vector<6x1xf32>
    %c0_103 = arith.constant 0 : index
    %c0_104 = arith.constant 0 : index
    %c0_105 = arith.constant 0 : index
    %226 = vector.load %arg24[%c0_103, %c0_104, %c0_105] : memref<1x6x1xf32, #tpu.memory_space<vmem>>, vector<1x6x1xf32>
    %227 = vector.shape_cast %226 : vector<1x6x1xf32> to vector<6x1xf32>
    %228 = vector.shape_cast %225 : vector<6x1xf32> to vector<1x6x1xf32>
    tpu.vector_store %arg24[%c0_103, %c0_104, %c0_105], %228 {strides = array<i32>} : memref<1x6x1xf32, #tpu.memory_space<vmem>>, vector<1x6x1xf32>,
    return
  }
  func.func @transform_0(%arg0: i32) -> (i32, i32, i32, i32) {
    %c0_i32 = arith.constant 0 : i32
    %c0_i32_0 = arith.constant 0 : i32
    %c0_i32_1 = arith.constant 0 : i32
    %c0_i32_2 = arith.constant 0 : i32
    return %arg0, %c0_i32, %c0_i32_0, %c0_i32_1 : i32, i32, i32, i32
  }
  func.func @transform_1(%arg0: i32) -> (i32, i32) {
    %c0_i32 = arith.constant 0 : i32
    %c0_i32_0 = arith.constant 0 : i32
    %c0_i32_1 = arith.constant 0 : i32
    return %c0_i32, %c0_i32_0 : i32, i32
  }
  func.func @transform_2(%arg0: i32) -> (i32, i32) {
    %c0_i32 = arith.constant 0 : i32
    %c0_i32_0 = arith.constant 0 : i32
    %c0_i32_1 = arith.constant 0 : i32
    return %c0_i32, %c0_i32_0 : i32, i32
  }
  func.func @transform_3(%arg0: i32) -> (i32, i32) {
    %c0_i32 = arith.constant 0 : i32
    %c0_i32_0 = arith.constant 0 : i32
    %c0_i32_1 = arith.constant 0 : i32
    return %c0_i32, %c0_i32_0 : i32, i32
  }
  func.func @transform_4(%arg0: i32) -> (i32, i32) {
    %c0_i32 = arith.constant 0 : i32
    %c0_i32_0 = arith.constant 0 : i32
    %c0_i32_1 = arith.constant 0 : i32
    return %c0_i32, %c0_i32_0 : i32, i32
  }
  func.func @transform_5(%arg0: i32) -> (i32, i32) {
    %c0_i32 = arith.constant 0 : i32
    %c0_i32_0 = arith.constant 0 : i32
    %c0_i32_1 = arith.constant 0 : i32
    return %c0_i32, %c0_i32_0 : i32, i32
  }
  func.func @transform_6(%arg0: i32) -> (i32, i32) {
    %c0_i32 = arith.constant 0 : i32
    %c0_i32_0 = arith.constant 0 : i32
    %c0_i32_1 = arith.constant 0 : i32
    return %c0_i32, %c0_i32_0 : i32, i32
  }
  func.func @transform_7(%arg0: i32) -> (i32, i32) {
    %c0_i32 = arith.constant 0 : i32
    %c0_i32_0 = arith.constant 0 : i32
    %c0_i32_1 = arith.constant 0 : i32
    return %c0_i32, %c0_i32_0 : i32, i32
  }
  func.func @transform_8(%arg0: i32) -> (i32, i32) {
    %c0_i32 = arith.constant 0 : i32
    %c0_i32_0 = arith.constant 0 : i32
    %c0_i32_1 = arith.constant 0 : i32
    return %c0_i32, %c0_i32_0 : i32, i32
  }
  func.func @transform_9(%arg0: i32) -> (i32, i32) {
    %c0_i32 = arith.constant 0 : i32
    %c0_i32_0 = arith.constant 0 : i32
    %c0_i32_1 = arith.constant 0 : i32
    return %c0_i32, %c0_i32_0 : i32, i32
  }
  func.func @transform_10(%arg0: i32) -> (i32, i32) {
    %c0_i32 = arith.constant 0 : i32
    %c0_i32_0 = arith.constant 0 : i32
    %c0_i32_1 = arith.constant 0 : i32
    return %c0_i32, %c0_i32_0 : i32, i32
  }
  func.func @transform_11(%arg0: i32) -> (i32, i32) {
    %c0_i32 = arith.constant 0 : i32
    %c0_i32_0 = arith.constant 0 : i32
    %c0_i32_1 = arith.constant 0 : i32
    return %c0_i32, %c0_i32_0 : i32, i32
  }
  func.func @transform_12(%arg0: i32) -> (i32, i32) {
    %c0_i32 = arith.constant 0 : i32
    %c0_i32_0 = arith.constant 0 : i32
    %c0_i32_1 = arith.constant 0 : i32
    return %c0_i32, %c0_i32_0 : i32, i32
  }
  func.func @transform_13(%arg0: i32) -> (i32, i32) {
    %c0_i32 = arith.constant 0 : i32
    %c0_i32_0 = arith.constant 0 : i32
    %c0_i32_1 = arith.constant 0 : i32
    return %c0_i32, %c0_i32_0 : i32, i32
  }
  func.func @transform_14(%arg0: i32) -> (i32, i32) {
    %c0_i32 = arith.constant 0 : i32
    %c0_i32_0 = arith.constant 0 : i32
    %c0_i32_1 = arith.constant 0 : i32
    return %c0_i32, %c0_i32_0 : i32, i32
  }
  func.func @transform_15(%arg0: i32) -> (i32, i32) {
    %c0_i32 = arith.constant 0 : i32
    %c0_i32_0 = arith.constant 0 : i32
    %c0_i32_1 = arith.constant 0 : i32
    return %c0_i32, %c0_i32_0 : i32, i32
  }
  func.func @transform_16(%arg0: i32) -> (i32, i32) {
    %c0_i32 = arith.constant 0 : i32
    %c0_i32_0 = arith.constant 0 : i32
    %c0_i32_1 = arith.constant 0 : i32
    return %c0_i32, %c0_i32_0 : i32, i32
  }
  func.func @transform_17(%arg0: i32) -> (i32, i32) {
    %c0_i32 = arith.constant 0 : i32
    %c0_i32_0 = arith.constant 0 : i32
    %c0_i32_1 = arith.constant 0 : i32
    return %c0_i32, %c0_i32_0 : i32, i32
  }
  func.func @transform_18(%arg0: i32) -> (i32, i32) {
    %c0_i32 = arith.constant 0 : i32
    %c0_i32_0 = arith.constant 0 : i32
    %c0_i32_1 = arith.constant 0 : i32
    return %c0_i32, %c0_i32_0 : i32, i32
  }
  func.func @transform_19(%arg0: i32) -> (i32, i32) {
    %c0_i32 = arith.constant 0 : i32
    %c0_i32_0 = arith.constant 0 : i32
    %c0_i32_1 = arith.constant 0 : i32
    return %c0_i32, %c0_i32_0 : i32, i32
  }
  func.func @transform_20(%arg0: i32) -> (i32, i32) {
    %c0_i32 = arith.constant 0 : i32
    %c0_i32_0 = arith.constant 0 : i32
    %c0_i32_1 = arith.constant 0 : i32
    return %c0_i32, %c0_i32_0 : i32, i32
  }
  func.func @transform_21(%arg0: i32) -> (i32, i32) {
    %c0_i32 = arith.constant 0 : i32
    %c0_i32_0 = arith.constant 0 : i32
    %c0_i32_1 = arith.constant 0 : i32
    return %c0_i32, %c0_i32_0 : i32, i32
  }
  func.func @transform_22(%arg0: i32) -> (i32, i32, i32) {
    %c0_i32 = arith.constant 0 : i32
    %c0_i32_0 = arith.constant 0 : i32
    %c0_i32_1 = arith.constant 0 : i32
    return %arg0, %c0_i32, %c0_i32_0 : i32, i32, i32
  }
  func.func @transform_23(%arg0: i32) -> (i32, i32, i32) {
    %c0_i32 = arith.constant 0 : i32
    %c0_i32_0 = arith.constant 0 : i32
    %c0_i32_1 = arith.constant 0 : i32
    return %arg0, %c0_i32, %c0_i32_0 : i32, i32, i32
  }
}

</mosaic_0001>

<bundles_post_ra>
// kernel: mask_deeplabv3_forward.1
= control target key start
LH: loop header
LB: loop body
LE: loop exit
PB: predicated region body
PF: predicated region fallthrough
CT: control target
= control target key end

     0   :  { %s5772_s24 = smov 0   ;;  %s7944_s0 = inlined_call_operand.vmem [shape: f32[2,4,4,256], index: 0, kind: input, shape index: {}]   ;;  %s7945_s1 = inlined_call_operand.vmem [shape: f32[1,256], index: 1, kind: input, shape index: {}]   ;;  %s7946_s2 = inlined_call_operand.vmem [shape: bf16[16,36], index: 2, kind: input, shape index: {}]   ;;  %s7947_s3 = inlined_call_operand.vmem [shape: f32[16,1], index: 3, kind: input, shape index: {}]   ;;  %s7948_s4 = inlined_call_operand.vmem [shape: bf16[16,144], index: 4, kind: input, shape index: {}]   ;;  %s7949_s5 = inlined_call_operand.vmem [shape: f32[16,1], index: 5, kind: input, shape index: {}]   ;;  %s7950_s6 = inlined_call_operand.vmem [shape: bf16[8,16], index: 6, kind: input, shape index: {}]   ;;  %s7951_s7 = inlined_call_operand.vmem [shape: f32[8,1], index: 7, kind: input, shape index: {}]   ;;  %s7952_s8 = inlined_call_operand.vmem [shape: bf16[8,144], index: 8, kind: input, shape index: {}]   ;;  %s7953_s9 = inlined_call_operand.vmem [shape: f32[8,1], index: 9, kind: input, shape index: {}]   ;;  %s7954_s10 = inlined_call_operand.vmem [shape: bf16[8,144], index: 10, kind: input, shape index: {}]   ;;  %s7955_s11 = inlined_call_operand.vmem [shape: f32[8,1], index: 11, kind: input, shape index: {}]   ;;  %s7956_s12 = inlined_call_operand.vmem [shape: bf16[8,16], index: 12, kind: input, shape index: {}]   ;;  %s7957_s13 = inlined_call_operand.vmem [shape: f32[8,1], index: 13, kind: input, shape index: {}]   ;;  %s7958_s14 = inlined_call_operand.vmem [shape: bf16[8,24], index: 14, kind: input, shape index: {}]   ;;  %s7959_s15 = inlined_call_operand.vmem [shape: bf16[8,8], index: 15, kind: input, shape index: {}]   ;;  %s7960_s16 = inlined_call_operand.vmem [shape: f32[8,1], index: 16, kind: input, shape index: {}]   ;;  %s7961_s17 = inlined_call_operand.vmem [shape: bf16[1,8], index: 17, kind: input, shape index: {}]   ;;  %s7962_s18 = inlined_call_operand.<no memory space> [shape: f32[1,1], index: 18, kind: input, shape index: {}]   ;;  %s7963_s19 = inlined_call_operand.vmem [shape: bf16[256,1280], index: 19, kind: input, shape index: {}]   ;;  %s7964_s20 = inlined_call_operand.vmem [shape: bf16[6,16], index: 20, kind: input, shape index: {}]   ;;  %s7965_s21 = inlined_call_operand.vmem [shape: f32[6,1], index: 21, kind: input, shape index: {}]   ;;  %s7966_s22 = inlined_call_operand.vmem [shape: f32[2,1,256], index: 22, kind: output, shape index: {0}]   ;;  %s7967_s23 = inlined_call_operand.vmem [shape: f32[2,6,1], index: 23, kind: output, shape index: {1}]  }
   0x1   :  { %8012 = sst [smem:[#allocation10_spill]] %s7944_s0  ;;  %v29_v0 = vstv %s7962_s18 }
   0x2   :  { %8013 = sst [smem:[#allocation11_spill]] %s7945_s1  ;;  %30 = vst [vmem:[#allocation2] sm:$0x1] %v29_v0 }
   0x3   :  { %8014 = sst [smem:[#allocation12_spill]] %s7946_s2 }
   0x4   :  { %8015 = sst [smem:[#allocation13_spill]] %s7947_s3 }
   0x5   :  { %8016 = sst [smem:[#allocation14_spill]] %s7948_s4 }
   0x6   :  { %8017 = sst [smem:[#allocation15_spill]] %s7949_s5 }
   0x7   :  { %8018 = sst [smem:[#allocation16_spill]] %s7950_s6 }
   0x8   :  { %8019 = sst [smem:[#allocation17_spill]] %s7951_s7 }
   0x9   :  { %8020 = sst [smem:[#allocation18_spill]] %s7952_s8 }
   0xa   :  { %8021 = sst [smem:[#allocation19_spill]] %s7953_s9 }
   0xb   :  { %8022 = sst [smem:[#allocation20_spill]] %s7954_s10 }
   0xc   :  { %8023 = sst [smem:[#allocation21_spill]] %s7955_s11 }
   0xd LB: > { %s4320_s25 = sadd.s32 4294967295, %s5626_s24   ;;  %p4324_p0 = scmp.ge.s32.totalorder %s5626_s24, 1  ;;  %s5626_s24 = sphi %s5772_s24, %s36_s24  }
   0xe   : > { %p642_p1 = scmp.lt.s32.totalorder %s5626_s24, 3 }
  0x10   : > { %p643_p2 = pnand %p4324_p0, %p642_p1 }
  0x12   : > { %646 = sbr.rel (%p643_p2) target bundleno = 3363 (0xd23), region = 108 }
  0x17   : > { %p709_p3 = scmp.lt.s32.totalorder %s4320_s25, 1  ;;  %s8024_s26 = sld [smem:[#allocation10_spill]]  ;;  %v5629_v13 = vmov 0.0   ;;  %vm794_vm0 = vcmask 908288   ;;  %vm784_vm1 = vcmask 916480   ;;  %vm834_vm2 = vcmask 1043456  }
  0x18   : > { %s7982_s6 = smov 111   ;;  %v750_v14 = vrot.slane %v5629_v13, 4  ;;  %s7980_s27 = smov 127   ;;  %vm759_vm3 = vcmask 1039360   ;;  %vm902_vm4 = vcmask 138240   ;;  %vm917_vm5 = vcmask 1041408  }
  0x19   : > { %s8091_s25 = smov (!%p709_p3, %s4320_s25), 1  ;;  %s7978_s7 = smov 112   ;;  %vm913_vm6 = vcmask 293888   ;;  %vm7994_vm7 = vcmask 777216   ;;  %vm1077_vm8 = vcmask 785408   ;;  %vm7990_vm9 = vcmask 900096  }
  0x1a   : > { %s5029_s18 = sshll.u32 %s8091_s25, 5  ;;  %s7976_s28 = smov 17   ;;  %vm8011_vm10 = vcmask 1031168   ;;  %vm8010_vm11 = vcmask 769024   ;;  %vm8009_vm12 = vcmask 130048   ;;  %vm1553_vm13 = vcmask 490496  }
  0x1b   : > { %s8028_s0 = sld [smem:[#allocation13_spill]]  ;;  %s7972_s4 = smov 95   ;;  %vm1787_vm14 = vcmask 982016   ;;  %vm1532_vm15 = vcmask 506880  }
  0x1c   : > { %s8029_s1 = sld [smem:[#allocation12_spill]]  ;;  %s7988_s30 = smov 96  }
  0x1d   : > { %s713_s2 = scalar_lea.vmem %s8024_s26, %s5029_s18  ;;  %s8007_s26 = smov 94  }
  0x1e   : > { %v5786_v1 = vld [vmem:[%s713_s2] sm:$0xff]  ;;  %v5789_v2 = vld [vmem:[%s713_s2 + $0x8] sm:$0xff]  ;;  %v5793_v6 = vld [vmem:[%s713_s2 + $0x10] sm:$0xff]  ;;  %s8030_s3 = sld [smem:[#allocation11_spill]]  ;;  %s7974_s18 = smov 110  }
  0x1f   : > { %732 = vst [vmem:[#allocation1] ss:$2 sm:$0xff] %v5786_v1  ;;  %v5797_v12 = vld [vmem:[%s713_s2 + $0x18] sm:$0xff]  ;;  %s7984_s5 = smov 126   ;;  %s5640_s2 = smov 56  }
  0x20   : > { %s5641_s29 = smov 120   ;;  %s8041_s9 = sld [smem:[#allocation19_spill]] }
  0x21   : > { %s8047_s11 = sld [smem:[#allocation21_spill]] }
  0x22   : > { %s8049_s8 = sld [smem:[#allocation18_spill]] }
  0x23   : > { %s8050_s10 = sld [smem:[#allocation20_spill]] }
  0x26   : > { %v733_v3 = vld.sshfl [vmem:[#allocation1] sm:$0xff pattern:$0x75316420]  ;;  %v734_v4 = vld.sshfl [vmem:[#allocation1 + $0x8] sm:$0xff pattern:$0x75316420] }
  0x27   : > { %v5225_v5 = vpack.i.bf16 %v734_v4, %v733_v3  ;;  %736 = vst [vmem:[#allocation1] ss:$2 sm:$0xff] %v5789_v2 }
  0x29   : > { %5226 = vrot.lane.b32.xlu0 %v5225_v5, %s7982_s6 }
  0x2e   : > { %v737_v7 = vld.sshfl [vmem:[#allocation1] sm:$0xff pattern:$0x75316420]  ;;  %v738_v8 = vld.sshfl [vmem:[#allocation1 + $0x8] sm:$0xff pattern:$0x75316420] }
  0x2f   : > { %v776_v9 = vrot.slane %v737_v7, 4  ;;  %v777_v10 = vrot.slane %v738_v8, 4  ;;  %740 = vst [vmem:[#allocation1] ss:$2 sm:$0xff] %v5793_v6 }
  0x31   : > { %v5230_v11 = vpack.i.bf16 %v777_v10, %v776_v9 }
  0x33   : > { %5231 = vrot.lane.b32.xlu1 %v5230_v11, %s7982_s6 }
  0x36   : > { %v741_v15 = vld.sshfl [vmem:[#allocation1] sm:$0xff pattern:$0x75316420]  ;;  %v742_v16 = vld.sshfl [vmem:[#allocation1 + $0x8] sm:$0xff pattern:$0x75316420] }
  0x37   : > { %v751_v17 = vrot.slane %v741_v15, 4  ;;  %744 = vst [vmem:[#allocation1] ss:$2 sm:$0xff] %v5797_v12  ;;  %v752_v18 = vrot.slane %v742_v16, 4 }
  0x39   : > { %v5240_v19 = vpack.i.bf16 %v751_v17, %v750_v14  ;;  %v5235_v20 = vpack.i.bf16 %v752_v18, %v751_v17  ;;  %v5255_v26 = vpack.i.bf16 0.0, %v752_v18 }
  0x3b   : > { %5241 = vrot.lane.b32.xlu0 %v5240_v19, %s7980_s27  ;;  %5236 = vrot.lane.b32.xlu2 %v5235_v20, %s7982_s6 }
  0x3e   : > { %v5803_v21 = vld.sshfl [vmem:[#allocation1] sm:$0xff pattern:$0x75316420]  ;;  %v5805_v22 = vld.sshfl [vmem:[#allocation1 + $0x8] sm:$0xff pattern:$0x75316420] }
  0x3f   : > { %v5250_v23 = vpack.i.bf16 %v5803_v21, %v5629_v13  ;;  %v5245_v24 = vpack.i.bf16 %v5805_v22, %v5803_v21  ;;  %v5260_v25 = vpack.i.bf16 %v750_v14, %v5805_v22 }
  0x41   : > { %5251 = vrot.lane.b32.xlu1 %v5250_v23, %s7978_s7 }
  0x43   : > { %5246 = vrot.lane.b32.xlu0 %v5245_v24, %s7982_s6  ;;  %5261 = vrot.lane.b32.xlu2 %v5260_v25, %s7978_s7 }
  0x49   : > { %5256 = vrot.lane.b32.xlu1 %v5255_v26, %s7980_s27 }
  0x4b   : > { %5271 = vrot.lane.b32.xlu0 %v5230_v11, %s7978_s7  ;;  %5266 = vrot.lane.b32.xlu2 %v5245_v24, %s7980_s27 }
  0x95   : > { %v5237_v28 = vpop.permute.xlu2 %5236 }
  0x96   : > { %v5239_v38 = vunpack.i.h.bf16 %v5237_v28  ;;  %v5238_v39 = vunpack.i.l.bf16 %v5237_v28 }
  0x98   : > { %v822_v52 = vsel %vm794_vm0, %v5238_v39, %v5239_v38 }
  0x9b   : > { %v5227_v27 = vpop.permute.xlu0 %5226 }
  0x9c   : > { %v5229_v40 = vunpack.i.h.bf16 %v5227_v27  ;;  %v5228_v46 = vunpack.i.l.bf16 %v5227_v27 }
  0x9d   : > { %v5820_v31 = vpop.permute.xlu2 %5261 }
  0x9e   : > { %8026 = vst [vmem:[#allocation4_spill] sm:$0xff] %v5820_v31  ;;  %v5263_v41 = vunpack.i.l.bf16 %v5820_v31  ;;  %v7991_v55 = vunpack.i.h.bf16 %v5820_v31  ;;  %v795_v59 = vsel %vm794_vm0, %v5228_v46, %v5229_v40 }
  0xa0   : > { %v846_v54 = vsel %vm834_vm2, %v5263_v41, %v5239_v38 }
  0xa5   : > { %v5232_v29 = vpop.permute.xlu1 %5231  ;;  %v5267_v50 = vpop.permute.xlu2 %5266 }
  0xa6   : > { %v5234_v42 = vunpack.i.h.bf16 %v5232_v29  ;;  %v5233_v47 = vunpack.i.l.bf16 %v5232_v29  ;;  %v5268_v62 = vunpack.i.l.bf16 %v5267_v50  ;;  %v5269_v3 = vunpack.i.h.bf16 %v5267_v50 }
  0xa8   : > { %v843_v53 = vsel %vm834_vm2, %v5229_v40, %v5234_v42  ;;  %v803_v60 = vsel %vm794_vm0, %v5233_v47, %v5234_v42  ;;  %v841_v7 = vsel %vm834_vm2, %v5228_v46, %v5233_v47  ;;  %v772_v20 = vsel %vm759_vm3, %v5268_v62, %v5269_v3 }
  0xa9   : > { %v852_v5 = vpack.c.bf16 %v846_v54, %v843_v53  ;;  %v842_v11 = vsel %vm834_vm2, %v795_v59, %v803_v60  ;;  %v5030_v54 = vld [vmem:[%s8029_s1] sm:$0xff] }
  0xad   : > { %v5818_v30 = vpop.permute.xlu0 %5241 }
  0xae   : > { %8025 = vst [vmem:[#allocation3_spill] sm:$0xff] %v5818_v30  ;;  %v5244_v8 = vunpack.i.h.bf16 %v5818_v30  ;;  %v7992_v9 = vunpack.i.l.bf16 %v5818_v30 }
  0xb0   : > { %v760_v24 = vsel %vm759_vm3, %v7992_v9, %v5244_v8 }
  0xb1   : > { %v835_v29 = vsel %vm834_vm2, 0.0, %v760_v24 }
  0xb3   : > { %v5252_v32 = vpop.permute.xlu1 %5251 }
  0xb4   : > { %v5254_v34 = vunpack.i.h.bf16 %v5252_v32  ;;  %v5822_v35 = vunpack.i.l.bf16 %v5252_v32 }
  0xb5   : > { %v5247_v33 = vpop.permute.xlu0 %5246 }
  0xb6   : > { %v5249_v36 = vunpack.i.h.bf16 %v5247_v33  ;;  %v5248_v37 = vunpack.i.l.bf16 %v5247_v33  ;;  %v813_v49 = vsel %vm784_vm1, %v5822_v35, %v5254_v34  ;;  %v814_v51 = vsel %vm784_vm1, %v5254_v34, %v5263_v41  ;;  %v858_v34 = vld [vmem:[%s8028_s0] sm:$0xff] }
  0xb7   : > { %v844_v58 = vsel %vm834_vm2, %v813_v49, %v5238_v39  ;;  %v845_v0 = vsel %vm834_vm2, %v814_v51, %v822_v52 }
  0xb8   : > { %v855_v43 = vpack.c.bf16 %v5249_v36, %v5249_v36  ;;  %v853_v44 = vpack.c.bf16 %v5248_v37, %v5248_v37  ;;  %v830_v45 = vsel %vm794_vm0, %v5248_v37, %v5249_v36  ;;  %v850_v10 = vpack.c.bf16 %v844_v58, %v841_v7  ;;  %v859_v36 = vld [vmem:[%s8028_s0 + $0x8] sm:$0xff] }
  0xb9   : > { %v854_v48 = vpack.c.bf16 %v830_v45, %v830_v45  ;;  %v851_v15 = vpack.c.bf16 %v845_v0, %v842_v11  ;;  %v5633_v37 = vmov 0  }
  0xba   : > { %900 = vrot.lane.b32.xlu0 %v855_v43, %s7976_s28  ;;  %896 = vrot.lane.b32.xlu1 %v853_v44, %s7976_s28 }
  0xbb   : > { %898 = vrot.lane.b32.xlu2 %v854_v48, %s7976_s28  ;;  %v5257_v56 = vpop.permute.xlu1 %5256  ;;  %5275 = vset.pattern.permute.xlu1 %v5633_v37 }
  0xbc   : > { %v5839_v61 = vunpack.i.h.bf16 %v5257_v56  ;;  %v5258_v14 = vunpack.i.l.bf16 %v5257_v56  ;;  %5276 = vset.pattern.permute.xlu2 %v5633_v37  ;;  %5357 = vset.pattern.permute.xlu0 %v5633_v37 }
  0xbd   : > { %v5272_v57 = vpop.permute.xlu0 %5271 }
  0xbe   : > { %8027 = vst [vmem:[#allocation5_spill] sm:$0xff] %v5839_v61  ;;  %v5273_v63 = vunpack.i.l.bf16 %v5272_v57  ;;  %v5274_v4 = vunpack.i.h.bf16 %v5272_v57  ;;  %v771_v16 = vsel %vm759_vm3, %v5839_v61, %v5268_v62  ;;  %v837_v18 = vsel %vm834_vm2, %v5805_v22, %v5258_v14  ;;  %v723_v57 = vld [vmem:[%s8030_s3] sm:$0x3]  ;;  %s8034_s3 = sld [smem:[#allocation15_spill]] }
  0xbf   : > { %v761_v26 = vsel %vm759_vm3, %v5244_v8, %v5258_v14  ;;  %v5895_v62 = vperm.slane %v723_v57, 0  ;;  %v5897_v0 = vperm.slane %v723_v57, 1 }
  0xc0   : > { %v785_v17 = vsel %vm784_vm1, %v7991_v55, %v5273_v63  ;;  %v840_v19 = vsel %vm834_vm2, %v5269_v3, %v5274_v4  ;;  %v786_v23 = vsel %vm784_vm1, %v5273_v63, %v5274_v4  ;;  %v836_v32 = vsel %vm834_vm2, %v5803_v21, %v761_v26 }
  0xc1   : > { %v838_v25 = vsel %vm834_vm2, %v771_v16, %v785_v17  ;;  %v849_v27 = vpack.c.bf16 %v840_v19, %v837_v18  ;;  %v839_v28 = vsel %vm834_vm2, %v772_v20, %v786_v23 }
  0xc2   : > { %894 = vrot.lane.b32.xlu0 %v852_v5, %s7976_s28  ;;  %890 = vrot.lane.b32.xlu1 %v850_v10, %s7976_s28  ;;  %v847_v22 = vpack.c.bf16 %v838_v25, %v835_v29  ;;  %v848_v33 = vpack.c.bf16 %v839_v28, %v836_v32 }
  0xc3   : > { %892 = vrot.lane.b32.xlu2 %v851_v15, %s7976_s28 }
  0xca   : > { %888 = vrot.lane.b32.xlu0 %v849_v27, %s7976_s28  ;;  %884 = vrot.lane.b32.xlu1 %v847_v22, %s7976_s28 }
  0xcb   : > { %886 = vrot.lane.b32.xlu2 %v848_v33, %s7976_s28 }
  0xd2   : > { %862 = vperm.xlu1 %5275, %v858_v34  }
  0xd3   : > { %867 = vperm.xlu2 %5276, %v859_v36  }
  0xdb   : > { %1113 = vrot.lane.b32.xlu2 %v5629_v13, %s8007_s26 }
 0x115   : > { %v899_v21 = vpop.permute.xlu2 %898 }
 0x11d   : > { %v893_v44 = vpop.permute.xlu2 %892 }
 0x125   : > { %v887_v49 = vpop.permute.xlu2 %886 }
 0x12c   : > { %v901_v38 = vpop.permute.xlu0 %900  ;;  %v897_v39 = vpop.permute.xlu1 %896 }
 0x12d   : > { %v907_v40 = vsel %vm902_vm4, %v897_v39, %v899_v21  ;;  %v908_v41 = vsel %vm902_vm4, %v899_v21, %v901_v38  ;;  %v868_v8 = vpop.permute.xlu2 %867 }
 0x12e   : > { %v919_v42 = vsel %vm917_vm5, %v907_v40, 0  ;;  %v922_v43 = vsel %vm917_vm5, %v908_v41, 0 }
 0x12f   : > { %929 = vmatpush.bf16.msra.mxu0 %v919_v42  ;;  %943 = vmatpush.bf16.msra.mxu1 %v922_v43 }
 0x134   : > { %v895_v45 = vpop.permute.xlu0 %894  ;;  %v891_v46 = vpop.permute.xlu1 %890 }
 0x135   : > { %v905_v47 = vsel %vm902_vm4, %v891_v46, %v893_v44  ;;  %v906_v48 = vsel %vm902_vm4, %v893_v44, %v895_v45  ;;  %v5949_v29 = vpop.permute.xlu2 %1113 }
 0x136   : > { %930 = vmatpush.bf16.msra.mxu0 %v905_v47  ;;  %944 = vmatpush.bf16.msra.mxu1 %v906_v48  ;;  %8031 = vst [vmem:[#allocation6_spill] sm:$0xff] %v5949_v29 }
 0x13c   : > { %v889_v50 = vpop.permute.xlu0 %888  ;;  %v885_v51 = vpop.permute.xlu1 %884 }
 0x13d   : > { %v903_v52 = vsel %vm902_vm4, %v885_v51, %v887_v49  ;;  %v904_v53 = vsel %vm902_vm4, %v887_v49, %v889_v50 }
 0x13e   : > { %931 = vmatpush.bf16.msra.mxu0 %v903_v52  ;;  %945 = vmatpush.bf16.msra.mxu1 %v904_v53 }
 0x141   : > { %4336 = vmatmul.msk.bf16.vlgmr.msra.gmra.mxu0 %vm913_vm6, %v5030_v54  ;;  %4337 = vmatmul.msk.bf16.vlgmr.msra.gmra.mxu1 %vm913_vm6, %v5030_v54 }
 0x144   : > { %v863_v56 = vpop.permute.xlu1 %862 }
 0x1be   : > { %v933_v58 = vpop.f32.mrf.mxu0  ;;  %v947_v59 = vpop.f32.mrf.mxu1 }
 0x1bf   : > { %v934_v60 = vadd.f32 %v933_v58, %v863_v56  ;;  %v948_v63 = vadd.f32 %v947_v59, %v863_v56 }
 0x1c1   : > { %v952_v3 = vmax.f32 %v934_v60, 0.0  ;;  %v953_v4 = vmax.f32 %v948_v63, 0.0 }
 0x1c3   : > { %v5900_v5 = vmul.f32 %v5895_v62, %v952_v3  ;;  %v5903_v7 = vmul.f32 %v5897_v0, %v953_v4 }
 0x1c5   : > { %v5302_v10 = vpack.i.bf16 %v5903_v7, %v5900_v5  ;;  %v5307_v27 = vpack.i.bf16 %v5900_v5, %v5629_v13 }
 0x1c6   : > { %v935_v11 = vpop.f32.mrf.mxu0  ;;  %v949_v14 = vpop.f32.mrf.mxu1 }
 0x1c7   : > { %v936_v15 = vadd.f32 %v935_v11, %v868_v8  ;;  %v950_v16 = vadd.f32 %v949_v14, %v868_v8  ;;  %5303 = vrot.lane.b32.xlu1 %v5302_v10, %s7978_s7  ;;  %5298 = vrot.lane.b32.xlu2 %v5302_v10, %s8007_s26 }
 0x1c8   : > { %5278 = vrot.lane.b32.xlu0 %v5302_v10, %s7972_s4 }
 0x1c9   : > { %v954_v17 = vmax.f32 %v936_v15, 0.0  ;;  %v955_v18 = vmax.f32 %v950_v16, 0.0 }
 0x1cb   : > { %v5911_v19 = vmul.f32 %v5895_v62, %v954_v17  ;;  %v5914_v20 = vmul.f32 %v5897_v0, %v955_v18 }
 0x1cd   : > { %v5317_v23 = vpack.i.bf16 %v5911_v19, %v5629_v13  ;;  %v1131_v24 = vpack.c.bf16 %v5911_v19, %v5900_v5  ;;  %v1132_v25 = vpack.c.bf16 %v5914_v20, %v5903_v7  ;;  %v5342_v26 = vpack.i.bf16 %v5914_v20, %v5911_v19  ;;  %v968_v5 = vld [vmem:[%s8034_s3 + $0x8] sm:$0xff] }
 0x1ce   : > { %v5347_v28 = vpack.i.bf16 %v5911_v19, %v5903_v7 }
 0x1cf   : > { %1096 = vrot.lane.b32.xlu2 %v5914_v20, %s7972_s4  ;;  %5318 = vrot.lane.b32.xlu1 %v5317_v23, %s7972_s4  ;;  %s8036_s4 = sld [smem:[#allocation14_spill]] }
 0x1d0   : > { %5283 = vrot.lane.b32.xlu0 %v5302_v10, %s7988_s30 }
 0x1d7   : > { %1075 = vrot.lane.b32.xlu2 %v5914_v20, %s7988_s30  ;;  %5323 = vrot.lane.b32.xlu1 %v5317_v23, %s7988_s30 }
 0x1d8   : > { %5288 = vrot.lane.b32.xlu0 %v5302_v10, %s7974_s18 }
 0x1df   : > { %1054 = vrot.lane.b32.xlu2 %v5914_v20, %s7974_s18  ;;  %5328 = vrot.lane.b32.xlu1 %v5317_v23, %s7974_s18  ;;  %s5645_s18 = smov 124  }
 0x1e0   : > { %5293 = vrot.lane.b32.xlu0 %v5302_v10, %s7982_s6 }
 0x1e7   : > { %5343 = vrot.lane.b32.xlu2 %v5342_v26, %s7978_s7  ;;  %5333 = vrot.lane.b32.xlu1 %v5342_v26, %s7982_s6  ;;  %s5643_s7 = smov 62   ;;  %s5646_s6 = smov 92  }
 0x1e8   : > { %5308 = vrot.lane.b32.xlu0 %v5307_v27, %s7984_s5 }
 0x1ef   : > { %999 = vrot.lane.b32.xlu2 %v5914_v20, %s7984_s5  ;;  %5348 = vrot.lane.b32.xlu1 %v5347_v28, %s7984_s5  ;;  %s7986_s5 = smov 68  }
 0x1f0   : > { %5313 = vrot.lane.b32.xlu0 %v5302_v10, %s7980_s27 }
 0x1f7   : > { %5353 = vrot.lane.b32.xlu1 %v5342_v26, %s7980_s27  ;;  %s5642_s27 = smov 60  }
 0x1f8   : > { %5338 = vrot.lane.b32.xlu0 %v5342_v26, %s8007_s26 }
 0x221   : > { %v5951_v22 = vpop.permute.xlu2 %5298 }
 0x229   : > { %v1097_v32 = vpop.permute.xlu2 %1096 }
 0x231   : > { %v5953_v33 = vpop.permute.xlu2 %1075 }
 0x239   : > { %v5955_v34 = vpop.permute.xlu1 %5303  ;;  %v5957_v36 = vpop.permute.xlu2 %1054 }
 0x23a   : > { %v5279_v37 = vpop.permute.xlu0 %5278  ;;  %v5306_v39 = vunpack.i.h.bf16 %v5955_v34 }
 0x23b   : > { %v5280_v40 = vunpack.i.l.bf16 %v5279_v37  ;;  %v5281_v11 = vunpack.i.h.bf16 %v5279_v37 }
 0x241   : > { %v5319_v21 = vpop.permute.xlu1 %5318  ;;  %v5959_v38 = vpop.permute.xlu2 %5343 }
 0x242   : > { %v5962_v41 = vpop.permute.xlu0 %5283  ;;  %v5321_v42 = vunpack.i.h.bf16 %v5319_v21  ;;  %v5346_v43 = vunpack.i.h.bf16 %v5959_v38  ;;  %v6000_v10 = vunpack.i.l.bf16 %v5319_v21 }
 0x243   : > { %v5285_v47 = vunpack.i.l.bf16 %v5962_v41  ;;  %v5286_v37 = vunpack.i.h.bf16 %v5962_v41 }
 0x244   : > { %v1151_v44 = vpack.c.bf16 %v5321_v42, %v5280_v40  ;;  %v1141_v45 = vpack.c.bf16 %v5346_v43, %v5306_v39  ;;  %8032 = vst [vmem:[#allocation7_spill] sm:$0xff] %v6000_v10  ;;  %v1100_v15 = vsel %vm7994_vm7, %v5281_v11, %v6000_v10  ;;  %v1102_v16 = vsel %vm7994_vm7, %v1097_v32, %v6000_v10 }
 0x245   : > { %v1153_v26 = vpack.c.bf16 %v1102_v16, %v1100_v15 }
 0x246   : > { %1245 = vrot.lane.b32.xlu0 %v1151_v44, %s7976_s28  ;;  %1225 = vrot.lane.b32.xlu1 %v1141_v45, %s7976_s28  ;;  %v1101_v45 = vsel %vm7994_vm7, %v5321_v42, %v1097_v32  ;;  %v5345_v32 = vunpack.i.l.bf16 %v5959_v38 }
 0x249   : > { %v5324_v46 = vpop.permute.xlu1 %5323  ;;  %v1000_v23 = vpop.permute.xlu2 %999 }
 0x24a   : > { %v5972_v48 = vpop.permute.xlu0 %5288  ;;  %v5326_v49 = vunpack.i.h.bf16 %v5324_v46  ;;  %v6013_v28 = vunpack.i.l.bf16 %v5324_v46  ;;  %v5300_v46 = vunpack.i.l.bf16 %v5951_v22 }
 0x24b   : > { %v5290_v52 = vunpack.i.l.bf16 %v5972_v48  ;;  %v5291_v42 = vunpack.i.h.bf16 %v5972_v48 }
 0x24c   : > { %v1148_v50 = vpack.c.bf16 %v5326_v49, %v5285_v47  ;;  %v1079_v21 = vsel %vm1077_vm8, %v5286_v37, %v6013_v28  ;;  %v1081_v44 = vsel %vm1077_vm8, %v5953_v33, %v6013_v28 }
 0x24e   : > { %1239 = vrot.lane.b32.xlu0 %v1148_v50, %s7976_s28 }
 0x251   : > { %v5975_v51 = vpop.permute.xlu1 %5328 }
 0x252   : > { %v5978_v53 = vpop.permute.xlu0 %5293  ;;  %v5331_v54 = vunpack.i.h.bf16 %v5975_v51  ;;  %v6030_v15 = vunpack.i.l.bf16 %v5975_v51 }
 0x253   : > { %v5296_v58 = vunpack.i.h.bf16 %v5978_v53  ;;  %v5295_v59 = vunpack.i.l.bf16 %v5978_v53 }
 0x254   : > { %v1145_v56 = vpack.c.bf16 %v5331_v54, %v5290_v52  ;;  %8033 = vst [vmem:[#allocation8_spill] sm:$0xff] %v6030_v15  ;;  %v1058_v51 = vsel %vm7990_vm9, %v5291_v42, %v6030_v15  ;;  %v1059_v38 = vsel %vm7990_vm9, %v5331_v54, %v5957_v36 }
 0x256   : > { %1233 = vrot.lane.b32.xlu0 %v1145_v56, %s7976_s28 }
 0x259   : > { %v5984_v57 = vpop.permute.xlu1 %5333 }
 0x25a   : > { %v5988_v60 = vpop.permute.xlu0 %5308  ;;  %v5336_v63 = vunpack.i.h.bf16 %v5984_v57  ;;  %v5335_v3 = vunpack.i.l.bf16 %v5984_v57 }
 0x25c   : > { %v1144_v4 = vpack.c.bf16 %v5336_v63, %v5296_v58  ;;  %v1142_v8 = vpack.c.bf16 %v5335_v3, %v5295_v59 }
 0x25e   : > { %1231 = vrot.lane.b32.xlu2 %v1144_v4, %s7976_s28  ;;  %1227 = vrot.lane.b32.xlu0 %v1142_v8, %s7976_s28  ;;  %v1099_v4 = vsel %vm7994_vm7, %v5280_v40, %v5281_v11  ;;  %v1150_v8 = vpack.c.bf16 %v1081_v44, %v1079_v21  ;;  %v5305_v40 = vunpack.i.l.bf16 %v5955_v34  ;;  %v1060_v11 = vsel %vm7990_vm9, %v5957_v36, %v6030_v15 }
 0x25f   : > { %v1152_v41 = vpack.c.bf16 %v1101_v45, %v1099_v4  ;;  %v1078_v21 = vsel %vm1077_vm8, %v5285_v47, %v5286_v37  ;;  %v1147_v44 = vpack.c.bf16 %v1060_v11, %v1058_v51  ;;  %vm1490_vm7 = vcmask 752640  }
 0x260   : > { %v1021_v4 = vsel %vm784_vm1, %v5305_v40, %v5306_v39 }
 0x261   : > { %v6004_v14 = vpop.permute.xlu1 %5348 }
 0x262   : > { %v6010_v17 = vpop.permute.xlu0 %5313  ;;  %v5350_v18 = vunpack.i.l.bf16 %v6004_v14 }
 0x263   : > { %v5316_v48 = vunpack.i.h.bf16 %v6010_v17 }
 0x264   : > { %v1138_v27 = vpack.c.bf16 %v1000_v23, %v5350_v18 }
 0x266   : > { %1249 = vrot.lane.b32.xlu2 %v1153_v26, %s7976_s28  ;;  %1219 = vrot.lane.b32.xlu1 %v1138_v27, %s7976_s28  ;;  %v1080_v26 = vsel %vm1077_vm8, %v5326_v49, %v5953_v33  ;;  %v1023_v27 = vsel %vm784_vm1, %v5345_v32, %v5346_v43  ;;  %v5311_v33 = vunpack.i.h.bf16 %v5988_v60  ;;  %v1022_v43 = vsel %vm784_vm1, %v5822_v35, %v5345_v32 }
 0x267   : > { %v1149_v45 = vpack.c.bf16 %v1080_v26, %v1078_v21  ;;  %v1057_v49 = vsel %vm7990_vm9, %v5290_v52, %v5291_v42  ;;  %v5315_v52 = vunpack.i.l.bf16 %v6010_v17  ;;  %v5301_v26 = vunpack.i.h.bf16 %v5951_v22 }
 0x268   : > { %v1003_v34 = vsel %vm8011_vm10, %v5311_v33, %v5350_v18  ;;  %v1146_v37 = vpack.c.bf16 %v1059_v38, %v1057_v49  ;;  %v6075_v18 = vunpack.i.l.bf16 %v5988_v60  ;;  %v1038_v60 = vsel %vm794_vm0, %v5295_v59, %v5296_v58 }
 0x269   : > { %v5354_v47 = vpop.permute.xlu1 %5353  ;;  %v982_v57 = vsel %vm759_vm3, %v5315_v52, %v5316_v48  ;;  %v981_v59 = vsel %vm759_vm3, %v5839_v61, %v5315_v52  ;;  %vm1511_vm9 = vcmask 523264  }
 0x26a   : > { %v6024_v50 = vpop.permute.xlu0 %5338  ;;  %v5356_v36 = vunpack.i.h.bf16 %v5354_v47  ;;  %v5355_v54 = vunpack.i.l.bf16 %v5354_v47  ;;  %v1002_v17 = vsel %vm8011_vm10, %v6075_v18, %v5311_v33 }
 0x26b   : > { %v5340_v56 = vunpack.i.l.bf16 %v6024_v50 }
 0x26c   : > { %v984_v42 = vsel %vm759_vm3, %v5355_v54, %v5356_v36  ;;  %v983_v53 = vsel %vm759_vm3, %v5839_v61, %v5355_v54 }
 0x26d   : > { %v1154_v16 = vpack.c.bf16 %v5340_v56, %v5300_v46  ;;  %v1133_v21 = vpack.c.bf16 %v983_v53, %v981_v59 }
 0x26e   : > { %1243 = vrot.lane.b32.xlu2 %v1150_v8, %s7976_s28  ;;  %1247 = vrot.lane.b32.xlu1 %v1152_v41, %s7976_s28  ;;  %v1140_v8 = vpack.c.bf16 %v1023_v27, %v1021_v4  ;;  %v5351_v41 = vunpack.i.h.bf16 %v6004_v14  ;;  %v1020_v14 = vsel %vm784_vm1, %v5822_v35, %v5305_v40  ;;  %v1120_v27 = vsel %vm8010_vm11, %v5300_v46, %v5301_v26 }
 0x26f   : > { %1251 = vrot.lane.b32.xlu0 %v1154_v16, %s7976_s28  ;;  %v1139_v16 = vpack.c.bf16 %v1022_v43, %v1020_v14  ;;  %v1121_v46 = vsel %vm8010_vm11, %v5301_v26, %v5949_v29 }
 0x270   : > { %v1005_v39 = vsel %vm8011_vm10, %v5351_v41, %v1000_v23  ;;  %v1039_v23 = vsel %vm794_vm0, %v5335_v3, %v5336_v63  ;;  %v1004_v32 = vsel %vm8011_vm10, %v6075_v18, %v5351_v41  ;;  %v5341_v63 = vunpack.i.h.bf16 %v6024_v50 }
 0x271   : > { %v1137_v51 = vpack.c.bf16 %v1005_v39, %v1003_v34  ;;  %v1143_v40 = vpack.c.bf16 %v1039_v23, %v1038_v60  ;;  %v1136_v11 = vpack.c.bf16 %v1004_v32, %v1002_v17  ;;  %v1134_v3 = vpack.c.bf16 %v984_v42, %v982_v57  ;;  %v5031_v17 = vld [vmem:[%s8036_s4 + $0x4] sm:$0xf] }
 0x272   : > { %v1122_v58 = vsel %vm8010_vm11, %v5340_v56, %v5341_v63  ;;  %v1135_v50 = vpack.c.bf16 %v5356_v36, %v5316_v48  ;;  %v7993_v56 = vmov 0.0|0.0   ;;  %v1123_v22 = vsel %vm8010_vm11, %v5341_v63, %v5949_v29 }
 0x276   : > { %1237 = vrot.lane.b32.xlu2 %v1147_v44, %s7976_s28  ;;  %1241 = vrot.lane.b32.xlu1 %v1149_v45, %s7976_s28  ;;  %v1155_v44 = vpack.c.bf16 %v1122_v58, %v1120_v27  ;;  %v1156_v45 = vpack.c.bf16 %v1123_v22, %v1121_v46  ;;  %v5032_v22 = vld [vmem:[%s8036_s4 + $0x4] sm:$0xf0] }
 0x277   : > { %1223 = vrot.lane.b32.xlu0 %v1140_v8, %s7976_s28 }
 0x27e   : > { %1235 = vrot.lane.b32.xlu1 %v1146_v37, %s7976_s28  ;;  %1221 = vrot.lane.b32.xlu2 %v1139_v16, %s7976_s28 }
 0x27f   : > { %1217 = vrot.lane.b32.xlu0 %v1137_v51, %s7976_s28 }
 0x286   : > { %1229 = vrot.lane.b32.xlu1 %v1143_v40, %s7976_s28  ;;  %1215 = vrot.lane.b32.xlu2 %v1136_v11, %s7976_s28  ;;  %v4342_v40 = vld [vmem:[%s8036_s4 + $0x8] sm:$0xf0]  ;;  %v967_v11 = vld [vmem:[%s8034_s3] sm:$0xff] }
 0x287   : > { %1211 = vrot.lane.b32.xlu0 %v1134_v3, %s7976_s28  ;;  %v4345_v58 = vor.u32 %v5031_v17, %v4342_v40 }
 0x28e   : > { %1209 = vrot.lane.b32.xlu2 %v1133_v21, %s7976_s28  ;;  %1253 = vrot.lane.b32.xlu1 %v1155_v44, %s7976_s28 }
 0x28f   : > { %1205 = vrot.lane.b32.xlu0 %v1131_v24, %s7976_s28 }
 0x296   : > { %1203 = vrot.lane.b32.xlu2 %v7993_v56, %s7976_s28  ;;  %1213 = vrot.lane.b32.xlu1 %v1135_v50, %s7976_s28  ;;  %v4340_v50 = vld [vmem:[%s8036_s4] sm:$0xf] }
 0x297   : > { %1159 = vperm.xlu0 %5357, %v967_v11  }
 0x29e   : > { %1255 = vrot.lane.b32.xlu2 %v1156_v45, %s7976_s28  ;;  %1207 = vrot.lane.b32.xlu1 %v1132_v25, %s7976_s28  ;;  %v4341_v45 = vor.u32 %v5032_v22, %v4340_v50  ;;  %s5644_s28 = smov 64  }
 0x2a6   : > { %1164 = vperm.xlu1 %5275, %v968_v5  }
 0x2ae   : > { %1810 = vrot.lane.b32.xlu1 %v5629_v13, %s5640_s2 }
 0x2b8   : > { %v6132_v19 = vpop.permute.xlu2 %1231  ;;  %v1246_v24 = vpop.permute.xlu0 %1245 }
 0x2b9   : > { %v1226_v38 = vpop.permute.xlu1 %1225 }
 0x2c0   : > { %v1250_v4 = vpop.permute.xlu2 %1249  ;;  %v1240_v8 = vpop.permute.xlu0 %1239 }
 0x2c8   : > { %v1244_v41 = vpop.permute.xlu2 %1243  ;;  %v1234_v33 = vpop.permute.xlu0 %1233 }
 0x2d0   : > { %v1238_v43 = vpop.permute.xlu2 %1237  ;;  %v1228_v47 = vpop.permute.xlu0 %1227 }
 0x2d8   : > { %v1220_v34 = vpop.permute.xlu1 %1219  ;;  %v1222_v39 = vpop.permute.xlu2 %1221 }
 0x2e0   : > { %v1248_v49 = vpop.permute.xlu1 %1247  ;;  %v1216_v25 = vpop.permute.xlu2 %1215 }
 0x2e1   : > { %v1252_v7 = vpop.permute.xlu0 %1251  ;;  %v1271_v20 = vsel %vm902_vm4, %v1246_v24, %v1248_v49  ;;  %v1272_v59 = vsel %vm902_vm4, %v1248_v49, %v1250_v4 }
 0x2e2   : > { %1297 = vmatpush.bf16.msra.mxu2 %v1271_v20 }
 0x2e8   : > { %v1242_v14 = vpop.permute.xlu1 %1241  ;;  %v1210_v51 = vpop.permute.xlu2 %1209 }
 0x2e9   : > { %v1224_v37 = vpop.permute.xlu0 %1223  ;;  %v1269_v16 = vsel %vm902_vm4, %v1240_v8, %v1242_v14  ;;  %v1270_v44 = vsel %vm902_vm4, %v1242_v14, %v1244_v41 }
 0x2ea   : > { %1298 = vmatpush.bf16.msra.mxu2 %v1269_v16  ;;  %v1263_v60 = vsel %vm902_vm4, %v1222_v39, %v1224_v37  ;;  %v1264_v8 = vsel %vm902_vm4, %v1224_v37, %v1226_v38 }
 0x2f0   : > { %v1236_v36 = vpop.permute.xlu1 %1235  ;;  %v6137_v52 = vpop.permute.xlu2 %1203 }
 0x2f1   : > { %v1267_v54 = vsel %vm902_vm4, %v1234_v33, %v1236_v36  ;;  %v1218_v48 = vpop.permute.xlu0 %1217  ;;  %8035 = vst [vmem:[#allocation9_spill] sm:$0xff] %v6137_v52  ;;  %v1268_v5 = vsel %vm902_vm4, %v1236_v36, %v1238_v43 }
 0x2f2   : > { %1299 = vmatpush.bf16.msra.mxu2 %v1267_v54  ;;  %v1261_v3 = vsel %vm902_vm4, %v1216_v25, %v1218_v48  ;;  %v1262_v41 = vsel %vm902_vm4, %v1218_v48, %v1220_v34 }
 0x2f8   : > { %v1230_v23 = vpop.permute.xlu1 %1229  ;;  %v1256_v57 = vpop.permute.xlu2 %1255 }
 0x2f9   : > { %v1265_v32 = vsel %vm902_vm4, %v1228_v47, %v1230_v23  ;;  %v1212_v42 = vpop.permute.xlu0 %1211  ;;  %v1266_v24 = vsel %vm902_vm4, %v1230_v23, %v6132_v19 }
 0x2fa   : > { %1300 = vmatpush.bf16.msra.mxu2 %v1265_v32  ;;  %v1259_v27 = vsel %vm902_vm4, %v1210_v51, %v1212_v42 }
 0x2fe   : > { %1301 = vmatpush.bf16.msra.mxu2 %v1263_v60 }
 0x300   : > { %v1254_v63 = vpop.permute.xlu1 %1253 }
 0x301   : > { %v1273_v26 = vsel %vm902_vm4, %v1252_v7, %v1254_v63  ;;  %v1274_v53 = vsel %vm902_vm4, %v1254_v63, %v1256_v57  ;;  %v1206_v21 = vpop.permute.xlu0 %1205 }
 0x302   : > { %1302 = vmatpush.bf16.msra.mxu2 %v1261_v3  ;;  %1318 = vmatpush.bf16.msra.mxu3 %v1273_v26  ;;  %v1257_v46 = vsel %vm902_vm4, %v6137_v52, %v1206_v21 }
 0x303   : > { %1346 = vmatpush.bf16.msrb.mxu0 %v1274_v53 }
 0x305   : > { %4346 = vmatmul.msk.bf16.vlgmr.msra.gmra.mxu3 %vm8009_vm12, %v4345_v58 }
 0x306   : > { %1325 = vmatpush.bf16.msrb.mxu3 %v1272_v59  ;;  %1303 = vmatpush.bf16.msra.mxu2 %v1259_v27 }
 0x307   : > { %4347 = vmatmul.msk.bf16.vlgmr.msrb.gmra.mxu0 %vm8009_vm12, %v4345_v58 }
 0x308   : > { %v1214_v4 = vpop.permute.xlu1 %1213 }
 0x309   : > { %v1260_v33 = vsel %vm902_vm4, %v1212_v42, %v1214_v4  ;;  %v1160_v19 = vpop.permute.xlu0 %1159 }
 0x30a   : > { %1326 = vmatpush.bf16.msrb.mxu3 %v1270_v44  ;;  %1304 = vmatpush.bf16.msra.mxu2 %v1257_v46 }
 0x30d   : > { %1305 = vmatmul.bf16.vlgmr.msra.gmra.mxu2 %v4341_v45 }
 0x30e   : > { %1327 = vmatpush.bf16.msrb.mxu3 %v1268_v5 }
 0x310   : > { %v1208_v39 = vpop.permute.xlu1 %1207 }
 0x311   : > { %v1258_v43 = vsel %vm902_vm4, %v1206_v21, %v1208_v39 }
 0x312   : > { %1328 = vmatpush.bf16.msrb.mxu3 %v1266_v24 }
 0x316   : > { %1329 = vmatpush.bf16.msrb.mxu3 %v1264_v8 }
 0x318   : > { %v1165_v25 = vpop.permute.xlu1 %1164 }
 0x31a   : > { %1330 = vmatpush.bf16.msrb.mxu3 %v1262_v41 }
 0x31e   : > { %1331 = vmatpush.bf16.msrb.mxu3 %v1260_v33 }
 0x320   : > { %v6229_v39 = vpop.permute.xlu1 %1810 }
 0x322   : > { %1332 = vmatpush.bf16.msrb.mxu3 %v1258_v43 }
 0x325   : > { %1333 = vmatmul.bf16.vlgmr.msrb.gmra.mxu3 %v4341_v45 }
 0x384   : > { %v1348_v42 = vpop.f32.mrf.mxu0 }
 0x388   : > { %v1320_v47 = vpop.f32.mrf.mxu3 }
 0x390   : > { %v1306_v49 = vpop.f32.mrf.mxu2  ;;  %v1322_v51 = vpop.f32.mrf.mxu3 }
 0x391   : > { %v1307_v38 = vadd.f32 %v1306_v49, %v1160_v19 }
 0x393   : > { %v1321_v7 = vadd.f32 %v1320_v47, %v1307_v38 }
 0x395   : > { %v1353_v20 = vmax.f32 %v1321_v7, 0.0 }
 0x397   : > { %v1357_v34 = vmul.f32 %v1353_v20, %v5895_v62 }
 0x398   : > { %v1308_v14 = vpop.f32.mrf.mxu2 }
 0x399   : > { %v1309_v37 = vadd.f32 %v1308_v14, %v1165_v25  ;;  %v5363_v16 = vpack.i.bf16 %v1357_v34, %v5629_v13 }
 0x39b   : > { %v1323_v36 = vadd.f32 %v1322_v51, %v1309_v37  ;;  %5364 = vrot.lane.b32.xlu0 %v5363_v16, %s5641_s29 }
 0x39d   : > { %v1355_v54 = vmax.f32 %v1323_v36, 0.0 }
 0x39f   : > { %v1359_v48 = vmul.f32 %v1355_v54, %v5895_v62 }
 0x3a1   : > { %v5408_v23 = vpack.i.bf16 %v1359_v48, %v5629_v13  ;;  %v6180_v32 = vpack.c.bf16 %v1359_v48, %v1357_v34  ;;  %v1350_v13 = vpop.f32.mrf.mxu0 }
 0x3a3   : > { %5409 = vrot.lane.b32.xlu1 %v5408_v23, %s5642_s27  ;;  %1380 = vmatpush.bf16.msrb.mxu1 %v6180_v32 }
 0x3a8   : > { %v1334_v60 = vpop.f32.mrf.mxu3 }
 0x3a9   : > { %v1335_v17 = vadd.f32 %v1334_v60, %v1160_v19 }
 0x3ab   : > { %v1349_v40 = vadd.f32 %v1348_v42, %v1335_v17 }
 0x3ad   : > { %v1354_v11 = vmax.f32 %v1349_v40, 0.0 }
 0x3af   : > { %v1358_v57 = vmul.f32 %v1354_v11, %v5897_v0 }
 0x3b0   : > { %v1336_v63 = vpop.f32.mrf.mxu3 }
 0x3b1   : > { %v1337_v3 = vadd.f32 %v1336_v63, %v1165_v25  ;;  %v5368_v26 = vpack.i.bf16 %v1358_v57, %v1357_v34  ;;  %v6185_v53 = vpack.i.bf16 %v1359_v48, %v1358_v57  ;;  %v6190_v59 = vadd.f32 %v1358_v57, %v1357_v34 }
 0x3b3   : > { %v1351_v58 = vadd.f32 %v1350_v13, %v1337_v3  ;;  %5369 = vrot.lane.b32.xlu0 %v5368_v26, %s5643_s7  ;;  %5359 = vrot.lane.b32.xlu2 %v5368_v26, %s5642_s27 }
 0x3b4   : > { %5414 = vrot.lane.b32.xlu1 %v6185_v53, %s5641_s29 }
 0x3b5   : > { %v1356_v27 = vmax.f32 %v1351_v58, 0.0 }
 0x3b7   : > { %v1360_v21 = vmul.f32 %v1356_v27, %v5897_v0 }
 0x3b9   : > { %v6193_v44 = vpack.c.bf16 %v1360_v21, %v1358_v57  ;;  %v6201_v50 = vpack.i.bf16 %v1360_v21, %v1359_v48  ;;  %v2015_v22 = vadd.f32 %v1360_v21, %v1359_v48 }
 0x3bb   : > { %5374 = vrot.lane.b32.xlu0 %v5368_v26, %s5644_s28  ;;  %5389 = vrot.lane.b32.xlu2 %v5363_v16, %s5645_s18 }
 0x3bc   : > { %1393 = vmatpush.bf16.msra.mxu0 %v6193_v44  ;;  %5419 = vrot.lane.b32.xlu1 %v5408_v23, %s5643_s7 }
 0x3c3   : > { %5379 = vrot.lane.b32.xlu0 %v5368_v26, %s5646_s6  ;;  %1874 = vrot.lane.b32.xlu2 %v7993_v56, %s7986_s5  ;;  %s8037_s5 = smov 126  }
 0x3c4   : > { %5424 = vrot.lane.b32.xlu1 %v5408_v23, %s5644_s28 }
 0x3cb   : > { %5384 = vrot.lane.b32.xlu0 %v5368_v26, %s8007_s26  ;;  %5394 = vrot.lane.b32.xlu2 %v5368_v26, %s7988_s30  ;;  %s8038_s30 = smov 68  }
 0x3cc   : > { %5429 = vrot.lane.b32.xlu1 %v5408_v23, %s5646_s6 }
 0x3d3   : > { %5404 = vrot.lane.b32.xlu2 %v5368_v26, %s5640_s2 }
 0x3d4   : > { %5434 = vrot.lane.b32.xlu1 %v6201_v50, %s8007_s26 }
 0x3db   : > { %1551 = vrot.lane.b32.xlu2 %v1360_v21, %s5642_s27  ;;  %s8043_s27 = sld [smem:[#allocation16_spill]] }
 0x3dc   : > { %1433 = vrot.lane.b32.xlu1 %v1360_v21, %s5645_s18 }
 0x3e3   : > { %1785 = vrot.lane.b32.xlu2 %v1360_v21, %s5641_s29  ;;  %s8039_s29 = smov 96  }
 0x3e4   : > { %5449 = vrot.lane.b32.xlu1 %v6201_v50, %s8037_s5 }
 0x3eb   : > { %1530 = vrot.lane.b32.xlu2 %v1360_v21, %s5643_s7  ;;  %s8057_s7 = smov 112  }
 0x3f3   : > { %1509 = vrot.lane.b32.xlu2 %v1360_v21, %s5644_s28  ;;  %s8058_s28 = smov 17  }
 0x3fb   : > { %1488 = vrot.lane.b32.xlu2 %v1360_v21, %s5646_s6  ;;  %s5648_s6 = smov 34  }
 0x403   : > { %1876 = vrot.lane.b32.xlu2 %v6180_v32, %s8038_s30 }
 0x40d   : > { %v6213_v46 = vpop.permute.xlu2 %5359  ;;  %v5365_v24 = vpop.permute.xlu0 %5364 }
 0x40e   : > { %v6216_v45 = vunpack.i.h.bf16 %v6213_v46  ;;  %v7995_v5 = vunpack.i.l.bf16 %v6213_v46  ;;  %2016 = vadd.xlane.f32.xlu1 %v2015_v22  ;;  %v5367_v8 = vunpack.i.h.bf16 %v5365_v24  ;;  %v6223_v41 = vunpack.i.l.bf16 %v5365_v24 }
 0x410   : > { %v1554_v4 = vsel %vm1553_vm13, %v7995_v5, %v6216_v45  ;;  %v6227_v33 = vsel %vm1787_vm14, %v6223_v41, %v5367_v8 }
 0x415   : > { %v6231_v43 = vpop.permute.xlu2 %5389  ;;  %v6241_v38 = vpop.permute.xlu1 %5409 }
 0x416   : > { %v6234_v19 = vunpack.i.l.bf16 %v6231_v43  ;;  %v5412_v58 = vunpack.i.h.bf16 %v6241_v38 }
 0x418   : > { %v1847_v47 = vpack.c.bf16 %v6234_v19, %v6234_v19 }
 0x41a   : > { %1912 = vrot.lane.b32.xlu0 %v1847_v47, %s8038_s30 }
 0x41d   : > { %v6239_v49 = vpop.permute.xlu2 %1874 }
 0x422   : > { %5399 = vrot.lane.b32.xlu0 %v5368_v26, %s8037_s5 }
 0x425   : > { %v5370_v7 = vpop.permute.xlu0 %5369  ;;  %v6244_v20 = vpop.permute.xlu2 %5394 }
 0x426   : > { %v5372_v34 = vunpack.i.h.bf16 %v5370_v7  ;;  %v5371_v25 = vunpack.i.l.bf16 %v5370_v7  ;;  %v5415_v14 = vpop.permute.xlu1 %5414 }
 0x427   : > { %v5417_v37 = vunpack.i.h.bf16 %v5415_v14  ;;  %v6246_v16 = vunpack.i.l.bf16 %v5415_v14  ;;  %1878 = vrot.lane.b32.xlu1 %v6193_v44, %s8038_s30 }
 0x428   : > { %v6251_v51 = vsel %vm1532_vm15, %v5371_v25, %v5372_v34 }
 0x429   : > { %v6256_v36 = vsel %vm1787_vm14, %v6246_v16, %v6223_v41  ;;  %v6260_v54 = vsel %vm1787_vm14, %v5367_v8, %v6246_v16  ;;  %v6264_v48 = vsel %vm1787_vm14, %v6223_v41, %v5417_v37 }
 0x42d   : > { %v5375_v42 = vpop.permute.xlu0 %5374  ;;  %v6268_v60 = vpop.permute.xlu2 %5404 }
 0x42e   : > { %v6270_v17 = vunpack.i.h.bf16 %v5375_v42  ;;  %v5376_v40 = vunpack.i.l.bf16 %v5375_v42  ;;  %v5420_v11 = vpop.permute.xlu1 %5419 }
 0x42f   : > { %v5422_v57 = vunpack.i.h.bf16 %v5420_v11  ;;  %v5421_v63 = vunpack.i.l.bf16 %v5420_v11 }
 0x430   : > { %v1512_v3 = vsel %vm1511_vm9, %v5376_v40, %v6270_v17 }
 0x431   : > { %v1582_v26 = vpack.c.bf16 %v5422_v57, %v5371_v25  ;;  %v6275_v13 = vsel %vm1532_vm15, %v5372_v34, %v5421_v63 }
 0x433   : > { %1667 = vrot.lane.b32.xlu2 %v1582_v26, %s5648_s6 }
 0x435   : > { %v6279_v27 = vpop.permute.xlu0 %5379  ;;  %v6281_v21 = vpop.permute.xlu2 %1551 }
 0x436   : > { %v5425_v22 = vpop.permute.xlu1 %5424  ;;  %v1556_v24 = vsel %vm1553_vm13, %v5412_v58, %v6281_v21  ;;  %v5382_v56 = vunpack.i.h.bf16 %v6279_v27 }
 0x437   : > { %v5427_v8 = vunpack.i.h.bf16 %v5425_v22  ;;  %v5426_v47 = vunpack.i.l.bf16 %v5425_v22  ;;  %v6285_v7 = vpack.c.bf16 %v1556_v24, %v1554_v4 }
 0x439   : > { %v1579_v25 = vpack.c.bf16 %v5427_v8, %v5376_v40  ;;  %v6289_v34 = vsel %vm1511_vm9, %v6270_v17, %v5426_v47  ;;  %v6292_v14 = vsel %vm1511_vm9, %v5426_v47, %v5376_v40  ;;  %v6295_v42 = vsel %vm1511_vm9, %v5426_v47, %v5427_v8 }
 0x43b   : > { %1661 = vrot.lane.b32.xlu2 %v1579_v25, %s5648_s6 }
 0x43d   : > { %v5385_v26 = vpop.permute.xlu0 %5384  ;;  %v6300_v22 = vpop.permute.xlu2 %1785 }
 0x43e   : > { %v5387_v4 = vunpack.i.h.bf16 %v5385_v26  ;;  %v5386_v24 = vunpack.i.l.bf16 %v5385_v26  ;;  %v1791_v55 = vsel %vm1787_vm14, %v5417_v37, %v6300_v22  ;;  %v1833_v40 = vsel %vm1787_vm14, %v6300_v22, %v6223_v41  ;;  %v5430_v9 = vpop.permute.xlu1 %5429 }
 0x43f   : > { %v5431_v11 = vunpack.i.l.bf16 %v5430_v9  ;;  %v1848_v25 = vpack.c.bf16 %v1833_v40, %v6256_v36  ;;  %v1838_v5 = vpack.c.bf16 %v1791_v55, %v6260_v54  ;;  %vm1918_vm14 = vcmask 556032  }
 0x440   : > { %v1472_v26 = vsel %vm8010_vm11, %v5386_v24, %v5387_v4 }
 0x441   : > { %v1492_v37 = vsel %vm1490_vm7, %v5382_v56, %v5431_v11 }
 0x445   : > { %v1531_v52 = vpop.permute.xlu2 %1530 }
 0x446   : > { %v6315_v29 = vsel %vm1532_vm15, %v5422_v57, %v1531_v52  ;;  %v1536_v15 = vsel %vm1532_vm15, %v1531_v52, %v5421_v63  ;;  %v5435_v10 = vpop.permute.xlu1 %5434  ;;  %v5432_v57 = vunpack.i.h.bf16 %v5430_v9  ;;  %vm2047_vm15 = vcmask 64512  }
 0x447   : > { %v1583_v23 = vpack.c.bf16 %v6315_v29, %v6251_v51  ;;  %v1584_v61 = vpack.c.bf16 %v1536_v15, %v6275_v13  ;;  %v5437_v36 = vunpack.i.h.bf16 %v5435_v10  ;;  %v5436_v40 = vunpack.i.l.bf16 %v5435_v10  ;;  %v1363_v51 = vld [vmem:[%s8043_s27] sm:$0xf]  ;;  %s8056_s27 = smov 127  }
 0x448   : > { %v5381_v15 = vunpack.i.l.bf16 %v6279_v27  ;;  %v8042_v29 = vpack.c.bf16 %v6295_v42, %v6292_v14  ;;  %4348 = vmatmul.msk.bf16.vlgmr.msrb.gmra.mxu1 %vm8009_vm12, %v1363_v51  ;;  %4349 = vmatmul.msk.bf16.vlgmr.msra.gmra.mxu0 %vm8009_vm12, %v1363_v51  ;;  %v8045_v14 = vmov 0.0|0.0   ;;  %v8046_v42 = vpack.c.bf16 %v6300_v22, %v6246_v16 }
 0x449   : > { %v1575_v31 = vpack.c.bf16 %v5437_v36, %v5387_v4  ;;  %v1473_v55 = vsel %vm8010_vm11, %v5436_v40, %v5437_v36 }
 0x44a   : > { %v1574_v54 = vpack.c.bf16 %v1473_v55, %v1472_v26  ;;  %v1576_v9 = vpack.c.bf16 %v5432_v57, %v5381_v15  ;;  %v1573_v26 = vpack.c.bf16 %v5436_v40, %v5386_v24 }
 0x44b   : > { %1653 = vrot.lane.b32.xlu2 %v1575_v31, %s5648_s6 }
 0x44c   : > { %2013 = vadd.xlane.f32.xlu0 %v6190_v59 }
 0x44d   : > { %v6324_v30 = vpop.permute.xlu2 %1509 }
 0x44e   : > { %v1514_v52 = vsel %vm1511_vm9, %v5427_v8, %v6324_v30  ;;  %v6330_v63 = vsel %vm1511_vm9, %v6324_v30, %v5426_v47  ;;  %v1841_v10 = vpack.c.bf16 %v6324_v30, %v6270_v17  ;;  %v5411_v47 = vunpack.i.l.bf16 %v6241_v38  ;;  %v1402_v30 = vld [vmem:[%s8041_s9] sm:$0xff]  ;;  %s4327_s9 = sshll.u32 %s8091_s25, 1 }
 0x44f   : > { %v6335_v13 = vpack.c.bf16 %v1514_v52, %v1512_v3  ;;  %v1581_v31 = vpack.c.bf16 %v6330_v63, %v6289_v34  ;;  %v8040_v3 = vunpack.i.l.bf16 %v6213_v46  ;;  %v1491_v38 = vsel %vm1490_vm7, %v5381_v15, %v5382_v56  ;;  %v1434_v56 = vpop.permute.xlu1 %1433  ;;  %v2108_v17 = vld [vmem:[%s7960_s16] sm:$0xff] }
 0x450   : > { %vm1435_vm9 = vcmask 1014784   ;;  %v5396_v52 = vunpack.i.l.bf16 %v6244_v20  ;;  %v1842_v63 = vpack.c.bf16 %v6281_v21, %v6216_v45 }
 0x451   : > { %v6350_v27 = vpack.c.bf16 %v5412_v58, %v8040_v3 }
 0x453   : > { %1655 = vrot.lane.b32.xlu2 %v1576_v9, %s5648_s6 }
 0x455   : > { %v1489_v59 = vpop.permute.xlu2 %1488 }
 0x456   : > { %v1494_v8 = vsel %vm1490_vm7, %v1489_v59, %v5431_v11  ;;  %v1557_v11 = vsel %vm1553_vm13, %v6281_v21, %v5411_v47  ;;  %v1493_v46 = vsel %vm1490_vm7, %v5432_v57, %v1489_v59  ;;  %vm1816_vm7 = vcmask 457728  }
 0x457   : > { %v1578_v4 = vpack.c.bf16 %v1494_v8, %v1492_v37 }
 0x45b   : > { %1649 = vrot.lane.b32.xlu2 %v1573_v26, %s5648_s6  ;;  %v5450_v26 = vpop.permute.xlu1 %5449 }
 0x460   : > { %5439 = vrot.lane.b32.xlu0 %v6185_v53, %s5645_s18 }
 0x463   : > { %1627 = vrot.lane.b32.xlu2 %v6180_v32, %s5648_s6  ;;  %v1555_v32 = vsel %vm1553_vm13, %v6216_v45, %v5411_v47  ;;  %vm1679_vm13 = vcmask 277504  }
 0x464   : > { %v1587_v53 = vpack.c.bf16 %v1557_v11, %v1555_v32  ;;  %v5451_v32 = vunpack.i.l.bf16 %v5450_v26 }
 0x468   : > { %5444 = vrot.lane.b32.xlu0 %v6201_v50, %s8039_s29 }
 0x46b   : > { %1673 = vrot.lane.b32.xlu2 %v6350_v27, %s5648_s6 }
 0x470   : > { %5454 = vrot.lane.b32.xlu0 %v6201_v50, %s5640_s2  ;;  %v1577_v50 = vpack.c.bf16 %v1493_v46, %v1491_v38  ;;  %v6394_v38 = vpop.permute.xlu2 %1876  ;;  %s8048_s2 = sld [smem:[#allocation17_spill]] }
 0x473   : > { %1677 = vrot.lane.b32.xlu2 %v1587_v53, %s5648_s6 }
 0x476   : > { %v1364_v22 = vld [vmem:[%s8048_s2] sm:$0xff]  ;;  %s717_s2 = scalar_lea.vmem %s7966_s22, %s4327_s9 }
 0x478   : > { %1914 = vrot.lane.b32.xlu0 %v1848_v25, %s8038_s30 }
 0x47b   : > { %1888 = vrot.lane.b32.xlu2 %v1838_v5, %s8038_s30 }
 0x480   : > { %1663 = vrot.lane.b32.xlu0 %v6335_v13, %s5648_s6 }
 0x481   : > { %v2017_v45 = vpop.xlane.xlu1 %2016 }
 0x483   : > { %1671 = vrot.lane.b32.xlu2 %v1584_v61, %s5648_s6  ;;  %v5392_v61 = vunpack.i.h.bf16 %v6231_v43 }
 0x48b   : > { %1657 = vrot.lane.b32.xlu2 %v1577_v50, %s5648_s6 }
 0x48c   : > { %v6372_v58 = vpop.permute.xlu0 %1912 }
 0x493   : > { %1659 = vrot.lane.b32.xlu2 %v1578_v4, %s5648_s6 }
 0x494   : > { %v6374_v24 = vpop.permute.xlu0 %5399 }
 0x495   : > { %v5402_v47 = vunpack.i.h.bf16 %v6374_v24  ;;  %v5401_v11 = vunpack.i.l.bf16 %v6374_v24 }
 0x497   : > { %v1416_v53 = vsel %vm8011_vm10, %v5401_v11, %v5402_v47 }
 0x49b   : > { %1651 = vrot.lane.b32.xlu2 %v1574_v54, %s5648_s6  ;;  %v5397_v54 = vunpack.i.h.bf16 %v6244_v20  ;;  %v5452_v20 = vunpack.i.h.bf16 %v5450_v26 }
 0x49d   : > { %v1455_v43 = vsel %vm1077_vm8, %v5396_v52, %v5397_v54  ;;  %v1418_v24 = vsel %vm8011_vm10, %v5451_v32, %v5452_v20 }
 0x4bf   : > { %v6376_v5 = vpop.xlane.xlu0 %2013 }
 0x4d2   : > { %v5440_v25 = vpop.permute.xlu0 %5439 }
 0x4d3   : > { %v5442_v37 = vunpack.i.h.bf16 %v5440_v25  ;;  %v5441_v36 = vunpack.i.l.bf16 %v5440_v25  ;;  %v1828_v25 = vsel %vm1435_vm9, %v1434_v56, %v6234_v19 }
 0x4d5   : > { %v1437_v40 = vsel %vm1435_vm9, %v5392_v61, %v5441_v36  ;;  %v1439_v55 = vsel %vm1435_vm9, %v5442_v37, %v1434_v56  ;;  %v1827_v46 = vsel %vm1435_vm9, %v5441_v36, %v6234_v19 }
 0x4d6   : > { %v1568_v57 = vpack.c.bf16 %v1439_v55, %v1437_v40  ;;  %v1569_v40 = vpack.c.bf16 %v1434_v56, %v5441_v36  ;;  %v1565_v55 = vpack.c.bf16 %v1418_v24, %v1416_v53  ;;  %v1566_v56 = vpack.c.bf16 %v5452_v20, %v5402_v47 }
 0x4d7   : > { %v1436_v53 = vsel %vm1435_vm9, %v6234_v19, %v5392_v61 }
 0x4d8   : > { %1882 = vrot.lane.b32.xlu2 %v1568_v57, %s8038_s30 }
 0x4da   : > { %v5445_v15 = vpop.permute.xlu0 %5444 }
 0x4db   : > { %v5447_v9 = vunpack.i.h.bf16 %v5445_v15  ;;  %v5446_v59 = vunpack.i.l.bf16 %v5445_v15 }
 0x4dd   : > { %v1572_v8 = vpack.c.bf16 %v5447_v9, %v5397_v54  ;;  %v1457_v4 = vsel %vm1077_vm8, %v5446_v59, %v5447_v9  ;;  %v1846_v54 = vpack.c.bf16 %v1828_v25, %v1827_v46 }
 0x4de   : > { %v1571_v3 = vpack.c.bf16 %v1457_v4, %v1455_v43  ;;  %v6407_v43 = vpop.permute.xlu2 %1667  ;;  %v1454_v4 = vsel %vm1077_vm8, %v6013_v28, %v5396_v52  ;;  %v5406_v52 = vunpack.i.l.bf16 %v6268_v60 }
 0x4df   : > { %1647 = vrot.lane.b32.xlu1 %v1572_v8, %s5648_s6  ;;  %v1456_v8 = vsel %vm1077_vm8, %v6013_v28, %v5446_v59  ;;  %v1438_v59 = vsel %vm1435_vm9, %v6234_v19, %v5442_v37  ;;  %vm2072_vm9 = vcmask 195584  }
 0x4e0   : > { %1645 = vrot.lane.b32.xlu0 %v1571_v3, %s5648_s6  ;;  %1639 = vrot.lane.b32.xlu2 %v1568_v57, %s5648_s6  ;;  %v5407_v57 = vunpack.i.h.bf16 %v6268_v60  ;;  %v1570_v3 = vpack.c.bf16 %v1456_v8, %v1454_v4  ;;  %v1415_v60 = vsel %vm8011_vm10, %v6075_v18, %v5401_v11  ;;  %v6525_v4 = vld [vmem:[%s8049_s8] sm:$0xff] }
 0x4e2   : > { %v5455_v50 = vpop.permute.xlu0 %5454  ;;  %v1818_v36 = vsel %vm1816_vm7, %v5407_v57, %v6229_v39  ;;  %v1817_v25 = vsel %vm1816_vm7, %v5406_v52, %v5407_v57 }
 0x4e3   : > { %v5457_v15 = vunpack.i.h.bf16 %v5455_v50  ;;  %v5456_v47 = vunpack.i.l.bf16 %v5455_v50 }
 0x4e5   : > { %v1820_v9 = vsel %vm1816_vm7, %v5457_v15, %v6229_v39  ;;  %v1567_v39 = vpack.c.bf16 %v1438_v59, %v1436_v53  ;;  %v1819_v20 = vsel %vm1816_vm7, %v5456_v47, %v5457_v15  ;;  %v1843_v37 = vpack.c.bf16 %v5456_v47, %v5406_v52 }
 0x4e6   : > { %v1845_v26 = vpack.c.bf16 %v1820_v9, %v1818_v36  ;;  %v6420_v46 = vpop.permute.xlu2 %1661  ;;  %v1844_v61 = vpack.c.bf16 %v1819_v20, %v1817_v25 }
 0x4e7   : > { %1641 = vrot.lane.b32.xlu1 %v1569_v40, %s5648_s6 }
 0x4e8   : > { %1910 = vrot.lane.b32.xlu0 %v1846_v54, %s8038_s30  ;;  %1633 = vrot.lane.b32.xlu2 %v1565_v55, %s5648_s6 }
 0x4ea   : > { %v6501_v16 = vpop.permute.xlu0 %1914 }
 0x4ee   : > { %v6430_v19 = vpop.permute.xlu2 %1653 }
 0x4ef   : > { %1635 = vrot.lane.b32.xlu1 %v1566_v56, %s5648_s6 }
 0x4f0   : > { %1643 = vrot.lane.b32.xlu0 %v1570_v3, %s5648_s6  ;;  %1908 = vrot.lane.b32.xlu2 %v1845_v26, %s8038_s30  ;;  %v1595_v26 = vunpack.c.h.b16 %v6525_v4  ;;  %v2018_v3 = vmul.f32 0.015625, %v6376_v5 }
 0x4f2   : > { %v1664_v11 = vpop.permute.xlu0 %1663  ;;  %v1597_v20 = vpack.c.b16 %v1595_v26, %v1595_v26 }
 0x4f6   : > { %v6444_v24 = vpop.permute.xlu2 %1655 }
 0x4f7   : > { %1675 = vrot.lane.b32.xlu1 %v6285_v7, %s5648_s6 }
 0x4f8   : > { %1637 = vrot.lane.b32.xlu0 %v1567_v39, %s5648_s6  ;;  %1894 = vrot.lane.b32.xlu2 %v6335_v13, %s8038_s30  ;;  %v1417_v13 = vsel %vm8011_vm10, %v6075_v18, %v5451_v32  ;;  %v2121_v32 = vld [vmem:[#allocation2] sm:$0x1] }
 0x4f9   : > { %v1564_v50 = vpack.c.bf16 %v1417_v13, %v1415_v60 }
 0x4ff   : > { %1904 = vrot.lane.b32.xlu1 %v1843_v37, %s8038_s30  ;;  %v2019_v37 = vmul.f32 0.015625, %v2017_v45  ;;  %v1692_v45 = vsel %vm1679_vm13, %v6420_v46, %v1664_v11 }
 0x500   : > { %1906 = vrot.lane.b32.xlu0 %v1844_v61, %s8038_s30  ;;  %1896 = vrot.lane.b32.xlu2 %v1841_v10, %s8038_s30  ;;  %v1776_v10 = vld [vmem:[%s8047_s11] sm:$0xff]  ;;  %s8064_s11 = smov 110  }
 0x501   : > { %v2020_v5 = vpack.c.bf16 %v2019_v37, %v2018_v3  ;;  %v1594_v37 = vunpack.c.l.b16 %v6525_v4 }
 0x507   : > { %1629 = vrot.lane.b32.xlu1 %v6193_v44, %s5648_s6  ;;  %v6457_v44 = vpop.permute.xlu2 %1649 }
 0x508   : > { %1631 = vrot.lane.b32.xlu0 %v1564_v50, %s5648_s6  ;;  %1884 = vrot.lane.b32.xlu2 %v1569_v40, %s8038_s30 }
 0x50f   : > { %1669 = vrot.lane.b32.xlu1 %v1583_v23, %s5648_s6  ;;  %v6475_v23 = vpop.permute.xlu2 %1627 }
 0x510   : > { %1900 = vrot.lane.b32.xlu0 %v6285_v7, %s8038_s30  ;;  %1590 = vperm.xlu2 %5276, %v1402_v30   ;;  %v8044_v7 = vpack.c.bf16 %v6264_v48, %v6227_v33 }
 0x517   : > { %1665 = vrot.lane.b32.xlu1 %v1581_v31, %s5648_s6  ;;  %v1674_v34 = vpop.permute.xlu2 %1673  ;;  %v1849_v31 = vpack.c.bf16 %v6223_v41, %v6223_v41 }
 0x518   : > { %1892 = vrot.lane.b32.xlu0 %v8042_v29, %s8038_s30  ;;  %2111 = vperm.xlu2 %5276, %v2108_v17   ;;  %v6554_v17 = vld [vmem:[%s8050_s10] sm:$0xff]  ;;  %s8066_s10 = smov 94  }
 0x519   : > { %v1857_v29 = vunpack.c.h.b16 %v6554_v17 }
 0x51f   : > { %1898 = vrot.lane.b32.xlu1 %v6350_v27, %s8038_s30  ;;  %v1678_v33 = vpop.permute.xlu2 %1677  ;;  %v6506_v27 = vpop.permute.xlu1 %1878 }
 0x520   : > { %1886 = vrot.lane.b32.xlu0 %v8044_v7, %s8038_s30  ;;  %v6544_v60 = vsel %vm1918_vm14, %v6394_v38, %v6506_v27 }
 0x527   : > { %1625 = vrot.lane.b32.xlu1 %v8045_v14, %s5648_s6  ;;  %v6496_v48 = vpop.permute.xlu2 %1888  ;;  %v6557_v14 = vpack.c.b16 %v1857_v29, %v1857_v29 }
 0x528   : > { %1890 = vrot.lane.b32.xlu0 %v8046_v42, %s8038_s30  ;;  %v1934_v25 = vsel %vm1918_vm14, %v6496_v48, %v6501_v16 }
 0x52f   : > { %1902 = vrot.lane.b32.xlu1 %v1842_v63, %s8038_s30  ;;  %v1672_v21 = vpop.permute.xlu2 %1671 }
 0x530   : > { %1852 = vperm.xlu0 %5357, %v1776_v10  }
 0x537   : > { %1880 = vrot.lane.b32.xlu1 %v1567_v39, %s8038_s30  ;;  %v6508_v40 = vpop.permute.xlu2 %1657 }
 0x53f   : > { %1916 = vrot.lane.b32.xlu1 %v1849_v31, %s8038_s30  ;;  %v1660_v15 = vpop.permute.xlu2 %1659  ;;  %s8055_s30 = smov 111  }
 0x540   : > { %v1691_v3 = vsel %vm1679_vm13, %v6508_v40, %v1660_v15  ;;  %v6591_v15 = vpop.f32.mrf.mxu0 }
 0x547   : > { %1367 = vperm.xlu1 %5275, %v1364_v22   ;;  %v1652_v36 = vpop.permute.xlu2 %1651 }
 0x548   : > { %v1688_v46 = vsel %vm1679_vm13, %v6457_v44, %v1652_v36 }
 0x54f   : > { %2124 = vperm.xlu1 %5275, %v2121_v32   ;;  %v6529_v53 = vpop.permute.xlu2 %1882  ;;  %v1690_v32 = vsel %vm1679_vm13, %v6444_v24, %v6508_v40 }
 0x551   : > { %v1648_v55 = vpop.permute.xlu1 %1647 }
 0x552   : > { %v6510_v41 = vpop.permute.xlu0 %1645 }
 0x553   : > { %v6514_v54 = vsel %vm1679_vm13, %v6510_v41, %v1648_v55 }
 0x557   : > { %v1640_v51 = vpop.permute.xlu2 %1639 }
 0x559   : > { %v6516_v57 = vpop.permute.xlu1 %1641 }
 0x55a   : > { %v6518_v9 = vpop.permute.xlu0 %1910 }
 0x55b   : > { %v1932_v61 = vsel %vm1918_vm14, %v6529_v53, %v6518_v9 }
 0x55f   : > { %v1634_v63 = vpop.permute.xlu2 %1633 }
 0x561   : > { %v6520_v8 = vpop.permute.xlu1 %1635 }
 0x562   : > { %v1644_v56 = vpop.permute.xlu0 %1643 }
 0x569   : > { %v1676_v59 = vpop.permute.xlu1 %1675 }
 0x56a   : > { %v1697_v39 = vsel %vm1679_vm13, %v1676_v59, %v1678_v33  ;;  %v1638_v47 = vpop.permute.xlu0 %1637  ;;  %v1696_v52 = vsel %vm1679_vm13, %v1674_v34, %v1676_v59  ;;  %v1689_v59 = vsel %vm1679_vm13, %v1652_v36, %v6430_v19 }
 0x56b   : > { %1739 = vmatpush.bf16.msrb.mxu2 %v1696_v52  ;;  %1765 = vmatpush.bf16.msrb.mxu0 %v1697_v39  ;;  %v1684_v44 = vsel %vm1679_vm13, %v1638_v47, %v1640_v51 }
 0x56e   : > { %4351 = vmatmul.msk.bf16.vlgmr.msrb.gmra.mxu0 %vm8009_vm12, %v1597_v20  ;;  %4350 = vmatmul.msk.bf16.vlgmr.msrb.gmra.mxu2 %vm8009_vm12, %v1597_v20 }
 0x56f   : > { %1956 = vmatpush.bf16.msra.mxu2 %v1932_v61  ;;  %1976 = vmatpush.bf16.msra.mxu0 %v1934_v25  ;;  %v1683_v25 = vsel %vm1679_vm13, %v1634_v63, %v6520_v8  ;;  %v1596_v61 = vpack.c.b16 %v1594_v37, %v1594_v37  ;;  %v1931_v8 = vsel %vm1918_vm14, %v6506_v27, %v6239_v49 }
 0x570   : > { %v1919_v27 = vsel %vm1918_vm14, %v6239_v49, %v6394_v38 }
 0x571   : > { %v1905_v13 = vpop.permute.xlu1 %1904 }
 0x572   : > { %v6547_v50 = vpop.permute.xlu0 %1906 }
 0x573   : > { %2033 = vmatpush.bf16.msrb.mxu0 %v2020_v5  ;;  %1957 = vmatpush.bf16.msra.mxu2 %v6544_v60  ;;  %v1929_v30 = vsel %vm1918_vm14, %v1905_v13, %v6547_v50  ;;  %v1933_v5 = vsel %vm1918_vm14, %v6518_v9, %v6372_v58 }
 0x577   : > { %1958 = vmatpush.bf16.msra.mxu2 %v1929_v30 }
 0x579   : > { %v1630_v7 = vpop.permute.xlu1 %1629 }
 0x57a   : > { %v1632_v34 = vpop.permute.xlu0 %1631  ;;  %v1681_v30 = vsel %vm1679_vm13, %v6475_v23, %v1630_v7 }
 0x57b   : > { %v1682_v36 = vsel %vm1679_vm13, %v1632_v34, %v1634_v63  ;;  %v1856_v34 = vunpack.c.l.b16 %v6554_v17 }
 0x57d   : > { %v1858_v7 = vpack.c.b16 %v1856_v34, %v1856_v34 }
 0x57e   : > { %4352 = vmatmul.msk.bf16.vlgmr.msra.gmra.mxu0 %vm8009_vm12, %v6557_v14 }
 0x581   : > { %v1670_v42 = vpop.permute.xlu1 %1669 }
 0x582   : > { %v1694_v10 = vsel %vm1679_vm13, %v6407_v43, %v1670_v42  ;;  %v1695_v33 = vsel %vm1679_vm13, %v1670_v42, %v1672_v21  ;;  %v6564_v31 = vpop.permute.xlu0 %1900  ;;  %v2021_v43 = vld [vmem:[%s7956_s12] sm:$0xf]  ;;  %v1909_v21 = vpop.permute.xlu2 %1908 }
 0x583   : > { %1719 = vmatpush.bf16.msra.mxu1 %v1694_v10  ;;  %1745 = vmatpush.bf16.msra.mxu3 %v1695_v33  ;;  %v1930_v58 = vsel %vm1918_vm14, %v6547_v50, %v1909_v21 }
 0x587   : > { %1720 = vmatpush.bf16.msra.mxu1 %v1692_v45 }
 0x589   : > { %v1666_v22 = vpop.permute.xlu1 %1665 }
 0x58a   : > { %v1693_v55 = vsel %vm1679_vm13, %v1664_v11, %v1666_v22  ;;  %v1893_v26 = vpop.permute.xlu0 %1892  ;;  %v1686_v11 = vsel %vm1679_vm13, %v1644_v56, %v6510_v41  ;;  %v1895_v52 = vpop.permute.xlu2 %1894  ;;  %v1685_v56 = vsel %vm1679_vm13, %v1640_v51, %v6516_v57 }
 0x58b   : > { %1721 = vmatpush.bf16.msra.mxu1 %v1690_v32  ;;  %1746 = vmatpush.bf16.msra.mxu3 %v1693_v55  ;;  %v1925_v40 = vsel %vm1918_vm14, %v1893_v26, %v1895_v52  ;;  %v6589_v41 = vpop.f32.mrf.mxu1  ;;  %v1397_v57 = vpop.f32.mrf.mxu0 }
 0x58e   : > { %4354 = vmatmul.msk.bf16.vlgmr.msrb.gmra.mxu0 %vm8009_vm12, %v2021_v43 }
 0x58f   : > { %1722 = vmatpush.bf16.msra.mxu1 %v1688_v46  ;;  %1747 = vmatpush.bf16.msra.mxu3 %v1691_v3 }
 0x591   : > { %v1899_v24 = vpop.permute.xlu1 %1898 }
 0x592   : > { %v1927_v39 = vsel %vm1918_vm14, %v1899_v24, %v6564_v31  ;;  %v1887_v20 = vpop.permute.xlu0 %1886  ;;  %v1897_v29 = vpop.permute.xlu2 %1896 }
 0x593   : > { %1723 = vmatpush.bf16.msra.mxu1 %v1686_v11  ;;  %1748 = vmatpush.bf16.msra.mxu3 %v1689_v59  ;;  %v1384_v4 = vpop.f32.mrf.mxu1  ;;  %v1926_v50 = vsel %vm1918_vm14, %v1895_v52, %v1897_v29 }
 0x594   : > { %1959 = vmatpush.bf16.msra.mxu2 %v1927_v39 }
 0x597   : > { %1724 = vmatpush.bf16.msra.mxu1 %v1684_v44  ;;  %1749 = vmatpush.bf16.msra.mxu3 %v6514_v54  ;;  %v1923_v54 = vsel %vm1918_vm14, %v1887_v20, %v6496_v48 }
 0x598   : > { %1960 = vmatpush.bf16.msra.mxu2 %v1925_v40 }
 0x599   : > { %v1626_v19 = vpop.permute.xlu1 %1625 }
 0x59a   : > { %v1680_v47 = vsel %vm1679_vm13, %v1626_v19, %v6475_v23  ;;  %v1891_v42 = vpop.permute.xlu0 %1890  ;;  %v1885_v33 = vpop.permute.xlu2 %1884 }
 0x59b   : > { %1725 = vmatpush.bf16.msra.mxu1 %v1682_v36  ;;  %1750 = vmatpush.bf16.msra.mxu3 %v1685_v56  ;;  %v1924_v17 = vsel %vm1918_vm14, %v6496_v48, %v1891_v42  ;;  %v1922_v49 = vsel %vm1918_vm14, %v6529_v53, %v1885_v33  ;;  %v2022_v48 = vld [vmem:[%s7957_s13] sm:$0xff] }
 0x59c   : > { %1961 = vmatpush.bf16.msra.mxu2 %v1923_v54  ;;  %v2044_v33 = vld [vmem:[%s7958_s14] sm:$0xf] }
 0x59f   : > { %1726 = vmatpush.bf16.msra.mxu1 %v1680_v47  ;;  %1751 = vmatpush.bf16.msra.mxu3 %v1683_v25 }
 0x5a1   : > { %v1903_v13 = vpop.permute.xlu1 %1902 }
 0x5a2   : > { %1727 = vmatmul.bf16.vlgmr.msra.gmra.mxu1 %v1596_v61  ;;  %v1928_v23 = vsel %vm1918_vm14, %v6564_v31, %v1903_v13  ;;  %v1591_v24 = vpop.permute.xlu2 %1590  ;;  %v1853_v54 = vpop.permute.xlu0 %1852 }
 0x5a3   : > { %1982 = vmatpush.bf16.msrb.mxu1 %v1933_v5  ;;  %1752 = vmatpush.bf16.msra.mxu3 %v1681_v30 }
 0x5a6   : > { %1753 = vmatmul.bf16.vlgmr.msra.gmra.mxu3 %v1596_v61 }
 0x5a7   : > { %1983 = vmatpush.bf16.msrb.mxu1 %v1931_v8 }
 0x5a9   : > { %v1881_v9 = vpop.permute.xlu1 %1880 }
 0x5aa   : > { %v1921_v51 = vsel %vm1918_vm14, %v1881_v9, %v6529_v53 }
 0x5ab   : > { %1984 = vmatpush.bf16.msrb.mxu1 %v1930_v58  ;;  %1962 = vmatpush.bf16.msra.mxu2 %v1921_v51 }
 0x5af   : > { %1985 = vmatpush.bf16.msrb.mxu1 %v1928_v23  ;;  %1963 = vmatpush.bf16.msra.mxu2 %v1919_v27 }
 0x5b1   : > { %v1917_v63 = vpop.permute.xlu1 %1916 }
 0x5b2   : > { %v1935_v10 = vsel %vm1918_vm14, %v6501_v16, %v1917_v63  ;;  %1964 = vmatmul.bf16.vlgmr.msra.gmra.mxu2 %v1858_v7 }
 0x5b3   : > { %1986 = vmatpush.bf16.msrb.mxu1 %v1926_v50  ;;  %2002 = vmatpush.bf16.msrb.mxu3 %v1935_v10 }
 0x5b6   : > { %4353 = vmatmul.msk.bf16.vlgmr.msrb.gmra.mxu3 %vm8009_vm12, %v6557_v14 }
 0x5b7   : > { %1987 = vmatpush.bf16.msrb.mxu1 %v1924_v17 }
 0x5b9   : > { %v1368_v11 = vpop.permute.xlu1 %1367 }
 0x5ba   : > { %v1396_v52 = vadd.f32 %v6591_v15, %v1368_v11  ;;  %v1383_v15 = vadd.f32 %v6589_v41, %v1368_v11  ;;  %v5178_v11 = vld [vmem:[%s7963_s19 + $0x484] sm:$0xf0] }
 0x5bb   : > { %1988 = vmatpush.bf16.msrb.mxu1 %v1922_v49 }
 0x5bc   : > { %v1400_v40 = vmax.f32 %v1396_v52, 0.0  ;;  %v1399_v27 = vmax.f32 %v1383_v15, 0.0  ;;  %v4522_v52 = vld [vmem:[%s7963_s19 + $0x140] sm:$0xf] }
 0x5bf   : > { %1989 = vmatpush.bf16.msrb.mxu1 %v6544_v60  ;;  %v2045_v60 = vld [vmem:[%s7959_s15] sm:$0xf] }
 0x5c2   : > { %1990 = vmatmul.bf16.vlgmr.msrb.gmra.mxu1 %v1858_v7 }
 0x5eb   : > { %v1767_v38 = vpop.f32.mrf.mxu0 }
 0x5f1   : > { %v1741_v45 = vpop.f32.mrf.mxu2 }
 0x5f3   : > { %v1769_v31 = vpop.f32.mrf.mxu0 }
 0x5f9   : > { %v1743_v32 = vpop.f32.mrf.mxu2 }
 0x5fa   : > { %v4642_v32 = vld [vmem:[%s7963_s19 + $0x230] sm:$0xf] }
 0x5fb   : > { %v1978_v16 = vpop.f32.mrf.mxu0 }
 0x603   : > { %v1980_v22 = vpop.f32.mrf.mxu0 }
 0x60b   : > { %v2035_v55 = vpop.f32.mrf.mxu0 }
 0x60c   : > { %v2036_v43 = vadd.f32 %v2035_v55, %v2022_v48  ;;  %v5108_v48 = vld [vmem:[%s7963_s19 + $0x254] sm:$0xf0] }
 0x60d   : > { %v4643_v55 = vor.u32 %v5108_v48, %v4642_v32 }
 0x60e   : > { %v2039_v14 = vmax.f32 %v2036_v43, 0.0  ;;  %v4602_v43 = vld [vmem:[%s7963_s19 + $0x1e0] sm:$0xf] }
 0x610   : > { %v2046_v21 = vpack.c.bf16 %v2039_v14, %v2039_v14  ;;  %v5098_v14 = vld [vmem:[%s7963_s19 + $0x204] sm:$0xf0] }
 0x612   : > { %v2052_v53 = vsel %vm834_vm2, %v2046_v21, 0  ;;  %v4962_v21 = vld [vmem:[%s7963_s19 + $0x4b0] sm:$0xf] }
 0x613   : > { %v2037_v26 = vpop.f32.mrf.mxu0  ;;  %2061 = vmatpush.bf16.msrb.mxu2 %v2052_v53  ;;  %v4603_v53 = vor.u32 %v5098_v14, %v4602_v43  ;;  %v5173_v14 = vld [vmem:[%s7963_s19 + $0x464] sm:$0xf] }
 0x614   : > { %v5188_v26 = vld [vmem:[%s7963_s19 + $0x4d4] sm:$0xf0] }
 0x616   : > { %4355 = vmatmul.msk.bf16.vlgmr.msrb.gmra.mxu2 %vm2047_vm15, %v2045_v60  ;;  %v4963_v60 = vor.u32 %v5188_v26, %v4962_v21  ;;  %v4650_v21 = vld [vmem:[%s7963_s19 + $0x238] sm:$0xf]  ;;  %v4924_v26 = vld [vmem:[%s7963_s19 + $0x488] sm:$0xf0] }
 0x61f   : > { %v1728_v46 = vpop.f32.mrf.mxu1 }
 0x620   : > { %v1729_v37 = vadd.f32 %v1728_v46, %v1591_v24  ;;  %v4562_v46 = vld [vmem:[%s7963_s19 + $0x190] sm:$0xf] }
 0x622   : > { %v1742_v61 = vadd.f32 %v1741_v45, %v1729_v37  ;;  %v5068_v37 = vld [vmem:[%s7963_s19 + $0x114] sm:$0xf0] }
 0x624   : > { %v1771_v13 = vmax.f32 %v1742_v61, 0.0 }
 0x626   : > { %v1773_v51 = vmul.f32 %v1771_v13, %v5895_v62  ;;  %v5148_v13 = vld [vmem:[%s7963_s19 + $0x394] sm:$0xf0] }
 0x627   : > { %v1730_v3 = vpop.f32.mrf.mxu1 }
 0x628   : > { %v2040_v63 = vpack.c.bf16 %v1773_v51, %v1399_v27  ;;  %v5088_v3 = vld [vmem:[%s7963_s19 + $0x1b4] sm:$0xf0] }
 0x629   : > { %v1754_v59 = vpop.f32.mrf.mxu3  ;;  %v5048_v51 = vld [vmem:[%s7963_s19 + $0x74] sm:$0xf0] }
 0x62a   : > { %v1755_v39 = vadd.f32 %v1754_v59, %v1591_v24  ;;  %v4922_v24 = vld [vmem:[%s7963_s19 + $0x460] sm:$0xf]  ;;  %v4563_v59 = vor.u32 %v5088_v3, %v4562_v46  ;;  %v4722_v46 = vld [vmem:[%s7963_s19 + $0x2d0] sm:$0xf]  ;;  %v5128_v3 = vld [vmem:[%s7963_s19 + $0x2f4] sm:$0xf0] }
 0x62c   : > { %v1768_v44 = vadd.f32 %v1767_v38, %v1755_v39  ;;  %v4923_v39 = vor.u32 %v5178_v11, %v4922_v24 }
 0x62e   : > { %v1772_v20 = vmax.f32 %v1768_v44, 0.0  ;;  %v5078_v44 = vld [vmem:[%s7963_s19 + $0x164] sm:$0xf0] }
 0x630   : > { %v1774_v19 = vmul.f32 %v1772_v20, %v5897_v0  ;;  %v4882_v20 = vld [vmem:[%s7963_s19 + $0x410] sm:$0xf] }
 0x631   : > { %v1756_v36 = vpop.f32.mrf.mxu3 }
 0x632   : > { %v2041_v56 = vpack.c.bf16 %v1774_v19, %v1400_v40  ;;  %v5168_v40 = vld [vmem:[%s7963_s19 + $0x434] sm:$0xf0]  ;;  %v4523_v19 = vor.u32 %v5078_v44, %v4522_v52  ;;  %v5083_v52 = vld [vmem:[%s7963_s19 + $0x194] sm:$0xf]  ;;  %v4564_v44 = vld [vmem:[%s7963_s19 + $0x1b8] sm:$0xf0] }
 0x633   : > { %v4883_v36 = vor.u32 %v5168_v40, %v4882_v20 }
 0x635   : > { %v1965_v47 = vpop.f32.mrf.mxu2 }
 0x636   : > { %v1966_v25 = vadd.f32 %v1965_v47, %v1853_v54  ;;  %v5158_v47 = vld [vmem:[%s7963_s19 + $0x3e4] sm:$0xf0] }
 0x638   : > { %v1979_v5 = vadd.f32 %v1978_v16, %v1966_v25 }
 0x639   : > { %v2004_v57 = vpop.f32.mrf.mxu3 }
 0x63a   : > { %v2008_v4 = vmax.f32 %v1979_v5, 0.0  ;;  %v4442_v5 = vld [vmem:[%s7963_s19 + $0xa0] sm:$0xf] }
 0x63c   : > { %v2010_v30 = vmul.f32 %v2008_v4, %v5895_v62  ;;  %v4802_v4 = vld [vmem:[%s7963_s19 + $0x370] sm:$0xf] }
 0x63d   : > { %v1967_v9 = vpop.f32.mrf.mxu2  ;;  %v4803_v15 = vor.u32 %v5148_v13, %v4802_v4  ;;  %v5073_v4 = vld [vmem:[%s7963_s19 + $0x144] sm:$0xf]  ;;  %v4524_v13 = vld [vmem:[%s7963_s19 + $0x168] sm:$0xf0] }
 0x63e   : > { %v2042_v29 = vpack.c.bf16 %v2010_v30, %v2010_v30 }
 0x63f   : > { %v1991_v8 = vpop.f32.mrf.mxu1 }
 0x640   : > { %v1992_v58 = vadd.f32 %v1991_v8, %v1853_v54  ;;  %v2077_v23 = vsel %vm834_vm2, %v2042_v29, 0  ;;  %v4842_v54 = vld [vmem:[%s7963_s19 + $0x3c0] sm:$0xf]  ;;  %v4402_v29 = vld [vmem:[%s7963_s19 + $0x50] sm:$0xf] }
 0x641   : > { %2088 = vmatpush.bf16.msra.mxu3 %v2077_v23  ;;  %v2006_v50 = vpop.f32.mrf.mxu3  ;;  %v4843_v61 = vor.u32 %v5158_v47, %v4842_v54  ;;  %v4884_v54 = vld [vmem:[%s7963_s19 + $0x438] sm:$0xf0]  ;;  %v4682_v47 = vld [vmem:[%s7963_s19 + $0x280] sm:$0xf] }
 0x642   : > { %v2005_v34 = vadd.f32 %v2004_v57, %v1992_v58  ;;  %v5058_v57 = vld [vmem:[%s7963_s19 + $0xc4] sm:$0xf0]  ;;  %v4762_v50 = vld [vmem:[%s7963_s19 + $0x320] sm:$0xf] }
 0x643   : > { %v4443_v8 = vor.u32 %v5058_v57, %v4442_v5  ;;  %v4970_v5 = vld [vmem:[%s7963_s19 + $0x4b8] sm:$0xf]  ;;  %v5189_v57 = vld [vmem:[%s7963_s19 + $0x4dc] sm:$0xf0] }
 0x644   : > { %v2009_v7 = vmax.f32 %v2005_v34, 0.0  ;;  %v2112_v34 = vpop.permute.xlu2 %2111 }
 0x645   : > { %2089 = vmatpush.bf16.msra.mxu3 %v2040_v63  ;;  %v4644_v63 = vld [vmem:[%s7963_s19 + $0x258] sm:$0xf0] }
 0x646   : > { %v2011_v42 = vmul.f32 %v2009_v7, %v5897_v0  ;;  %v5103_v7 = vld [vmem:[%s7963_s19 + $0x234] sm:$0xf] }
 0x647   : > { %v1993_v10 = vpop.f32.mrf.mxu1 }
 0x648   : > { %v2043_v17 = vpack.c.bf16 %v2011_v42, %v2011_v42  ;;  %4356 = vmatmul.msk.bf16.vlgmr.msra.gmra.mxu3 %vm2072_vm9, %v2044_v33  ;;  %v5138_v42 = vld [vmem:[%s7963_s19 + $0x344] sm:$0xf0]  ;;  %v5183_v10 = vld [vmem:[%s7963_s19 + $0x4b4] sm:$0xf] }
 0x649   : > { %3125 = vmatpush.bf16.msrb.mxu3 %v4643_v55  ;;  %v4647_v55 = vor.u32 %v5103_v7, %v4644_v63 }
 0x64a   : > { %v2080_v41 = vsel %vm834_vm2, %v2043_v17, 0  ;;  %v4964_v17 = vld [vmem:[%s7963_s19 + $0x4d8] sm:$0xf0] }
 0x64b   : > { %2101 = vmatpush.bf16.msra.mxu0 %v2080_v41  ;;  %v4403_v41 = vor.u32 %v5048_v51, %v4402_v29  ;;  %v4967_v43 = vor.u32 %v5183_v10, %v4964_v17  ;;  %v4570_v29 = vld [vmem:[%s7963_s19 + $0x198] sm:$0xf]  ;;  %v5089_v51 = vld [vmem:[%s7963_s19 + $0x1bc] sm:$0xf0]  ;;  %v4527_v10 = vor.u32 %v5073_v4, %v4524_v13  ;;  %v5113_v4 = vld [vmem:[%s7963_s19 + $0x284] sm:$0xf] }
 0x64c   : > { %v4571_v63 = vor.u32 %v5089_v51, %v4570_v29  ;;  %v4684_v13 = vld [vmem:[%s7963_s19 + $0x2a8] sm:$0xf0] }
 0x64d   : > { %3126 = vmatpush.bf16.msrb.mxu3 %v4603_v53  ;;  %v5109_v53 = vld [vmem:[%s7963_s19 + $0x25c] sm:$0xf0]  ;;  %v5094_v51 = vld [vmem:[%s7963_s19 + $0x1ec] sm:$0xf] }
 0x64e   : > { %v4651_v20 = vor.u32 %v5109_v53, %v4650_v21  ;;  %v4490_v21 = vld [vmem:[%s7963_s19 + $0xf8] sm:$0xf]  ;;  %v5069_v53 = vld [vmem:[%s7963_s19 + $0x11c] sm:$0xf0] }
 0x64f   : > { %2102 = vmatpush.bf16.msra.mxu0 %v2041_v56  ;;  %v4482_v56 = vld [vmem:[%s7963_s19 + $0xf0] sm:$0xf] }
 0x650   : > { %v4483_v25 = vor.u32 %v5068_v37, %v4482_v56  ;;  %v4610_v56 = vld [vmem:[%s7963_s19 + $0x1e8] sm:$0xf]  ;;  %v5099_v37 = vld [vmem:[%s7963_s19 + $0x20c] sm:$0xf0] }
 0x651   : > { %3127 = vmatpush.bf16.msrb.mxu3 %v4563_v59  ;;  %v4723_v59 = vor.u32 %v5128_v3, %v4722_v46  ;;  %v5159_v46 = vld [vmem:[%s7963_s19 + $0x3ec] sm:$0xf0] }
 0x652   : > { %4357 = vmatmul.msk.bf16.vlgmr.msra.gmra.mxu0 %vm2072_vm9, %v2044_v33  ;;  %v4763_v33 = vor.u32 %v5138_v42, %v4762_v50  ;;  %v5063_v50 = vld [vmem:[%s7963_s19 + $0xf4] sm:$0xf]  ;;  %v4484_v42 = vld [vmem:[%s7963_s19 + $0x118] sm:$0xf0] }
 0x653   : > { %3138 = vmatpush.bf16.msrb.mxu0 %v4963_v60 }
 0x655   : > { %3128 = vmatpush.bf16.msrb.mxu3 %v4523_v19  ;;  %v4927_v19 = vor.u32 %v5173_v14, %v4924_v26  ;;  %v5133_v14 = vld [vmem:[%s7963_s19 + $0x324] sm:$0xf]  ;;  %v4764_v26 = vld [vmem:[%s7963_s19 + $0x348] sm:$0xf0] }
 0x657   : > { %3139 = vmatpush.bf16.msrb.mxu0 %v4923_v39  ;;  %v2118_v39 = vld [vmem:[%s7961_s17] sm:$0x1] }
 0x659   : > { %3129 = vmatpush.bf16.msrb.mxu3 %v4483_v25  ;;  %v5118_v25 = vld [vmem:[%s7963_s19 + $0x2a4] sm:$0xf0] }
 0x65b   : > { %3140 = vmatpush.bf16.msrb.mxu0 %v4883_v36  ;;  %v5163_v36 = vld [vmem:[%s7963_s19 + $0x414] sm:$0xf] }
 0x65d   : > { %3130 = vmatpush.bf16.msrb.mxu3 %v4443_v8  ;;  %v4971_v8 = vor.u32 %v5189_v57, %v4970_v5  ;;  %v5104_v57 = vld [vmem:[%s7963_s19 + $0x23c] sm:$0xf] }
 0x65f   : > { %3141 = vmatpush.bf16.msrb.mxu0 %v4843_v61  ;;  %v4683_v61 = vor.u32 %v5118_v25, %v4682_v47  ;;  %v5033_v25 = vld [vmem:[%s7963_s19 + $0x4] sm:$0xf] }
 0x661   : > { %3131 = vmatpush.bf16.msrb.mxu3 %v4403_v41  ;;  %v5143_v41 = vld [vmem:[%s7963_s19 + $0x374] sm:$0xf] }
 0x663   : > { %3142 = vmatpush.bf16.msrb.mxu0 %v4803_v15  ;;  %v4567_v15 = vor.u32 %v5083_v52, %v4564_v44  ;;  %v4767_v52 = vor.u32 %v5133_v14, %v4764_v26  ;;  %v5123_v44 = vld [vmem:[%s7963_s19 + $0x2d4] sm:$0xf]  ;;  %v4812_v14 = vld [vmem:[%s7963_s19 + $0x3a0] sm:$0xf0]  ;;  %v5054_v26 = vld [vmem:[%s7963_s19 + $0xac] sm:$0xf] }
 0x667   : > { %3143 = vmatpush.bf16.msrb.mxu0 %v4763_v33  ;;  %v4530_v33 = vld [vmem:[%s7963_s19 + $0x148] sm:$0xf] }
 0x66b   : > { %3144 = vmatpush.bf16.msrb.mxu0 %v4723_v59  ;;  %v4491_v59 = vor.u32 %v5069_v53, %v4490_v21 }
 0x66f   : > { %3145 = vmatpush.bf16.msrb.mxu0 %v4683_v61  ;;  %v4364_v61 = vld [vmem:[%s7963_s19 + $0x28] sm:$0xf0] }
 0x673   : > { %3190 = vmatpush.bf16.msra.mxu0 %v4971_v8  ;;  %v5184_v8 = vld [vmem:[%s7963_s19 + $0x4bc] sm:$0xf] }
 0x699   : > { %v2063_v49 = vpop.f32.mrf.mxu2 }
 0x69a   : > { %2069 = vperm.xlu0 %5357, %v2063_v49  }
 0x6a1   : > { %v2065_v38 = vpop.f32.mrf.mxu2 }
 0x6cb   : > { %v2091_v45 = vpop.f32.mrf.mxu3 }
 0x6cf   : > { %v2104_v31 = vpop.f32.mrf.mxu0 }
 0x6d3   : > { %v2093_v22 = vpop.f32.mrf.mxu3 }
 0x6d4   : > { %v4604_v22 = vld [vmem:[%s7963_s19 + $0x208] sm:$0xf0] }
 0x6d7   : > { %v2106_v16 = vpop.f32.mrf.mxu0 }
 0x6d8   : > { %v5038_v16 = vld [vmem:[%s7963_s19 + $0x24] sm:$0xf0] }
 0x70c   : > { %v2070_v30 = vpop.permute.xlu0 %2069 }
 0x70d   : > { %v2105_v58 = vadd.f32 %v2104_v31, %v2070_v30  ;;  %v2092_v9 = vadd.f32 %v2091_v45, %v2070_v30  ;;  %v4362_v31 = vld [vmem:[%s7963_s19] sm:$0xf]  ;;  %v5093_v45 = vld [vmem:[%s7963_s19 + $0x1e4] sm:$0xf]  ;;  %v4611_v30 = vor.u32 %v5099_v37, %v4610_v56 }
 0x70e   : > { %v4363_v60 = vor.u32 %v5038_v16, %v4362_v31  ;;  %v4607_v40 = vor.u32 %v5093_v45, %v4604_v22  ;;  %v4890_v31 = vld [vmem:[%s7963_s19 + $0x418] sm:$0xf]  ;;  %v5169_v16 = vld [vmem:[%s7963_s19 + $0x43c] sm:$0xf0]  ;;  %v5053_v22 = vld [vmem:[%s7963_s19 + $0xa4] sm:$0xf] }
 0x70f   : > { %v2115_v23 = vadd.f32 %v2112_v34, %v2105_v58  ;;  %v2114_v27 = vadd.f32 %v2112_v34, %v2092_v9  ;;  %v4887_v58 = vor.u32 %v5163_v36, %v4884_v54  ;;  %v5153_v9 = vld [vmem:[%s7963_s19 + $0x3c4] sm:$0xf]  ;;  %v4844_v34 = vld [vmem:[%s7963_s19 + $0x3e8] sm:$0xf0]  ;;  %v4891_v45 = vor.u32 %v5169_v16, %v4890_v31  ;;  %v4810_v36 = vld [vmem:[%s7963_s19 + $0x378] sm:$0xf] }
 0x710   : > { %3132 = vmatpush.bf16.msrb.mxu3 %v4363_v60  ;;  %v4847_v17 = vor.u32 %v5153_v9, %v4844_v34  ;;  %v4850_v60 = vld [vmem:[%s7963_s19 + $0x3c8] sm:$0xf]  ;;  %v5149_v56 = vld [vmem:[%s7963_s19 + $0x39c] sm:$0xf0]  ;;  %v4687_v9 = vor.u32 %v5113_v4, %v4684_v13  ;;  %v4532_v31 = vld [vmem:[%s7963_s19 + $0x170] sm:$0xf0] }
 0x711   : > { %v2117_v49 = vmax.f32 %v2115_v23, 0.0  ;;  %v2116_v38 = vmax.f32 %v2114_v27, 0.0  ;;  %v4930_v23 = vld [vmem:[%s7963_s19 + $0x468] sm:$0xf]  ;;  %v5179_v27 = vld [vmem:[%s7963_s19 + $0x48c] sm:$0xf0]  ;;  %v4851_v3 = vor.u32 %v5159_v46, %v4850_v60  ;;  %v4811_v37 = vor.u32 %v5149_v56, %v4810_v36 }
 0x712   : > { %v4931_v7 = vor.u32 %v5179_v27, %v4930_v23  ;;  %v4612_v23 = vld [vmem:[%s7963_s19 + $0x210] sm:$0xf0]  ;;  %v5174_v27 = vld [vmem:[%s7963_s19 + $0x46c] sm:$0xf]  ;;  %v4370_v56 = vld [vmem:[%s7963_s19 + $0x8] sm:$0xf] }
 0x713   : > { %v2120_v32 = vpack.c.bf16 %v2117_v49, %v2117_v49  ;;  %v2119_v48 = vpack.c.bf16 %v2116_v38, %v2116_v38  ;;  %v5079_v49 = vld [vmem:[%s7963_s19 + $0x16c] sm:$0xf0]  ;;  %v4804_v38 = vld [vmem:[%s7963_s19 + $0x398] sm:$0xf0]  ;;  %v5154_v16 = vld [vmem:[%s7963_s19 + $0x3cc] sm:$0xf] }
 0x714   : > { %3177 = vmatpush.bf16.msra.mxu3 %v4651_v20  ;;  %3191 = vmatpush.bf16.msra.mxu0 %v4931_v7  ;;  %v4450_v20 = vld [vmem:[%s7963_s19 + $0xa8] sm:$0xf]  ;;  %v4932_v7 = vld [vmem:[%s7963_s19 + $0x490] sm:$0xf0]  ;;  %v5129_v4 = vld [vmem:[%s7963_s19 + $0x2fc] sm:$0xf0] }
 0x715   : > { %v2132_v24 = vsel %vm834_vm2, %v2119_v48, 0  ;;  %v2135_v11 = vsel %vm834_vm2, %v2120_v32, 0  ;;  %v4444_v32 = vld [vmem:[%s7963_s19 + $0xc8] sm:$0xf0]  ;;  %v4531_v48 = vor.u32 %v5079_v49, %v4530_v33  ;;  %v4452_v60 = vld [vmem:[%s7963_s19 + $0xd0] sm:$0xf0] }
 0x716   : > { %2144 = vmatpush.bf16.msra.mxu1 %v2132_v24  ;;  %2157 = vmatpush.bf16.msra.mxu2 %v2135_v11  ;;  %v5043_v24 = vld [vmem:[%s7963_s19 + $0x54] sm:$0xf]  ;;  %v4404_v11 = vld [vmem:[%s7963_s19 + $0x78] sm:$0xf0]  ;;  %v5074_v49 = vld [vmem:[%s7963_s19 + $0x14c] sm:$0xf]  ;;  %v4455_v46 = vor.u32 %v5054_v26, %v4452_v60 }
 0x717   : > { %v4407_v47 = vor.u32 %v5043_v24, %v4404_v11  ;;  %v5049_v24 = vld [vmem:[%s7963_s19 + $0x7c] sm:$0xf0]  ;;  %v5044_v11 = vld [vmem:[%s7963_s19 + $0x5c] sm:$0xf]  ;;  %v4772_v36 = vld [vmem:[%s7963_s19 + $0x350] sm:$0xf0] }
 0x718   : > { %3178 = vmatpush.bf16.msra.mxu3 %v4611_v30  ;;  %3192 = vmatpush.bf16.msra.mxu0 %v4891_v45  ;;  %v4652_v30 = vld [vmem:[%s7963_s19 + $0x260] sm:$0xf0]  ;;  %v4852_v45 = vld [vmem:[%s7963_s19 + $0x3f0] sm:$0xf0]  ;;  %v4578_v26 = vld [vmem:[%s7963_s19 + $0x1a0] sm:$0xf] }
 0x719   : > { %4358 = vmatmul.msk.bf16.vlgmr.msra.gmra.mxu1 %vm2047_vm15, %v2118_v39  ;;  %4359 = vmatmul.msk.bf16.vlgmr.msra.gmra.mxu2 %vm2047_vm15, %v2118_v39  ;;  %v4447_v39 = vor.u32 %v5053_v22, %v4444_v32  ;;  %v4655_v29 = vor.u32 %v5104_v57, %v4652_v30  ;;  %v4535_v22 = vor.u32 %v5074_v49, %v4532_v31  ;;  %v5064_v32 = vld [vmem:[%s7963_s19 + $0xfc] sm:$0xf]  ;;  %v4730_v57 = vld [vmem:[%s7963_s19 + $0x2d8] sm:$0xf] }
 0x71a   : > { %3151 = vmatpush.bf16.msrb.mxu1 %v4647_v55  ;;  %3164 = vmatpush.bf16.msrb.mxu2 %v4967_v43  ;;  %v4487_v55 = vor.u32 %v5063_v50, %v4484_v42  ;;  %v4807_v43 = vor.u32 %v5143_v41, %v4804_v38  ;;  %v4615_v50 = vor.u32 %v5094_v51, %v4612_v23  ;;  %v5084_v42 = vld [vmem:[%s7963_s19 + $0x19c] sm:$0xf]  ;;  %v4892_v41 = vld [vmem:[%s7963_s19 + $0x440] sm:$0xf0]  ;;  %v5114_v51 = vld [vmem:[%s7963_s19 + $0x28c] sm:$0xf] }
 0x71b   : > { %v4731_v13 = vor.u32 %v5129_v4, %v4730_v57  ;;  %v5124_v30 = vld [vmem:[%s7963_s19 + $0x2dc] sm:$0xf]  ;;  %v4898_v57 = vld [vmem:[%s7963_s19 + $0x420] sm:$0xf]  ;;  %v5170_v4 = vld [vmem:[%s7963_s19 + $0x444] sm:$0xf0] }
 0x71c   : > { %3179 = vmatpush.bf16.msra.mxu3 %v4571_v63  ;;  %3193 = vmatpush.bf16.msra.mxu0 %v4851_v3  ;;  %v4935_v63 = vor.u32 %v5174_v27, %v4932_v7  ;;  %v4410_v3 = vld [vmem:[%s7963_s19 + $0x58] sm:$0xf]  ;;  %v2125_v27 = vpop.permute.xlu1 %2124 }
 0x71d   : > { %v2127_v7 = vperm.slane %v2125_v27, 0 }
 0x71e   : > { %3152 = vmatpush.bf16.msrb.mxu1 %v4607_v40  ;;  %3165 = vmatpush.bf16.msrb.mxu2 %v4927_v19  ;;  %v5059_v40 = vld [vmem:[%s7963_s19 + $0xcc] sm:$0xf0]  ;;  %v4724_v19 = vld [vmem:[%s7963_s19 + $0x2f8] sm:$0xf0] }
 0x71f   : > { %v4451_v54 = vor.u32 %v5059_v40, %v4450_v20  ;;  %v4727_v5 = vor.u32 %v5123_v44, %v4724_v19  ;;  %v4770_v44 = vld [vmem:[%s7963_s19 + $0x328] sm:$0xf]  ;;  %v5139_v20 = vld [vmem:[%s7963_s19 + $0x34c] sm:$0xf0]  ;;  %v5134_v40 = vld [vmem:[%s7963_s19 + $0x32c] sm:$0xf] }
 0x720   : > { %3180 = vmatpush.bf16.msra.mxu3 %v4531_v48  ;;  %3194 = vmatpush.bf16.msra.mxu0 %v4811_v37  ;;  %v4855_v48 = vor.u32 %v5154_v16, %v4852_v45  ;;  %v4771_v19 = vor.u32 %v5139_v20, %v4770_v44  ;;  %v5039_v37 = vld [vmem:[%s7963_s19 + $0x2c] sm:$0xf0]  ;;  %v5100_v16 = vld [vmem:[%s7963_s19 + $0x214] sm:$0xf0]  ;;  %v5095_v45 = vld [vmem:[%s7963_s19 + $0x1f4] sm:$0xf] }
 0x721   : > { %v5180_v20 = vld [vmem:[%s7963_s19 + $0x494] sm:$0xf0] }
 0x722   : > { %3153 = vmatpush.bf16.msrb.mxu1 %v4567_v15  ;;  %3166 = vmatpush.bf16.msrb.mxu2 %v4887_v58  ;;  %v4972_v15 = vld [vmem:[%s7963_s19 + $0x4e0] sm:$0xf0]  ;;  %v4367_v58 = vor.u32 %v5033_v25, %v4364_v61  ;;  %v5034_v25 = vld [vmem:[%s7963_s19 + $0xc] sm:$0xf]  ;;  %v4372_v61 = vld [vmem:[%s7963_s19 + $0x30] sm:$0xf0] }
 0x723   : > { %v4975_v34 = vor.u32 %v5184_v8, %v4972_v15  ;;  %v4732_v8 = vld [vmem:[%s7963_s19 + $0x300] sm:$0xf0] }
 0x724   : > { %3181 = vmatpush.bf16.msra.mxu3 %v4491_v59  ;;  %v4411_v59 = vor.u32 %v5049_v24, %v4410_v3  ;;  %3195 = vmatpush.bf16.msra.mxu0 %v4771_v19  ;;  %v4735_v15 = vor.u32 %v5124_v30, %v4732_v8  ;;  %v5085_v3 = vld [vmem:[%s7963_s19 + $0x1a4] sm:$0xf]  ;;  %v4580_v24 = vld [vmem:[%s7963_s19 + $0x1c8] sm:$0xf0]  ;;  %v4940_v19 = vld [vmem:[%s7963_s19 + $0x498] sm:$0xf0] }
 0x725   : > { %v4900_v30 = vld [vmem:[%s7963_s19 + $0x448] sm:$0xf0] }
 0x726   : > { %3154 = vmatpush.bf16.msrb.mxu1 %v4527_v10  ;;  %3167 = vmatpush.bf16.msrb.mxu2 %v4847_v17  ;;  %v4572_v10 = vld [vmem:[%s7963_s19 + $0x1c0] sm:$0xf0]  ;;  %v5164_v17 = vld [vmem:[%s7963_s19 + $0x41c] sm:$0xf] }
 0x727   : > { %v4575_v33 = vor.u32 %v5084_v42, %v4572_v10  ;;  %v4895_v38 = vor.u32 %v5164_v17, %v4892_v41  ;;  %v5110_v42 = vld [vmem:[%s7963_s19 + $0x264] sm:$0xf0]  ;;  %v4660_v10 = vld [vmem:[%s7963_s19 + $0x268] sm:$0xf0] }
 0x728   : > { %3182 = vmatpush.bf16.msra.mxu3 %v4451_v54  ;;  %v4775_v54 = vor.u32 %v5134_v40, %v4772_v36  ;;  %3196 = vmatpush.bf16.msra.mxu0 %v4731_v13  ;;  %v5175_v40 = vld [vmem:[%s7963_s19 + $0x474] sm:$0xf]  ;;  %v5165_v13 = vld [vmem:[%s7963_s19 + $0x424] sm:$0xf] }
 0x729   : > { %v4903_v27 = vor.u32 %v5165_v13, %v4900_v30  ;;  %v5125_v13 = vld [vmem:[%s7963_s19 + $0x2e4] sm:$0xf]  ;;  %v4740_v30 = vld [vmem:[%s7963_s19 + $0x308] sm:$0xf0] }
 0x72a   : > { %3155 = vmatpush.bf16.msrb.mxu1 %v4487_v55  ;;  %3168 = vmatpush.bf16.msrb.mxu2 %v4807_v43  ;;  %v4492_v55 = vld [vmem:[%s7963_s19 + $0x120] sm:$0xf0]  ;;  %v5144_v43 = vld [vmem:[%s7963_s19 + $0x37c] sm:$0xf] }
 0x72b   : > { %v4495_v21 = vor.u32 %v5064_v32, %v4492_v55  ;;  %v4815_v53 = vor.u32 %v5144_v43, %v4812_v14  ;;  %v4978_v32 = vld [vmem:[%s7963_s19 + $0x4c0] sm:$0xf]  ;;  %v5185_v55 = vld [vmem:[%s7963_s19 + $0x4c4] sm:$0xf]  ;;  %v4980_v43 = vld [vmem:[%s7963_s19 + $0x4e8] sm:$0xf0] }
 0x72c   : > { %3183 = vmatpush.bf16.msra.mxu3 %v4411_v59 }
 0x72e   : > { %3156 = vmatpush.bf16.msrb.mxu1 %v4447_v39  ;;  %3169 = vmatpush.bf16.msrb.mxu2 %v4767_v52  ;;  %v4412_v39 = vld [vmem:[%s7963_s19 + $0x80] sm:$0xf0] }
 0x72f   : > { %v4415_v52 = vor.u32 %v5044_v11, %v4412_v39  ;;  %v4983_v39 = vor.u32 %v5185_v55, %v4980_v43  ;;  %v4820_v55 = vld [vmem:[%s7963_s19 + $0x3a8] sm:$0xf0] }
 0x732   : > { %3157 = vmatpush.bf16.msrb.mxu1 %v4407_v47  ;;  %3170 = vmatpush.bf16.msrb.mxu2 %v4727_v5  ;;  %v4371_v47 = vor.u32 %v5039_v37, %v4370_v56  ;;  %v4375_v5 = vor.u32 %v5034_v25, %v4372_v61  ;;  %v4583_v56 = vor.u32 %v5085_v3, %v4580_v24  ;;  %v4538_v37 = vld [vmem:[%s7963_s19 + $0x150] sm:$0xf]  ;;  %v4540_v25 = vld [vmem:[%s7963_s19 + $0x178] sm:$0xf0] }
 0x733   : > { %v4778_v24 = vld [vmem:[%s7963_s19 + $0x330] sm:$0xf] }
 0x734   : > { %3184 = vmatpush.bf16.msra.mxu3 %v4371_v47  ;;  %v5075_v47 = vld [vmem:[%s7963_s19 + $0x154] sm:$0xf] }
 0x736   : > { %3158 = vmatpush.bf16.msrb.mxu1 %v4367_v58  ;;  %3171 = vmatpush.bf16.msrb.mxu2 %v4687_v9  ;;  %v4690_v58 = vld [vmem:[%s7963_s19 + $0x288] sm:$0xf]  ;;  %v5119_v9 = vld [vmem:[%s7963_s19 + $0x2ac] sm:$0xf0] }
 0x73a   : > { %3203 = vmatpush.bf16.msra.mxu1 %v4655_v29  ;;  %3216 = vmatpush.bf16.msra.mxu2 %v4975_v34  ;;  %v4691_v29 = vor.u32 %v5119_v9, %v4690_v58  ;;  %v4692_v34 = vld [vmem:[%s7963_s19 + $0x2b0] sm:$0xf0]  ;;  %v4543_v58 = vor.u32 %v5075_v47, %v4540_v25  ;;  %v4498_v9 = vld [vmem:[%s7963_s19 + $0x100] sm:$0xf] }
 0x73b   : > { %v4695_v23 = vor.u32 %v5114_v51, %v4692_v34  ;;  %v5065_v51 = vld [vmem:[%s7963_s19 + $0x104] sm:$0xf]  ;;  %v4500_v34 = vld [vmem:[%s7963_s19 + $0x128] sm:$0xf0] }
 0x73c   : > { %3197 = vmatpush.bf16.msra.mxu0 %v4691_v29  ;;  %v5070_v29 = vld [vmem:[%s7963_s19 + $0x124] sm:$0xf0] }
 0x73e   : > { %3204 = vmatpush.bf16.msra.mxu1 %v4615_v50  ;;  %3217 = vmatpush.bf16.msra.mxu2 %v4935_v63  ;;  %v4658_v50 = vld [vmem:[%s7963_s19 + $0x240] sm:$0xf]  ;;  %v5105_v63 = vld [vmem:[%s7963_s19 + $0x244] sm:$0xf] }
 0x73f   : > { %v4663_v49 = vor.u32 %v5105_v63, %v4660_v10  ;;  %v4860_v63 = vld [vmem:[%s7963_s19 + $0x3f8] sm:$0xf0]  ;;  %v4499_v10 = vor.u32 %v5070_v29, %v4498_v9  ;;  %v4626_v29 = vld [vmem:[%s7963_s19 + $0x1f8] sm:$0xf] }
 0x742   : > { %3205 = vmatpush.bf16.msra.mxu1 %v4575_v33  ;;  %3218 = vmatpush.bf16.msra.mxu2 %v4895_v38  ;;  %v4659_v33 = vor.u32 %v5110_v42, %v4658_v50  ;;  %v4618_v38 = vld [vmem:[%s7963_s19 + $0x1f0] sm:$0xf]  ;;  %v5160_v50 = vld [vmem:[%s7963_s19 + $0x3f4] sm:$0xf0]  ;;  %v5155_v42 = vld [vmem:[%s7963_s19 + $0x3d4] sm:$0xf] }
 0x746   : > { %3206 = vmatpush.bf16.msra.mxu1 %v4535_v22  ;;  %3219 = vmatpush.bf16.msra.mxu2 %v4855_v48  ;;  %v4620_v22 = vld [vmem:[%s7963_s19 + $0x218] sm:$0xf0]  ;;  %v5190_v48 = vld [vmem:[%s7963_s19 + $0x4e4] sm:$0xf0] }
 0x747   : > { %v4979_v59 = vor.u32 %v5190_v48, %v4978_v32  ;;  %v5150_v32 = vld [vmem:[%s7963_s19 + $0x3a4] sm:$0xf0]  ;;  %v5145_v48 = vld [vmem:[%s7963_s19 + $0x384] sm:$0xf] }
 0x748   : > { %v4823_v3 = vor.u32 %v5145_v48, %v4820_v55  ;;  %v5091_v48 = vld [vmem:[%s7963_s19 + $0x1cc] sm:$0xf0]  ;;  %v5086_v55 = vld [vmem:[%s7963_s19 + $0x1ac] sm:$0xf] }
 0x74a   : > { %3207 = vmatpush.bf16.msra.mxu1 %v4495_v21  ;;  %3220 = vmatpush.bf16.msra.mxu2 %v4815_v53  ;;  %v4619_v21 = vor.u32 %v5100_v16, %v4618_v38  ;;  %v4623_v53 = vor.u32 %v5095_v45, %v4620_v22  ;;  %v4460_v38 = vld [vmem:[%s7963_s19 + $0xd8] sm:$0xf0]  ;;  %v4863_v45 = vor.u32 %v5155_v42, %v4860_v63  ;;  %v4818_v22 = vld [vmem:[%s7963_s19 + $0x380] sm:$0xf]  ;;  %v5120_v42 = vld [vmem:[%s7963_s19 + $0x2b4] sm:$0xf0] }
 0x74b   : > { %v5115_v63 = vld [vmem:[%s7963_s19 + $0x294] sm:$0xf] }
 0x74e   : > { %3208 = vmatpush.bf16.msra.mxu1 %v4455_v46  ;;  %3221 = vmatpush.bf16.msra.mxu2 %v4775_v54  ;;  %v5090_v46 = vld [vmem:[%s7963_s19 + $0x1c4] sm:$0xf0]  ;;  %v5080_v54 = vld [vmem:[%s7963_s19 + $0x174] sm:$0xf0] }
 0x74f   : > { %v4579_v36 = vor.u32 %v5090_v46, %v4578_v26  ;;  %v5045_v26 = vld [vmem:[%s7963_s19 + $0x64] sm:$0xf]  ;;  %v4819_v46 = vor.u32 %v5150_v32, %v4818_v22 }
 0x752   : > { %3209 = vmatpush.bf16.msra.mxu1 %v4415_v52  ;;  %3222 = vmatpush.bf16.msra.mxu2 %v4735_v15  ;;  %v4938_v52 = vld [vmem:[%s7963_s19 + $0x470] sm:$0xf]  ;;  %v4539_v15 = vor.u32 %v5080_v54, %v4538_v37  ;;  %v4666_v37 = vld [vmem:[%s7963_s19 + $0x248] sm:$0xf] }
 0x753   : > { %v4939_v61 = vor.u32 %v5180_v20, %v4938_v52  ;;  %v5111_v54 = vld [vmem:[%s7963_s19 + $0x26c] sm:$0xf0] }
 0x756   : > { %3210 = vmatpush.bf16.msra.mxu1 %v4375_v5  ;;  %3223 = vmatpush.bf16.msra.mxu2 %v4695_v23  ;;  %v4943_v5 = vor.u32 %v5175_v40, %v4940_v19  ;;  %v4899_v23 = vor.u32 %v5170_v4, %v4898_v57  ;;  %v4378_v40 = vld [vmem:[%s7963_s19 + $0x10] sm:$0xf]  ;;  %v5040_v19 = vld [vmem:[%s7963_s19 + $0x34] sm:$0xf0]  ;;  %v4738_v57 = vld [vmem:[%s7963_s19 + $0x2e0] sm:$0xf] }
 0x757   : > { %v5130_v4 = vld [vmem:[%s7963_s19 + $0x304] sm:$0xf0] }
 0x796   : > { %v2146_v17 = vpop.f32.mrf.mxu1 }
 0x797   : > { %v2147_v41 = vadd.f32 %v2146_v17, %v2127_v7  ;;  %v4503_v17 = vor.u32 %v5065_v51, %v4500_v34  ;;  %v5101_v51 = vld [vmem:[%s7963_s19 + $0x21c] sm:$0xf0]  ;;  %v5096_v34 = vld [vmem:[%s7963_s19 + $0x1fc] sm:$0xf] }
 0x799   : > { %v7056_v31 = vpack.c.bf16 %v2147_v41, %v2147_v41  ;;  %v4458_v41 = vld [vmem:[%s7963_s19 + $0xb0] sm:$0xf] }
 0x79b   : > { %3133 = vmatmul.bf16.vlgmr.msrb.gmra.mxu3 %v7056_v31  ;;  %3159 = vmatmul.bf16.vlgmr.msrb.gmra.mxu1 %v7056_v31 }
 0x79c   : > { %3229 = vmatpush.bf16.msrb.mxu3 %v4659_v33  ;;  %3255 = vmatpush.bf16.msrb.mxu1 %v4663_v49  ;;  %v2159_v14 = vpop.f32.mrf.mxu2  ;;  %v5060_v33 = vld [vmem:[%s7963_s19 + $0xd4] sm:$0xf0]  ;;  %v5055_v49 = vld [vmem:[%s7963_s19 + $0xb4] sm:$0xf] }
 0x79d   : > { %v2160_v60 = vadd.f32 %v2159_v14, %v2127_v7  ;;  %v4858_v7 = vld [vmem:[%s7963_s19 + $0x3d0] sm:$0xf]  ;;  %v4459_v43 = vor.u32 %v5060_v33, %v4458_v41  ;;  %v4463_v14 = vor.u32 %v5055_v49, %v4460_v38  ;;  %v5186_v33 = vld [vmem:[%s7963_s19 + $0x4cc] sm:$0xf]  ;;  %v4988_v49 = vld [vmem:[%s7963_s19 + $0x4f0] sm:$0xf0]  ;;  %v4627_v38 = vor.u32 %v5101_v51, %v4626_v29 }
 0x79e   : > { %v2148_v11 = vpop.f32.mrf.mxu1  ;;  %v4859_v16 = vor.u32 %v5160_v50, %v4858_v7  ;;  %v4628_v7 = vld [vmem:[%s7963_s19 + $0x220] sm:$0xf0]  ;;  %v4698_v50 = vld [vmem:[%s7963_s19 + $0x290] sm:$0xf]  ;;  %v4466_v51 = vld [vmem:[%s7963_s19 + $0xb8] sm:$0xf] }
 0x79f   : > { %v7096_v44 = vpack.c.bf16 %v2160_v60, %v2160_v60  ;;  %v4420_v60 = vld [vmem:[%s7963_s19 + $0x88] sm:$0xf0]  ;;  %v5140_v11 = vld [vmem:[%s7963_s19 + $0x354] sm:$0xf0]  ;;  %v5191_v41 = vld [vmem:[%s7963_s19 + $0x4ec] sm:$0xf0]  ;;  %v4699_v22 = vor.u32 %v5120_v42, %v4698_v50 }
 0x7a0   : > { %3230 = vmatpush.bf16.msrb.mxu3 %v4619_v21  ;;  %3256 = vmatpush.bf16.msrb.mxu1 %v4623_v53  ;;  %v4418_v21 = vld [vmem:[%s7963_s19 + $0x60] sm:$0xf]  ;;  %v5050_v53 = vld [vmem:[%s7963_s19 + $0x84] sm:$0xf0]  ;;  %v4423_v20 = vor.u32 %v5045_v26, %v4420_v60  ;;  %v4779_v47 = vor.u32 %v5140_v11, %v4778_v24  ;;  %v5176_v60 = vld [vmem:[%s7963_s19 + $0x47c] sm:$0xf] }
 0x7a1   : > { %3146 = vmatmul.bf16.vlgmr.msrb.gmra.mxu0 %v7096_v44  ;;  %3172 = vmatmul.bf16.vlgmr.msrb.gmra.mxu2 %v7096_v44  ;;  %v4419_v52 = vor.u32 %v5050_v53, %v4418_v21  ;;  %v4991_v21 = vor.u32 %v5186_v33, %v4988_v49  ;;  %v4946_v53 = vld [vmem:[%s7963_s19 + $0x478] sm:$0xf]  ;;  %v5181_v26 = vld [vmem:[%s7963_s19 + $0x49c] sm:$0xf0]  ;;  %v4826_v42 = vld [vmem:[%s7963_s19 + $0x388] sm:$0xf] }
 0x7a2   : > { %3242 = vmatpush.bf16.msrb.mxu0 %v4979_v59  ;;  %3268 = vmatpush.bf16.msrb.mxu2 %v4983_v39  ;;  %v5135_v59 = vld [vmem:[%s7963_s19 + $0x334] sm:$0xf]  ;;  %v4780_v39 = vld [vmem:[%s7963_s19 + $0x358] sm:$0xf0]  ;;  %v4546_v11 = vld [vmem:[%s7963_s19 + $0x158] sm:$0xf] }
 0x7a3   : > { %v4783_v25 = vor.u32 %v5135_v59, %v4780_v39  ;;  %v5081_v59 = vld [vmem:[%s7963_s19 + $0x17c] sm:$0xf0]  ;;  %v5076_v39 = vld [vmem:[%s7963_s19 + $0x15c] sm:$0xf]  ;;  %v4426_v49 = vld [vmem:[%s7963_s19 + $0x68] sm:$0xf] }
 0x7a4   : > { %3231 = vmatpush.bf16.msrb.mxu3 %v4579_v36  ;;  %3257 = vmatpush.bf16.msrb.mxu1 %v4583_v56  ;;  %v2161_v8 = vpop.f32.mrf.mxu2  ;;  %v5035_v36 = vld [vmem:[%s7963_s19 + $0x14] sm:$0xf]  ;;  %v4380_v56 = vld [vmem:[%s7963_s19 + $0x38] sm:$0xf0] }
 0x7a5   : > { %v4379_v8 = vor.u32 %v5040_v19, %v4378_v40  ;;  %v4906_v19 = vld [vmem:[%s7963_s19 + $0x428] sm:$0xf] }
 0x7a6   : > { %3243 = vmatpush.bf16.msrb.mxu0 %v4939_v61  ;;  %3269 = vmatpush.bf16.msrb.mxu2 %v4943_v5  ;;  %v5106_v61 = vld [vmem:[%s7963_s19 + $0x24c] sm:$0xf]  ;;  %v4668_v5 = vld [vmem:[%s7963_s19 + $0x270] sm:$0xf0] }
 0x7a7   : > { %v4671_v9 = vor.u32 %v5106_v61, %v4668_v5  ;;  %v5071_v61 = vld [vmem:[%s7963_s19 + $0x12c] sm:$0xf0]  ;;  %v5066_v5 = vld [vmem:[%s7963_s19 + $0x10c] sm:$0xf] }
 0x7a8   : > { %3232 = vmatpush.bf16.msrb.mxu3 %v4539_v15  ;;  %3258 = vmatpush.bf16.msrb.mxu1 %v4543_v58  ;;  %v4383_v15 = vor.u32 %v5035_v36, %v4380_v56  ;;  %v4667_v58 = vor.u32 %v5111_v54, %v4666_v37  ;;  %v5171_v36 = vld [vmem:[%s7963_s19 + $0x44c] sm:$0xf0]  ;;  %v5166_v56 = vld [vmem:[%s7963_s19 + $0x42c] sm:$0xf]  ;;  %v4908_v37 = vld [vmem:[%s7963_s19 + $0x450] sm:$0xf0]  ;;  %v4547_v54 = vor.u32 %v5081_v59, %v4546_v11 }
 0x7a9   : > { %v5112_v11 = vld [vmem:[%s7963_s19 + $0x274] sm:$0xf0] }
 0x7aa   : > { %3244 = vmatpush.bf16.msrb.mxu0 %v4899_v23  ;;  %3270 = vmatpush.bf16.msrb.mxu2 %v4903_v27  ;;  %v4739_v23 = vor.u32 %v5130_v4, %v4738_v57  ;;  %v4743_v27 = vor.u32 %v5125_v13, %v4740_v30  ;;  %v4508_v57 = vld [vmem:[%s7963_s19 + $0x130] sm:$0xf0]  ;;  %v4907_v4 = vor.u32 %v5171_v36, %v4906_v19  ;;  %v4866_v30 = vld [vmem:[%s7963_s19 + $0x3d8] sm:$0xf]  ;;  %v5131_v19 = vld [vmem:[%s7963_s19 + $0x30c] sm:$0xf0] }
 0x7ab   : > { %3185 = vmatmul.bf16.vlgmr.msra.gmra.mxu3 %v7056_v31  ;;  %3211 = vmatmul.bf16.vlgmr.msra.gmra.mxu1 %v7056_v31  ;;  %v4911_v13 = vor.u32 %v5166_v56, %v4908_v37  ;;  %v4511_v29 = vor.u32 %v5066_v5, %v4508_v57  ;;  %v5126_v36 = vld [vmem:[%s7963_s19 + $0x2ec] sm:$0xf]  ;;  %v4748_v56 = vld [vmem:[%s7963_s19 + $0x310] sm:$0xf0]  ;;  %v5102_v5 = vld [vmem:[%s7963_s19 + $0x224] sm:$0xf0] }
 0x7ac   : > { %3233 = vmatpush.bf16.msrb.mxu3 %v4499_v10  ;;  %3259 = vmatpush.bf16.msrb.mxu1 %v4503_v17  ;;  %v4700_v10 = vld [vmem:[%s7963_s19 + $0x2b8] sm:$0xf0]  ;;  %v4986_v17 = vld [vmem:[%s7963_s19 + $0x4c8] sm:$0xf]  ;;  %v5097_v57 = vld [vmem:[%s7963_s19 + $0x204] sm:$0xf] }
 0x7ad   : > { %v4703_v32 = vor.u32 %v5115_v63, %v4700_v10  ;;  %v5151_v63 = vld [vmem:[%s7963_s19 + $0x3ac] sm:$0xf0]  ;;  %v5146_v10 = vld [vmem:[%s7963_s19 + $0x38c] sm:$0xf] }
 0x7ae   : > { %3245 = vmatpush.bf16.msrb.mxu0 %v4859_v16  ;;  %3271 = vmatpush.bf16.msrb.mxu2 %v4863_v45  ;;  %v4631_v16 = vor.u32 %v5096_v34, %v4628_v7  ;;  %v4586_v45 = vld [vmem:[%s7963_s19 + $0x1a8] sm:$0xf]  ;;  %v5061_v34 = vld [vmem:[%s7963_s19 + $0xdc] sm:$0xf0] }
 0x7b0   : > { %3234 = vmatpush.bf16.msrb.mxu3 %v4459_v43  ;;  %3260 = vmatpush.bf16.msrb.mxu1 %v4463_v14  ;;  %v4588_v43 = vld [vmem:[%s7963_s19 + $0x1d0] sm:$0xf0]  ;;  %v4987_v14 = vor.u32 %v5191_v41, %v4986_v17  ;;  %v4467_v41 = vor.u32 %v5061_v34, %v4466_v51  ;;  %v5192_v51 = vld [vmem:[%s7963_s19 + $0x4f4] sm:$0xf0] }
 0x7b1   : > { %3198 = vmatmul.bf16.vlgmr.msra.gmra.mxu0 %v7096_v44  ;;  %3224 = vmatmul.bf16.vlgmr.msra.gmra.mxu2 %v7096_v44  ;;  %v4591_v24 = vor.u32 %v5086_v55, %v4588_v43  ;;  %v4828_v17 = vld [vmem:[%s7963_s19 + $0x3b0] sm:$0xf0]  ;;  %v5141_v55 = vld [vmem:[%s7963_s19 + $0x35c] sm:$0xf0]  ;;  %v5136_v43 = vld [vmem:[%s7963_s19 + $0x33c] sm:$0xf] }
 0x7b2   : > { %3246 = vmatpush.bf16.msrb.mxu0 %v4819_v46  ;;  %3272 = vmatpush.bf16.msrb.mxu2 %v4823_v3  ;;  %v4948_v46 = vld [vmem:[%s7963_s19 + $0x4a0] sm:$0xf0]  ;;  %v4587_v3 = vor.u32 %v5091_v48, %v4586_v45  ;;  %v4428_v45 = vld [vmem:[%s7963_s19 + $0x90] sm:$0xf0]  ;;  %v4786_v48 = vld [vmem:[%s7963_s19 + $0x338] sm:$0xf] }
 0x7b3   : > { %v4951_v40 = vor.u32 %v5176_v60, %v4948_v46  ;;  %v5041_v60 = vld [vmem:[%s7963_s19 + $0x3c] sm:$0xf0]  ;;  %v5036_v46 = vld [vmem:[%s7963_s19 + $0x1c] sm:$0xf]  ;;  %v4787_v59 = vor.u32 %v5141_v55, %v4786_v48  ;;  %v5187_v34 = vld [vmem:[%s7963_s19 + $0x4d4] sm:$0xf] }
 0x7b4   : > { %3235 = vmatpush.bf16.msrb.mxu3 %v4419_v52  ;;  %3261 = vmatpush.bf16.msrb.mxu1 %v4423_v20  ;;  %v4548_v52 = vld [vmem:[%s7963_s19 + $0x180] sm:$0xf0]  ;;  %v4947_v20 = vor.u32 %v5181_v26, %v4946_v53  ;;  %v4386_v26 = vld [vmem:[%s7963_s19 + $0x18] sm:$0xf]  ;;  %v4554_v55 = vld [vmem:[%s7963_s19 + $0x160] sm:$0xf] }
 0x7b5   : > { %v4387_v37 = vor.u32 %v5041_v60, %v4386_v26  ;;  %v4556_v26 = vld [vmem:[%s7963_s19 + $0x188] sm:$0xf0]  ;;  %v4914_v60 = vld [vmem:[%s7963_s19 + $0x430] sm:$0xf] }
 0x7b6   : > { %3247 = vmatpush.bf16.msrb.mxu0 %v4779_v47  ;;  %3273 = vmatpush.bf16.msrb.mxu2 %v4783_v25  ;;  %v4551_v47 = vor.u32 %v5076_v39, %v4548_v52  ;;  %v4506_v25 = vld [vmem:[%s7963_s19 + $0x108] sm:$0xf]  ;;  %v5107_v52 = vld [vmem:[%s7963_s19 + $0x254] sm:$0xf] }
 0x7b8   : > { %3236 = vmatpush.bf16.msrb.mxu3 %v4379_v8  ;;  %3262 = vmatpush.bf16.msrb.mxu1 %v4383_v15  ;;  %v5161_v8 = vld [vmem:[%s7963_s19 + $0x3fc] sm:$0xf0]  ;;  %v5156_v15 = vld [vmem:[%s7963_s19 + $0x3dc] sm:$0xf] }
 0x7b9   : > { %v4867_v7 = vor.u32 %v5161_v8, %v4866_v30  ;;  %v4636_v30 = vld [vmem:[%s7963_s19 + $0x228] sm:$0xf0]  ;;  %v4706_v8 = vld [vmem:[%s7963_s19 + $0x298] sm:$0xf] }
 0x7ba   : > { %3248 = vmatpush.bf16.msrb.mxu0 %v4739_v23  ;;  %3274 = vmatpush.bf16.msrb.mxu2 %v4743_v27  ;;  %v5056_v23 = vld [vmem:[%s7963_s19 + $0xbc] sm:$0xf]  ;;  %v4468_v27 = vld [vmem:[%s7963_s19 + $0xe0] sm:$0xf0] }
 0x7bb   : > { %3237 = vmatmul.bf16.vlgmr.msrb.gmra.mxu3 %v7056_v31  ;;  %3263 = vmatmul.bf16.vlgmr.msrb.gmra.mxu1 %v7056_v31  ;;  %v4471_v33 = vor.u32 %v5056_v23, %v4468_v27  ;;  %v4996_v23 = vld [vmem:[%s7963_s19 + $0x4f8] sm:$0xf0] }
 0x7bc   : > { %3281 = vmatpush.bf16.msra.mxu3 %v4667_v58  ;;  %3307 = vmatpush.bf16.msra.mxu1 %v4671_v9  ;;  %v4868_v58 = vld [vmem:[%s7963_s19 + $0x400] sm:$0xf0]  ;;  %v4507_v9 = vor.u32 %v5071_v61, %v4506_v25  ;;  %v4634_v61 = vld [vmem:[%s7963_s19 + $0x200] sm:$0xf] }
 0x7bd   : > { %v4871_v50 = vor.u32 %v5156_v15, %v4868_v58  ;;  %v5121_v15 = vld [vmem:[%s7963_s19 + $0x2bc] sm:$0xf0]  ;;  %v5116_v58 = vld [vmem:[%s7963_s19 + $0x29c] sm:$0xf]  ;;  %v4635_v27 = vor.u32 %v5102_v5, %v4634_v61 }
 0x7be   : > { %3249 = vmatpush.bf16.msrb.mxu0 %v4699_v22  ;;  %3275 = vmatpush.bf16.msrb.mxu2 %v4703_v32  ;;  %v4827_v22 = vor.u32 %v5151_v63, %v4826_v42  ;;  %v4831_v32 = vor.u32 %v5146_v10, %v4828_v17  ;;  %v4594_v63 = vld [vmem:[%s7963_s19 + $0x1b0] sm:$0xf]  ;;  %v5092_v10 = vld [vmem:[%s7963_s19 + $0x1d4] sm:$0xf0]  ;;  %v4474_v5 = vld [vmem:[%s7963_s19 + $0xc0] sm:$0xf] }
 0x7c0   : > { %3282 = vmatpush.bf16.msra.mxu3 %v4627_v38  ;;  %3308 = vmatpush.bf16.msra.mxu1 %v4631_v16  ;;  %v5051_v38 = vld [vmem:[%s7963_s19 + $0x8c] sm:$0xf0]  ;;  %v5046_v16 = vld [vmem:[%s7963_s19 + $0x6c] sm:$0xf] }
 0x7c1   : > { %3250 = vmatmul.bf16.vlgmr.msrb.gmra.mxu0 %v7096_v44  ;;  %3276 = vmatmul.bf16.vlgmr.msrb.gmra.mxu2 %v7096_v44  ;;  %v4431_v53 = vor.u32 %v5046_v16, %v4428_v45  ;;  %v5182_v16 = vld [vmem:[%s7963_s19 + $0x4a4] sm:$0xf0]  ;;  %v5177_v45 = vld [vmem:[%s7963_s19 + $0x484] sm:$0xf] }
 0x7c2   : > { %3294 = vmatpush.bf16.msra.mxu0 %v4987_v14  ;;  %3320 = vmatpush.bf16.msra.mxu2 %v4991_v21  ;;  %v4788_v14 = vld [vmem:[%s7963_s19 + $0x360] sm:$0xf0]  ;;  %v4427_v21 = vor.u32 %v5051_v38, %v4426_v49  ;;  %v4596_v49 = vld [vmem:[%s7963_s19 + $0x1d8] sm:$0xf0]  ;;  %v4954_v38 = vld [vmem:[%s7963_s19 + $0x480] sm:$0xf] }
 0x7c3   : > { %v4791_v39 = vor.u32 %v5136_v43, %v4788_v14  ;;  %v5082_v43 = vld [vmem:[%s7963_s19 + $0x184] sm:$0xf0]  ;;  %v4955_v14 = vor.u32 %v5182_v16, %v4954_v38  ;;  %v4394_v16 = vld [vmem:[%s7963_s19 + $0x20] sm:$0xf] }
 0x7c4   : > { %3283 = vmatpush.bf16.msra.mxu3 %v4587_v3  ;;  %3309 = vmatpush.bf16.msra.mxu1 %v4591_v24  ;;  %v4388_v3 = vld [vmem:[%s7963_s19 + $0x40] sm:$0xf0]  ;;  %v4674_v24 = vld [vmem:[%s7963_s19 + $0x250] sm:$0xf] }
 0x7c6   : > { %3295 = vmatpush.bf16.msra.mxu0 %v4947_v20  ;;  %3321 = vmatpush.bf16.msra.mxu2 %v4951_v40  ;;  %v4676_v20 = vld [vmem:[%s7963_s19 + $0x278] sm:$0xf0]  ;;  %v4746_v40 = vld [vmem:[%s7963_s19 + $0x2e8] sm:$0xf] }
 0x7c7   : > { %v4679_v25 = vor.u32 %v5107_v52, %v4676_v20  ;;  %v5072_v52 = vld [vmem:[%s7963_s19 + $0x134] sm:$0xf0] }
 0x7c8   : > { %3284 = vmatpush.bf16.msra.mxu3 %v4547_v54  ;;  %3310 = vmatpush.bf16.msra.mxu1 %v4551_v47  ;;  %v4391_v54 = vor.u32 %v5036_v46, %v4388_v3  ;;  %v4675_v47 = vor.u32 %v5112_v11, %v4674_v24  ;;  %v5172_v46 = vld [vmem:[%s7963_s19 + $0x454] sm:$0xf0]  ;;  %v5167_v3 = vld [vmem:[%s7963_s19 + $0x434] sm:$0xf]  ;;  %v4916_v24 = vld [vmem:[%s7963_s19 + $0x458] sm:$0xf0]  ;;  %v4555_v11 = vor.u32 %v5082_v43, %v4554_v55 }
 0x7c9   : > { %v4915_v20 = vor.u32 %v5172_v46, %v4914_v60  ;;  %v4396_v55 = vld [vmem:[%s7963_s19 + $0x48] sm:$0xf0]  ;;  %v4754_v43 = vld [vmem:[%s7963_s19 + $0x2f0] sm:$0xf] }
 0x7ca   : > { %3296 = vmatpush.bf16.msra.mxu0 %v4907_v4  ;;  %3322 = vmatpush.bf16.msra.mxu2 %v4911_v13  ;;  %v4747_v4 = vor.u32 %v5131_v19, %v4746_v40  ;;  %v4751_v13 = vor.u32 %v5126_v36, %v4748_v56  ;;  %v4919_v40 = vor.u32 %v5167_v3, %v4916_v24  ;;  %v5067_v19 = vld [vmem:[%s7963_s19 + $0x114] sm:$0xf]  ;;  %v4516_v36 = vld [vmem:[%s7963_s19 + $0x138] sm:$0xf0]  ;;  %v4874_v56 = vld [vmem:[%s7963_s19 + $0x3e0] sm:$0xf] }
 0x7cb   : > { %v4519_v61 = vor.u32 %v5067_v19, %v4516_v36  ;;  %v4714_v24 = vld [vmem:[%s7963_s19 + $0x2a0] sm:$0xf] }
 0x7cc   : > { %3285 = vmatpush.bf16.msra.mxu3 %v4507_v9  ;;  %3311 = vmatpush.bf16.msra.mxu1 %v4511_v29  ;;  %v4708_v9 = vld [vmem:[%s7963_s19 + $0x2c0] sm:$0xf0]  ;;  %v4994_v29 = vld [vmem:[%s7963_s19 + $0x4d0] sm:$0xf] }
 0x7cd   : > { %v4711_v42 = vor.u32 %v5116_v58, %v4708_v9  ;;  %v4995_v17 = vor.u32 %v5192_v51, %v4994_v29  ;;  %v5152_v58 = vld [vmem:[%s7963_s19 + $0x3b4] sm:$0xf0]  ;;  %v5147_v9 = vld [vmem:[%s7963_s19 + $0x394] sm:$0xf]  ;;  %v4836_v29 = vld [vmem:[%s7963_s19 + $0x3b8] sm:$0xf0] }
 0x7ce   : > { %3297 = vmatpush.bf16.msra.mxu0 %v4867_v7  ;;  %3323 = vmatpush.bf16.msra.mxu2 %v4871_v50  ;;  %v4639_v7 = vor.u32 %v5097_v57, %v4636_v30  ;;  %v4707_v50 = vor.u32 %v5121_v15, %v4706_v8  ;;  %v5062_v57 = vld [vmem:[%s7963_s19 + $0xe4] sm:$0xf0]  ;;  %v5057_v30 = vld [vmem:[%s7963_s19 + $0xc4] sm:$0xf]  ;;  %v4476_v8 = vld [vmem:[%s7963_s19 + $0xe8] sm:$0xf0] }
 0x7cf   : > { %v4834_v15 = vld [vmem:[%s7963_s19 + $0x390] sm:$0xf]  ;;  %v4475_v51 = vor.u32 %v5062_v57, %v4474_v5 }
 0x7d0   : > { %3286 = vmatpush.bf16.msra.mxu3 %v4467_v41  ;;  %3312 = vmatpush.bf16.msra.mxu1 %v4471_v33  ;;  %v4999_v41 = vor.u32 %v5187_v34, %v4996_v23  ;;  %v5087_v33 = vld [vmem:[%s7963_s19 + $0x1b4] sm:$0xf]  ;;  %v4479_v34 = vor.u32 %v5057_v30, %v4476_v8  ;;  %v4434_v23 = vld [vmem:[%s7963_s19 + $0x70] sm:$0xf] }
 0x7d1   : > { %v4599_v48 = vor.u32 %v5087_v33, %v4596_v49  ;;  %v4796_v33 = vld [vmem:[%s7963_s19 + $0x368] sm:$0xf0] }
 0x7d2   : > { %3298 = vmatpush.bf16.msra.mxu0 %v4827_v22  ;;  %3324 = vmatpush.bf16.msra.mxu2 %v4831_v32  ;;  %v4956_v22 = vld [vmem:[%s7963_s19 + $0x4a8] sm:$0xf0]  ;;  %v4595_v32 = vor.u32 %v5092_v10, %v4594_v63  ;;  %v4436_v63 = vld [vmem:[%s7963_s19 + $0x98] sm:$0xf0]  ;;  %v4794_v10 = vld [vmem:[%s7963_s19 + $0x340] sm:$0xf] }
 0x7d4   : > { %3287 = vmatpush.bf16.msra.mxu3 %v4427_v21  ;;  %3313 = vmatpush.bf16.msra.mxu1 %v4431_v53  ;;  %v4959_v21 = vor.u32 %v5177_v45, %v4956_v22  ;;  %v5077_v53 = vld [vmem:[%s7963_s19 + $0x164] sm:$0xf]  ;;  %v5042_v45 = vld [vmem:[%s7963_s19 + $0x44] sm:$0xf0] }
 0x7d6   : > { %3299 = vmatpush.bf16.msra.mxu0 %v4787_v59  ;;  %3325 = vmatpush.bf16.msra.mxu2 %v4791_v39  ;;  %v4559_v59 = vor.u32 %v5077_v53, %v4556_v26  ;;  %v4514_v39 = vld [vmem:[%s7963_s19 + $0x110] sm:$0xf]  ;;  %v4756_v53 = vld [vmem:[%s7963_s19 + $0x318] sm:$0xf0]  ;;  %v4395_v26 = vor.u32 %v5042_v45, %v4394_v16 }
 0x7d8   : > { %3288 = vmatpush.bf16.msra.mxu3 %v4387_v37  ;;  %3314 = vmatpush.bf16.msra.mxu1 %v4391_v54  ;;  %v5162_v37 = vld [vmem:[%s7963_s19 + $0x404] sm:$0xf0]  ;;  %v5157_v54 = vld [vmem:[%s7963_s19 + $0x3e4] sm:$0xf] }
 0x7da   : > { %3300 = vmatpush.bf16.msra.mxu0 %v4747_v4  ;;  %3326 = vmatpush.bf16.msra.mxu2 %v4751_v13  ;;  %v4875_v4 = vor.u32 %v5162_v37, %v4874_v56 }
 0x7db   : > { %3289 = vmatmul.bf16.vlgmr.msra.gmra.mxu3 %v7056_v31  ;;  %3315 = vmatmul.bf16.vlgmr.msra.gmra.mxu1 %v7056_v31 }
 0x7dc   : > { %3333 = vmatpush.bf16.msrb.mxu3 %v4675_v47  ;;  %3359 = vmatpush.bf16.msrb.mxu1 %v4679_v25  ;;  %v4876_v47 = vld [vmem:[%s7963_s19 + $0x408] sm:$0xf0]  ;;  %v4515_v25 = vor.u32 %v5072_v52, %v4514_v39 }
 0x7dd   : > { %v4879_v13 = vor.u32 %v5157_v54, %v4876_v47  ;;  %v4716_v39 = vld [vmem:[%s7963_s19 + $0x2c8] sm:$0xf0] }
 0x7de   : > { %3301 = vmatpush.bf16.msra.mxu0 %v4707_v50  ;;  %3327 = vmatpush.bf16.msra.mxu2 %v4711_v42  ;;  %v4839_v50 = vor.u32 %v5147_v9, %v4836_v29  ;;  %v5047_v42 = vld [vmem:[%s7963_s19 + $0x74] sm:$0xf] }
 0x7df   : > { %v4439_v38 = vor.u32 %v5047_v42, %v4436_v63 }
 0x7e0   : > { %3334 = vmatpush.bf16.msrb.mxu3 %v4635_v27  ;;  %3360 = vmatpush.bf16.msrb.mxu1 %v4639_v7  ;;  %v5052_v27 = vld [vmem:[%s7963_s19 + $0x94] sm:$0xf0]  ;;  %v4835_v7 = vor.u32 %v5152_v58, %v4834_v15 }
 0x7e1   : > { %3302 = vmatmul.bf16.vlgmr.msra.gmra.mxu0 %v7096_v44  ;;  %3328 = vmatmul.bf16.vlgmr.msra.gmra.mxu2 %v7096_v44  ;;  %v4435_v49 = vor.u32 %v5052_v27, %v4434_v23 }
 0x7e2   : > { %3346 = vmatpush.bf16.msrb.mxu0 %v4995_v17  ;;  %3372 = vmatpush.bf16.msrb.mxu2 %v4999_v41  ;;  %v5142_v17 = vld [vmem:[%s7963_s19 + $0x364] sm:$0xf0]  ;;  %v5137_v41 = vld [vmem:[%s7963_s19 + $0x344] sm:$0xf] }
 0x7e3   : > { %v4795_v22 = vor.u32 %v5142_v17, %v4794_v10 }
 0x7e4   : > { %3335 = vmatpush.bf16.msrb.mxu3 %v4595_v32  ;;  %3361 = vmatpush.bf16.msrb.mxu1 %v4599_v48  ;;  %v4799_v32 = vor.u32 %v5137_v41, %v4796_v33  ;;  %v5037_v48 = vld [vmem:[%s7963_s19 + $0x24] sm:$0xf] }
 0x7e5   : > { %v4399_v60 = vor.u32 %v5037_v48, %v4396_v55 }
 0x7e6   : > { %3347 = vmatpush.bf16.msrb.mxu0 %v4955_v14  ;;  %3373 = vmatpush.bf16.msrb.mxu2 %v4959_v21  ;;  %v5132_v14 = vld [vmem:[%s7963_s19 + $0x314] sm:$0xf0]  ;;  %v5127_v21 = vld [vmem:[%s7963_s19 + $0x2f4] sm:$0xf] }
 0x7e7   : > { %v4755_v46 = vor.u32 %v5132_v14, %v4754_v43  ;;  %v4759_v3 = vor.u32 %v5127_v21, %v4756_v53 }
 0x7e8   : > { %3336 = vmatpush.bf16.msrb.mxu3 %v4555_v11  ;;  %3362 = vmatpush.bf16.msrb.mxu1 %v4559_v59  ;;  %v5122_v11 = vld [vmem:[%s7963_s19 + $0x2c4] sm:$0xf0]  ;;  %v5117_v59 = vld [vmem:[%s7963_s19 + $0x2a4] sm:$0xf] }
 0x7e9   : > { %v4715_v52 = vor.u32 %v5122_v11, %v4714_v24 }
 0x7ea   : > { %3348 = vmatpush.bf16.msrb.mxu0 %v4915_v20  ;;  %3374 = vmatpush.bf16.msrb.mxu2 %v4919_v40  ;;  %v4719_v20 = vor.u32 %v5117_v59, %v4716_v39 }
 0x7ec   : > { %3337 = vmatpush.bf16.msrb.mxu3 %v4515_v25  ;;  %3363 = vmatpush.bf16.msrb.mxu1 %v4519_v61 }
 0x7ee   : > { %3349 = vmatpush.bf16.msrb.mxu0 %v4875_v4  ;;  %3375 = vmatpush.bf16.msrb.mxu2 %v4879_v13 }
 0x7f0   : > { %3338 = vmatpush.bf16.msrb.mxu3 %v4475_v51  ;;  %3364 = vmatpush.bf16.msrb.mxu1 %v4479_v34 }
 0x7f2   : > { %3350 = vmatpush.bf16.msrb.mxu0 %v4835_v7  ;;  %3376 = vmatpush.bf16.msrb.mxu2 %v4839_v50 }
 0x7f4   : > { %3339 = vmatpush.bf16.msrb.mxu3 %v4435_v49  ;;  %3365 = vmatpush.bf16.msrb.mxu1 %v4439_v38 }
 0x7f6   : > { %3351 = vmatpush.bf16.msrb.mxu0 %v4795_v22  ;;  %3377 = vmatpush.bf16.msrb.mxu2 %v4799_v32 }
 0x7f8   : > { %3340 = vmatpush.bf16.msrb.mxu3 %v4395_v26  ;;  %3366 = vmatpush.bf16.msrb.mxu1 %v4399_v60 }
 0x7fa   : > { %3352 = vmatpush.bf16.msrb.mxu0 %v4755_v46  ;;  %3378 = vmatpush.bf16.msrb.mxu2 %v4759_v3  ;;  %v3581_v3 = vlaneseq }
 0x7fb   : > { %3341 = vmatmul.bf16.vlgmr.msrb.gmra.mxu3 %v7056_v31  ;;  %3367 = vmatmul.bf16.vlgmr.msrb.gmra.mxu1 %v7056_v31 }
 0x7fe   : > { %3353 = vmatpush.bf16.msrb.mxu0 %v4715_v52  ;;  %3379 = vmatpush.bf16.msrb.mxu2 %v4719_v20 }
 0x801   : > { %3354 = vmatmul.bf16.vlgmr.msrb.gmra.mxu0 %v7096_v44  ;;  %3380 = vmatmul.bf16.vlgmr.msrb.gmra.mxu2 %v7096_v44 }
 0x818   : > { %v3160_v40 = vpop.f32.mrf.mxu1 }
 0x81e   : > { %v3134_v19 = vpop.f32.mrf.mxu3  ;;  %v3147_v36 = vpop.f32.mrf.mxu0 }
 0x81f   : > { %v3148_v56 = vadd.f32 %v3147_v36, %v3134_v19 }
 0x820   : > { %v3162_v37 = vpop.f32.mrf.mxu1 }
 0x821   : > { %v5000_v54 = vmul.f32 -1.442695, %v3148_v56 }
 0x823   : > { %5578 = vpow2.f32 %v5000_v54 }
 0x824   : > { %v3173_v47 = vpop.f32.mrf.mxu2 }
 0x825   : > { %v3174_v25 = vadd.f32 %v3173_v47, %v3160_v40 }
 0x826   : > { %v3136_v61 = vpop.f32.mrf.mxu3  ;;  %v3149_v5 = vpop.f32.mrf.mxu0 }
 0x827   : > { %v5001_v57 = vmul.f32 -1.442695, %v3174_v25 }
 0x828   : > { %v3212_v4 = vpop.f32.mrf.mxu1 }
 0x829   : > { %v5579_v31 = vpop.eup %5578  ;;  %5580 = vpow2.f32 %v5001_v57 }
 0x82a   : > { %v3415_v13 = vadd.f32 1.0, %v5579_v31 }
 0x82c   : > { %5582 = vrcp.f32 %v3415_v13  ;;  %v3175_v30 = vpop.f32.mrf.mxu2  ;;  %vm3430_vm14 = vweird.f32 %v3415_v13  ;;  %v3436_v14 = vand.u32 2147483648, %v3415_v13  ;;  %v3434_v60 = vand.u32 2147483647, %v3415_v13 }
 0x82e   : > { %v3186_v8 = vpop.f32.mrf.mxu3  ;;  %v3199_v44 = vpop.f32.mrf.mxu0  ;;  %v3437_v36 = vor.u32 1.1754944e-38, %v3436_v14 }
 0x82f   : > { %v5581_v15 = vpop.eup %5580  ;;  %v3200_v58 = vadd.f32 %v3199_v44, %v3186_v8 }
 0x830   : > { %v3416_v9 = vadd.f32 1.0, %v5581_v15  ;;  %v3214_v29 = vpop.f32.mrf.mxu1 }
 0x831   : > { %v5002_v51 = vmul.f32 -1.442695, %v3200_v58 }
 0x832   : > { %v5583_v34 = vpop.eup %5582  ;;  %5584 = vrcp.f32 %v3416_v9  ;;  %v3451_v22 = vand.u32 2147483648, %v3416_v9  ;;  %v3449_v43 = vand.u32 2147483647, %v3416_v9  ;;  %vm3445_vm9 = vweird.f32 %v3416_v9 }
 0x833   : > { %v3426_v23 = vmul.f32 %v5583_v34, %v3415_v13  ;;  %5586 = vpow2.f32 %v5002_v51  ;;  %vm3431_vm7 = vweird.f32 %v5583_v34 }
 0x834   : > { %v3225_v27 = vpop.f32.mrf.mxu2  ;;  %vm7644_vm15 = vmor %vm3430_vm14, %vm3431_vm7  ;;  %v3452_v11 = vor.u32 1.1754944e-38, %v3451_v22  ;;  %vm3450_vm11 = vcmp.eq.f32.partialorder %v3449_v43, 8.507059e+37  ;;  %vm3578_vm7 = vcmask 1040384   ;;  %vm3435_vm14 = vcmp.eq.f32.partialorder %v3434_v60, 8.507059e+37 }
 0x835   : > { %v3427_v7 = vsub.f32 1.0, %v3426_v23  ;;  %v3226_v50 = vadd.f32 %v3225_v27, %v3212_v4 }
 0x836   : > { %v3188_v42 = vpop.f32.mrf.mxu3  ;;  %v3201_v63 = vpop.f32.mrf.mxu0 }
 0x837   : > { %v5003_v10 = vmul.f32 -1.442695, %v3226_v50  ;;  %v3428_v49 = vmul.f32 %v5583_v34, %v3427_v7 }
 0x838   : > { %v5585_v17 = vpop.eup %5584  ;;  %v3264_v41 = vpop.f32.mrf.mxu1 }
 0x839   : > { %v5587_v33 = vpop.eup %5586  ;;  %v3441_v38 = vmul.f32 %v5585_v17, %v3416_v9  ;;  %5588 = vpow2.f32 %v5003_v10  ;;  %v3429_v48 = vadd.f32 %v5583_v34, %v3428_v49  ;;  %vm3446_vm13 = vweird.f32 %v5585_v17 }
 0x83a   : > { %v7641_v16 = vadd.f32 1.0, %v5587_v33  ;;  %vm3447_vm12 = vmor %vm3445_vm9, %vm3446_vm13  ;;  %vm3583_vm13 = vcmp.lt.s32.totalorder %v3581_v3, 256 }
 0x83b   : > { %v3442_v45 = vsub.f32 1.0, %v3441_v38  ;;  %v3433_v20 = vsel %vm7644_vm15, %v5583_v34, %v3429_v48 }
 0x83c   : > { %5590 = vrcp.f32 %v7641_v16  ;;  %v3227_v32 = vpop.f32.mrf.mxu2  ;;  %v3438_v47 = vsel %vm3435_vm14, %v3437_v36, %v3433_v20  ;;  %v3464_v51 = vand.u32 2147483647, %v7641_v16  ;;  %v3466_v34 = vand.u32 2147483648, %v7641_v16 }
 0x83d   : > { %v3443_v55 = vmul.f32 %v5585_v17, %v3442_v45 }
 0x83e   : > { %v3238_v21 = vpop.f32.mrf.mxu3  ;;  %v3251_v24 = vpop.f32.mrf.mxu0 }
 0x83f   : > { %v5589_v53 = vpop.eup %5588  ;;  %v3444_v46 = vadd.f32 %v5585_v17, %v3443_v55  ;;  %v3252_v39 = vadd.f32 %v3251_v24, %v3238_v21 }
 0x840   : > { %v3418_v59 = vadd.f32 1.0, %v5589_v53  ;;  %v3266_v52 = vpop.f32.mrf.mxu1 }
 0x841   : > { %v3448_v40 = vsel %vm3447_vm12, %v5585_v17, %v3444_v46  ;;  %v5004_v25 = vmul.f32 -1.442695, %v3252_v39  ;;  %vm3460_vm12 = vweird.f32 %v7641_v16 }
 0x842   : > { %v5591_v19 = vpop.eup %5590  ;;  %v3453_v56 = vsel %vm3450_vm11, %v3452_v11, %v3448_v40  ;;  %5592 = vrcp.f32 %v3418_v59  ;;  %v3481_v23 = vand.u32 2147483648, %v3418_v59  ;;  %v3479_v7 = vand.u32 2147483647, %v3418_v59 }
 0x843   : > { %v3577_v37 = vrot.slane %v3453_v56, 7  ;;  %v3456_v54 = vmul.f32 %v5591_v19, %v7641_v16  ;;  %5594 = vpow2.f32 %v5004_v25  ;;  %vm3461_vm11 = vweird.f32 %v5591_v19 }
 0x844   : > { %v3277_v57 = vpop.f32.mrf.mxu2  ;;  %vm3462_vm9 = vmor %vm3460_vm12, %vm3461_vm11  ;;  %v3482_v33 = vor.u32 1.1754944e-38, %v3481_v23  ;;  %vm3480_vm10 = vcmp.eq.f32.partialorder %v3479_v7, 8.507059e+37 }
 0x845   : > { %v3579_v61 = vsel %vm3578_vm7, %v3438_v47, %v3577_v37  ;;  %v3457_v5 = vsub.f32 1.0, %v3456_v54  ;;  %v3278_v4 = vadd.f32 %v3277_v57, %v3264_v41  ;;  %vm3475_vm7 = vweird.f32 %v3418_v59 }
 0x846   : > { %3585 = vst.msk [vmem:[%s717_s2] sm:$0x3] %vm3583_vm13, %v3579_v61  ;;  %v3240_v31 = vpop.f32.mrf.mxu3  ;;  %v3253_v30 = vpop.f32.mrf.mxu0  ;;  %v3467_v41 = vor.u32 1.1754944e-38, %v3466_v34  ;;  %vm3465_vm13 = vcmp.eq.f32.partialorder %v3464_v51, 8.507059e+37  ;;  %s8065_s2 = smov 95  }
 0x847   : > { %v3458_v13 = vmul.f32 %v5591_v19, %v3457_v5  ;;  %v5005_v44 = vmul.f32 -1.442695, %v3278_v4 }
 0x848   : > { %v5593_v8 = vpop.eup %5592 }
 0x849   : > { %v3471_v15 = vmul.f32 %v5593_v8, %v3418_v59  ;;  %5596 = vpow2.f32 %v5005_v44  ;;  %v3459_v58 = vadd.f32 %v5591_v19, %v3458_v13  ;;  %v5595_v29 = vpop.eup %5594  ;;  %vm3476_vm15 = vweird.f32 %v5593_v8 }
 0x84a   : > { %v3419_v50 = vadd.f32 1.0, %v5595_v29  ;;  %vm3477_vm14 = vmor %vm3475_vm7, %vm3476_vm15 }
 0x84b   : > { %v3472_v9 = vsub.f32 1.0, %v3471_v15  ;;  %v3463_v63 = vsel %vm3462_vm9, %v5591_v19, %v3459_v58 }
 0x84c   : > { %v3279_v42 = vpop.f32.mrf.mxu2  ;;  %5598 = vrcp.f32 %v3419_v50  ;;  %v3468_v16 = vsel %vm3465_vm13, %v3467_v41, %v3463_v63  ;;  %v3494_v24 = vand.u32 2147483647, %v3419_v50  ;;  %v3496_v11 = vand.u32 2147483648, %v3419_v50 }
 0x84d   : > { %v3473_v27 = vmul.f32 %v5593_v8, %v3472_v9  ;;  %v3586_v48 = vperm.slane %v3468_v16, 0  ;;  %vm3490_vm11 = vweird.f32 %v3419_v50 }
 0x84e   : > { %vm3495_vm9 = vcmp.eq.f32.partialorder %v3494_v24, 8.507059e+37  ;;  %v3497_v47 = vor.u32 1.1754944e-38, %v3496_v11 }
 0x84f   : > { %v3474_v10 = vadd.f32 %v5593_v8, %v3473_v27  ;;  %v5597_v17 = vpop.eup %5596 }
 0x850   : > { %v3420_v38 = vadd.f32 1.0, %v5597_v17 }
 0x851   : > { %v3478_v49 = vsel %vm3477_vm14, %v5593_v8, %v3474_v10 }
 0x852   : > { %v3483_v45 = vsel %vm3480_vm10, %v3482_v33, %v3478_v49  ;;  %5600 = vrcp.f32 %v3420_v38  ;;  %v5599_v32 = vpop.eup %5598  ;;  %v3511_v59 = vand.u32 2147483648, %v3420_v38  ;;  %v3509_v37 = vand.u32 2147483647, %v3420_v38 }
 0x853   : > { %v3587_v22 = vperm.slane %v3483_v45, 0  ;;  %v3486_v14 = vmul.f32 %v5599_v32, %v3419_v50  ;;  %vm3491_vm10 = vweird.f32 %v5599_v32  ;;  %vm3505_vm7 = vweird.f32 %v3420_v38 }
 0x854   : > { %vm7660_vm15 = vmor %vm3490_vm11, %vm3491_vm10  ;;  %v3512_v5 = vor.u32 1.1754944e-38, %v3511_v59  ;;  %vm3510_vm13 = vcmp.eq.f32.partialorder %v3509_v37, 8.507059e+37 }
 0x855   : > { %v3590_v55 = vrot.slane %v3587_v22, 4  ;;  %v3487_v26 = vsub.f32 1.0, %v3486_v14 }
 0x857   : > { %v3591_v21 = vsel %vm834_vm2, %v3586_v48, %v3590_v55  ;;  %v3488_v46 = vmul.f32 %v5599_v32, %v3487_v26 }
 0x858   : > { %v3316_v43 = vpop.f32.mrf.mxu1  ;;  %v3593_v53 = vmul.f32 %v3591_v21, %v5786_v1  ;;  %v5601_v60 = vpop.eup %5600 }
 0x859   : > { %v3501_v3 = vmul.f32 %v5601_v60, %v3420_v38  ;;  %v3489_v20 = vadd.f32 %v5599_v32, %v3488_v46  ;;  %vm3506_vm12 = vweird.f32 %v5601_v60 }
 0x85a   : > { %3619 = vst [vmem:[#allocation1] ss:$2 sm:$0xff] %v3593_v53  ;;  %vm3507_vm14 = vmor %vm3505_vm7, %vm3506_vm12 }
 0x85b   : > { %v3502_v40 = vsub.f32 1.0, %v3501_v3  ;;  %v3493_v25 = vsel %vm7660_vm15, %v5599_v32, %v3489_v20 }
 0x85c   : > { %v3498_v44 = vsel %vm3495_vm9, %v3497_v47, %v3493_v25 }
 0x85d   : > { %v3503_v56 = vmul.f32 %v5601_v60, %v3502_v40  ;;  %v3594_v23 = vperm.slane %v3498_v44, 0 }
 0x85e   : > { %v3290_v39 = vpop.f32.mrf.mxu3  ;;  %v3303_v52 = vpop.f32.mrf.mxu0 }
 0x85f   : > { %v3304_v19 = vadd.f32 %v3303_v52, %v3290_v39  ;;  %v3504_v61 = vadd.f32 %v5601_v60, %v3503_v56 }
 0x860   : > { %v3318_v36 = vpop.f32.mrf.mxu1 }
 0x861   : > { %v5006_v1 = vmul.f32 -1.442695, %v3304_v19  ;;  %v3620_v4 = vld.sshfl [vmem:[#allocation1] sm:$0xff pattern:$0x75316420]  ;;  %v3508_v13 = vsel %vm3507_vm14, %v5601_v60, %v3504_v61 }
 0x862   : > { %v3621_v31 = vld.sshfl [vmem:[#allocation1 + $0x8] sm:$0xff pattern:$0x75316420]  ;;  %v3513_v15 = vsel %vm3510_vm13, %v3512_v5, %v3508_v13 }
 0x863   : > { %5602 = vpow2.f32 %v5006_v1  ;;  %v5458_v8 = vpack.i.bf16 %v3621_v31, %v3620_v4  ;;  %v3595_v29 = vperm.slane %v3513_v15, 0 }
 0x864   : > { %v3329_v57 = vpop.f32.mrf.mxu2 }
 0x865   : > { %v3330_v30 = vadd.f32 %v3329_v57, %v3316_v43  ;;  %5459 = vrot.lane.b32.xlu2 %v5458_v8, %s8055_s30  ;;  %v3598_v27 = vrot.slane %v3595_v29, 4 }
 0x866   : > { %v3292_v58 = vpop.f32.mrf.mxu3  ;;  %v3305_v9 = vpop.f32.mrf.mxu0 }
 0x867   : > { %v5007_v51 = vmul.f32 -1.442695, %v3330_v30  ;;  %v3599_v50 = vsel %vm834_vm2, %v3594_v23, %v3598_v27 }
 0x868   : > { %v3601_v42 = vmul.f32 %v5789_v2, %v3599_v50 }
 0x869   : > { %v5603_v34 = vpop.eup %5602  ;;  %5604 = vpow2.f32 %v5007_v51 }
 0x86a   : > { %v3421_v7 = vadd.f32 1.0, %v5603_v34  ;;  %3623 = vst [vmem:[#allocation1] ss:$2 sm:$0xff] %v3601_v42 }
 0x86c   : > { %5606 = vrcp.f32 %v3421_v7  ;;  %v3331_v63 = vpop.f32.mrf.mxu2  ;;  %vm3520_vm11 = vweird.f32 %v3421_v7  ;;  %v3524_v26 = vand.u32 2147483647, %v3421_v7  ;;  %v3526_v60 = vand.u32 2147483648, %v3421_v7 }
 0x86e   : > { %v3527_v19 = vor.u32 1.1754944e-38, %v3526_v60  ;;  %vm3525_vm14 = vcmp.eq.f32.partialorder %v3524_v26, 8.507059e+37 }
 0x86f   : > { %v5605_v10 = vpop.eup %5604 }
 0x870   : > { %v3422_v17 = vadd.f32 1.0, %v5605_v10 }
 0x871   : > { %v3624_v38 = vld.sshfl [vmem:[#allocation1] sm:$0xff pattern:$0x75316420]  ;;  %v3625_v45 = vld.sshfl [vmem:[#allocation1 + $0x8] sm:$0xff pattern:$0x75316420] }
 0x872   : > { %v5607_v41 = vpop.eup %5606  ;;  %5608 = vrcp.f32 %v3422_v17  ;;  %v3656_v22 = vrot.slane %v3624_v38, 4  ;;  %v3657_v48 = vrot.slane %v3625_v45, 4  ;;  %v3541_v46 = vand.u32 2147483648, %v3422_v17 }
 0x873   : > { %v3516_v33 = vmul.f32 %v5607_v41, %v3421_v7  ;;  %vm3521_vm10 = vweird.f32 %v5607_v41  ;;  %v3539_v11 = vand.u32 2147483647, %v3422_v17  ;;  %vm3535_vm9 = vweird.f32 %v3422_v17 }
 0x874   : > { %v7669_v14 = vpack.i.bf16 %v3657_v48, %v3656_v22  ;;  %vm3522_vm15 = vmor %vm3520_vm11, %vm3521_vm10  ;;  %v3542_v36 = vor.u32 1.1754944e-38, %v3541_v46 }
 0x875   : > { %v3517_v49 = vsub.f32 1.0, %v3516_v33  ;;  %vm3540_vm13 = vcmp.eq.f32.partialorder %v3539_v11, 8.507059e+37 }
 0x876   : > { %5464 = vrot.lane.b32.xlu1 %v7669_v14, %s8055_s30 }
 0x877   : > { %v3518_v32 = vmul.f32 %v5607_v41, %v3517_v49 }
 0x878   : > { %v3368_v16 = vpop.f32.mrf.mxu1  ;;  %v5609_v55 = vpop.eup %5608 }
 0x879   : > { %v3531_v43 = vmul.f32 %v5609_v55, %v3422_v17  ;;  %v3519_v2 = vadd.f32 %v5607_v41, %v3518_v32  ;;  %vm3536_vm12 = vweird.f32 %v5609_v55 }
 0x87a   : > { %vm3537_vm7 = vmor %vm3535_vm9, %vm3536_vm12 }
 0x87b   : > { %v3532_v21 = vsub.f32 1.0, %v3531_v43  ;;  %v3523_v52 = vsel %vm3522_vm15, %v5607_v41, %v3519_v2 }
 0x87c   : > { %v3528_v1 = vsel %vm3525_vm14, %v3527_v19, %v3523_v52 }
 0x87d   : > { %v3533_v24 = vmul.f32 %v5609_v55, %v3532_v21  ;;  %v3602_v4 = vperm.slane %v3528_v1, 0 }
 0x87e   : > { %v3355_v53 = vpop.f32.mrf.mxu0  ;;  %v3342_v3 = vpop.f32.mrf.mxu3 }
 0x87f   : > { %v3356_v59 = vadd.f32 %v3355_v53, %v3342_v3  ;;  %v3534_v20 = vadd.f32 %v5609_v55, %v3533_v24 }
 0x880   : > { %v3370_v39 = vpop.f32.mrf.mxu1 }
 0x881   : > { %v5008_v40 = vmul.f32 -1.442695, %v3356_v59  ;;  %v3538_v56 = vsel %vm3537_vm7, %v5609_v55, %v3534_v20 }
 0x882   : > { %v3543_v54 = vsel %vm3540_vm13, %v3542_v36, %v3538_v56 }
 0x883   : > { %5610 = vpow2.f32 %v5008_v40  ;;  %v3603_v25 = vperm.slane %v3543_v54, 0 }
 0x884   : > { %v3381_v37 = vpop.f32.mrf.mxu2 }
 0x885   : > { %v3382_v47 = vadd.f32 %v3381_v37, %v3368_v16  ;;  %v3606_v31 = vrot.slane %v3603_v25, 4 }
 0x886   : > { %v3357_v61 = vpop.f32.mrf.mxu0  ;;  %v3344_v57 = vpop.f32.mrf.mxu3 }
 0x887   : > { %v5009_v5 = vmul.f32 -1.442695, %v3382_v47  ;;  %v3607_v30 = vsel %vm834_vm2, %v3602_v4, %v3606_v31 }
 0x888   : > { %v3609_v8 = vmul.f32 %v5793_v6, %v3607_v30 }
 0x889   : > { %5612 = vpow2.f32 %v5009_v5  ;;  %v5611_v13 = vpop.eup %5610 }
 0x88a   : > { %v3423_v44 = vadd.f32 1.0, %v5611_v13  ;;  %3627 = vst [vmem:[#allocation1] ss:$2 sm:$0xff] %v3609_v8 }
 0x88c   : > { %v3383_v15 = vpop.f32.mrf.mxu2  ;;  %5614 = vrcp.f32 %v3423_v44  ;;  %vm3550_vm11 = vweird.f32 %v3423_v44  ;;  %v3556_v33 = vand.u32 2147483648, %v3423_v44  ;;  %v3554_v38 = vand.u32 2147483647, %v3423_v44 }
 0x88e   : > { %v3557_v48 = vor.u32 1.1754944e-38, %v3556_v33  ;;  %vm3555_vm14 = vcmp.eq.f32.partialorder %v3554_v38, 8.507059e+37 }
 0x88f   : > { %v5613_v58 = vpop.eup %5612 }
 0x890   : > { %v3424_v9 = vadd.f32 1.0, %v5613_v58 }
 0x891   : > { %v3628_v34 = vld.sshfl [vmem:[#allocation1] sm:$0xff pattern:$0x75316420]  ;;  %v3629_v23 = vld.sshfl [vmem:[#allocation1 + $0x8] sm:$0xff pattern:$0x75316420] }
 0x892   : > { %5616 = vrcp.f32 %v3424_v9  ;;  %v5615_v29 = vpop.eup %5614  ;;  %v3636_v27 = vrot.slane %v3628_v34, 4  ;;  %v3637_v50 = vrot.slane %v3629_v23, 4  ;;  %v3571_v49 = vand.u32 2147483648, %v3424_v9 }
 0x893   : > { %v3546_v51 = vmul.f32 %v5615_v29, %v3423_v44  ;;  %vm3551_vm10 = vweird.f32 %v5615_v29  ;;  %v3569_v45 = vand.u32 2147483647, %v3424_v9  ;;  %vm3565_vm9 = vweird.f32 %v3424_v9 }
 0x894   : > { %v5473_v10 = vpack.i.bf16 %v3637_v50, %v3636_v27  ;;  %vm3552_vm15 = vmor %vm3550_vm11, %vm3551_vm10  ;;  %v3572_v55 = vor.u32 1.1754944e-38, %v3571_v49  ;;  %vm8075_vm11 = vcmask 1031168  }
 0x895   : > { %v3547_v7 = vsub.f32 1.0, %v3546_v51  ;;  %vm3570_vm13 = vcmp.eq.f32.partialorder %v3569_v45, 8.507059e+37 }
 0x896   : > { %5474 = vrot.lane.b32.xlu1 %v5473_v10, %s8056_s27  ;;  %5469 = vrot.lane.b32.xlu2 %v5473_v10, %s8055_s30 }
 0x897   : > { %v3548_v63 = vmul.f32 %v5615_v29, %v3547_v7 }
 0x898   : > { %v5617_v42 = vpop.eup %5616 }
 0x899   : > { %v3561_v17 = vmul.f32 %v5617_v42, %v3424_v9  ;;  %v3549_v6 = vadd.f32 %v5615_v29, %v3548_v63  ;;  %vm3566_vm12 = vweird.f32 %v5617_v42 }
 0x89a   : > { %vm3567_vm7 = vmor %vm3565_vm9, %vm3566_vm12 }
 0x89b   : > { %v3562_v41 = vsub.f32 1.0, %v3561_v17  ;;  %v3553_v22 = vsel %vm3552_vm15, %v5615_v29, %v3549_v6  ;;  %v8059_v17 = vld [vmem:[#allocation3_spill] sm:$0xff]  ;;  %vm8076_vm12 = vmmov %vm8075_vm11 }
 0x89c   : > { %v3558_v2 = vsel %vm3555_vm14, %v3557_v48, %v3553_v22  ;;  %v8060_v6 = vunpack.i.l.bf16 %v8059_v17  ;;  %vm8082_vm14 = vcmask 769024  }
 0x89d   : > { %v3563_v16 = vmul.f32 %v5617_v42, %v3562_v41  ;;  %v3610_v26 = vperm.slane %v3558_v2, 0 }
 0x89e   : > { %5494 = vrot.lane.b32.xlu2 %v7669_v14, %s8057_s7 }
 0x89f   : > { %v3564_v32 = vadd.f32 %v5617_v42, %v3563_v16 }
 0x8a1   : > { %v3568_v43 = vsel %vm3567_vm7, %v5617_v42, %v3564_v32  ;;  %v8061_v32 = vld [vmem:[#allocation4_spill] sm:$0xff] }
 0x8a2   : > { %v3573_v21 = vsel %vm3570_vm13, %v3572_v55, %v3568_v43  ;;  %v8062_v48 = vunpack.i.h.bf16 %v8061_v32  ;;  %vm8083_vm13 = vmmov %vm8082_vm14 }
 0x8a3   : > { %v3611_v53 = vperm.slane %v3573_v21, 0  ;;  %v8063_v21 = vld [vmem:[#allocation5_spill] sm:$0xff] }
 0x8a5   : > { %v3614_v60 = vrot.slane %v3611_v53, 4 }
 0x8a7   : > { %v3615_v46 = vsel %vm834_vm2, %v3610_v26, %v3614_v60 }
 0x8a8   : > { %v3617_v3 = vmul.f32 %v5797_v12, %v3615_v46 }
 0x8aa   : > { %3631 = vst [vmem:[#allocation1] ss:$2 sm:$0xff] %v3617_v3 }
 0x8b1   : > { %v3632_v24 = vld.sshfl [vmem:[#allocation1] sm:$0xff pattern:$0x75316420]  ;;  %v7681_v11 = vld.sshfl [vmem:[#allocation1 + $0x8] sm:$0xff pattern:$0x75316420] }
 0x8b2   : > { %v5478_v59 = vpack.i.bf16 %v7681_v11, %v3632_v24 }
 0x8b4   : > { %5479 = vrot.lane.b32.xlu0 %v5478_v59, %s8055_s30 }
 0x8bc   : > { %5484 = vrot.lane.b32.xlu0 %v5478_v59, %s8057_s7 }
 0x8bf   : > { %v5460_v14 = vpop.permute.xlu2 %5459 }
 0x8c0   : > { %v5462_v54 = vunpack.i.h.bf16 %v5460_v14  ;;  %v5461_v47 = vunpack.i.l.bf16 %v5460_v14 }
 0x8c2   : > { %v3671_v30 = vsel %vm794_vm0, %v5461_v47, %v5462_v54 }
 0x8c4   : > { %5489 = vrot.lane.b32.xlu0 %v5478_v59, %s8056_s27 }
 0x8e8   : > { %v5465_v52 = vpop.permute.xlu1 %5464 }
 0x8e9   : > { %v5467_v56 = vunpack.i.h.bf16 %v5465_v52  ;;  %v5466_v37 = vunpack.i.l.bf16 %v5465_v52 }
 0x8eb   : > { %v3679_v5 = vsel %vm794_vm0, %v5466_v37, %v5467_v56  ;;  %v3714_v8 = vsel %vm834_vm2, %v5461_v47, %v5466_v37  ;;  %v3716_v22 = vsel %vm834_vm2, %v5462_v54, %v5467_v56 }
 0x8ec   : > { %v3715_v29 = vsel %vm834_vm2, %v3671_v30, %v3679_v5  ;;  %v5193_v30 = vld [vmem:[%s8029_s1] sm:$0xff] }
 0x8f0   : > { %v5470_v20 = vpop.permute.xlu2 %5469 }
 0x8f1   : > { %v5472_v25 = vunpack.i.h.bf16 %v5470_v20  ;;  %v5471_v61 = vunpack.i.l.bf16 %v5470_v20  ;;  %v3732_v20 = vld [vmem:[%s8028_s0 + $0x8] sm:$0xff] }
 0x8f3   : > { %v3696_v44 = vsel %vm794_vm0, %v5471_v61, %v5472_v25 }
 0x8f8   : > { %v5495_v15 = vpop.permute.xlu2 %5494 }
 0x8f9   : > { %v5496_v63 = vunpack.i.l.bf16 %v5495_v15  ;;  %v5497_v10 = vunpack.i.h.bf16 %v5495_v15 }
 0x8fb   : > { %v3662_v55 = vsel %vm784_vm1, %v8062_v48, %v5496_v63  ;;  %v3663_v43 = vsel %vm784_vm1, %v5496_v63, %v5497_v10 }
 0x908   : > { %v5475_v4 = vpop.permute.xlu1 %5474 }
 0x909   : > { %v5476_v51 = vunpack.i.l.bf16 %v5475_v4  ;;  %v5477_v7 = vunpack.i.h.bf16 %v5475_v4 }
 0x90b   : > { %v3642_v41 = vsel %vm759_vm3, %v8060_v6, %v5476_v51  ;;  %v3643_v49 = vsel %vm759_vm3, %v5476_v51, %v5477_v7 }
 0x90c   : > { %v3708_v2 = vsel %vm834_vm2, 0.0, %v3642_v41  ;;  %v3709_v3 = vsel %vm834_vm2, %v3632_v24, %v3643_v49  ;;  %v3731_v24 = vld [vmem:[%s8028_s0] sm:$0xff] }
 0x926   : > { %v5480_v39 = vpop.permute.xlu0 %5479 }
 0x927   : > { %v5482_v40 = vunpack.i.h.bf16 %v5480_v39  ;;  %v5481_v19 = vunpack.i.l.bf16 %v5480_v39 }
 0x929   : > { %v3704_v12 = vsel %vm794_vm0, %v5481_v19, %v5482_v40  ;;  %v3726_v36 = vpack.c.bf16 %v5481_v19, %v5481_v19  ;;  %v3728_v34 = vpack.c.bf16 %v5482_v40, %v5482_v40  ;;  %v3710_v40 = vsel %vm834_vm2, %v7681_v11, %v5477_v7 }
 0x92a   : > { %v3727_v1 = vpack.c.bf16 %v3704_v12, %v3704_v12 }
 0x92b   : > { %3769 = vrot.lane.b32.xlu1 %v3726_v36, %s8058_s28 }
 0x92c   : > { %3771 = vrot.lane.b32.xlu0 %v3727_v1, %s8058_s28 }
 0x92e   : > { %v5485_v57 = vpop.permute.xlu0 %5484 }
 0x92f   : > { %v5487_v31 = vunpack.i.h.bf16 %v5485_v57  ;;  %v5486_v13 = vunpack.i.l.bf16 %v5485_v57 }
 0x931   : > { %v3687_v58 = vsel %vm784_vm1, %v5822_v35, %v5486_v13  ;;  %v3688_v9 = vsel %vm784_vm1, %v5486_v13, %v5487_v31  ;;  %v3719_v38 = vsel %vm834_vm2, %v5487_v31, %v5472_v25 }
 0x932   : > { %v3717_v23 = vsel %vm834_vm2, %v3687_v58, %v5471_v61  ;;  %v3718_v27 = vsel %vm834_vm2, %v3688_v9, %v3696_v44  ;;  %v3725_v60 = vpack.c.bf16 %v3719_v38, %v3716_v22 }
 0x933   : > { %v3723_v50 = vpack.c.bf16 %v3717_v23, %v3714_v8  ;;  %v3724_v42 = vpack.c.bf16 %v3718_v27, %v3715_v29 }
 0x934   : > { %3773 = vrot.lane.b32.xlu0 %v3728_v34, %s8058_s28 }
 0x935   : > { %3763 = vrot.lane.b32.xlu2 %v3723_v50, %s8058_s28  ;;  %3765 = vrot.lane.b32.xlu1 %v3724_v42, %s8058_s28 }
 0x936   : > { %v5490_v33 = vpop.permute.xlu0 %5489 }
 0x937   : > { %v5492_v16 = vunpack.i.h.bf16 %v5490_v33  ;;  %v5491_v45 = vunpack.i.l.bf16 %v5490_v33 }
 0x939   : > { %v3651_v53 = vsel %vm759_vm3, %v8063_v21, %v5491_v45  ;;  %v3652_v26 = vsel %vm759_vm3, %v5491_v45, %v5492_v16  ;;  %v3713_v52 = vsel %vm834_vm2, %v5492_v16, %v5497_v10 }
 0x93a   : > { %v3711_v46 = vsel %vm834_vm2, %v3651_v53, %v3662_v55  ;;  %v3712_v59 = vsel %vm834_vm2, %v3652_v26, %v3663_v43  ;;  %v3722_v19 = vpack.c.bf16 %v3713_v52, %v3710_v40  ;;  %vm8068_vm2 = vcmask 777216  }
 0x93b   : > { %v3720_v14 = vpack.c.bf16 %v3711_v46, %v3708_v2  ;;  %v3721_v39 = vpack.c.bf16 %v3712_v59, %v3709_v3  ;;  %vm8077_vm15 = vmmov %vm8068_vm2 }
 0x93c   : > { %3767 = vrot.lane.b32.xlu0 %v3725_v60, %s8058_s28  ;;  %vm8078_vm9 = vmmov %vm8068_vm2 }
 0x93d   : > { %3757 = vrot.lane.b32.xlu2 %v3720_v14, %s8058_s28  ;;  %3759 = vrot.lane.b32.xlu1 %v3721_v39, %s8058_s28 }
 0x944   : > { %3740 = vperm.xlu0 %5357, %v3732_v20  }
 0x945   : > { %3761 = vrot.lane.b32.xlu2 %v3722_v19, %s8058_s28  ;;  %3735 = vperm.xlu1 %5275, %v3731_v24  }
 0x98f   : > { %v3764_v36 = vpop.permute.xlu2 %3763 }
 0x997   : > { %v3758_v25 = vpop.permute.xlu2 %3757 }
 0x99d   : > { %v3770_v12 = vpop.permute.xlu1 %3769 }
 0x99e   : > { %v3772_v56 = vpop.permute.xlu0 %3771 }
 0x99f   : > { %v3779_v37 = vsel %vm902_vm4, %v3770_v12, %v3772_v56  ;;  %v3762_v8 = vpop.permute.xlu2 %3761 }
 0x9a0   : > { %v3789_v1 = vsel %vm917_vm5, %v3779_v37, 0 }
 0x9a1   : > { %3799 = vmatpush.bf16.msra.mxu3 %v3789_v1 }
 0x9a6   : > { %v3774_v54 = vpop.permute.xlu0 %3773 }
 0x9a7   : > { %v3780_v11 = vsel %vm902_vm4, %v3772_v56, %v3774_v54  ;;  %v3766_v47 = vpop.permute.xlu1 %3765 }
 0x9a8   : > { %v3792_v61 = vsel %vm917_vm5, %v3780_v11, 0  ;;  %v3777_v5 = vsel %vm902_vm4, %v3764_v36, %v3766_v47  ;;  %v8067_v36 = vld [vmem:[#allocation7_spill] sm:$0xff]  ;;  %vm8069_vm5 = vmmov %vm8068_vm2 }
 0x9a9   : > { %3800 = vmatpush.bf16.msra.mxu3 %v3777_v5  ;;  %3813 = vmatpush.bf16.msra.mxu0 %v3792_v61 }
 0x9ae   : > { %v3768_v57 = vpop.permute.xlu0 %3767 }
 0x9af   : > { %v3760_v4 = vpop.permute.xlu1 %3759  ;;  %v3778_v31 = vsel %vm902_vm4, %v3766_v47, %v3768_v57 }
 0x9b0   : > { %3814 = vmatpush.bf16.msra.mxu0 %v3778_v31  ;;  %v3775_v13 = vsel %vm902_vm4, %v3758_v25, %v3760_v4  ;;  %v3776_v44 = vsel %vm902_vm4, %v3760_v4, %v3762_v8 }
 0x9b1   : > { %3801 = vmatpush.bf16.msra.mxu3 %v3775_v13 }
 0x9b4   : > { %5014 = vmatmul.msk.bf16.vlgmr.msra.gmra.mxu3 %vm913_vm6, %v5193_v30  ;;  %3815 = vmatpush.bf16.msra.mxu0 %v3776_v44 }
 0x9b6   : > { %v3741_v27 = vpop.permute.xlu0 %3740 }
 0x9b7   : > { %5015 = vmatmul.msk.bf16.vlgmr.msra.gmra.mxu0 %vm913_vm6, %v5193_v30  ;;  %v3736_v15 = vpop.permute.xlu1 %3735  ;;  %vm8070_vm6 = vcmask 900096  }
 0x9b8   : > { %vm8071_vm10 = vmmov %vm8070_vm6 }
 0xa34   : > { %v3817_v58 = vpop.f32.mrf.mxu0 }
 0xa35   : > { %v3818_v9 = vadd.f32 %v3817_v58, %v3736_v15 }
 0xa37   : > { %v3803_v29 = vpop.f32.mrf.mxu3  ;;  %v3823_v51 = vmax.f32 %v3818_v9, 0.0 }
 0xa38   : > { %v3804_v34 = vadd.f32 %v3803_v29, %v3736_v15 }
 0xa39   : > { %v7747_v7 = vmul.f32 %v3823_v51, %v5897_v0 }
 0xa3a   : > { %v3822_v23 = vmax.f32 %v3804_v34, 0.0 }
 0xa3c   : > { %v3826_v50 = vmul.f32 %v3822_v23, %v5895_v62  ;;  %v3819_v42 = vpop.f32.mrf.mxu0 }
 0xa3d   : > { %v3820_v63 = vadd.f32 %v3819_v42, %v3741_v27 }
 0xa3e   : > { %v5508_v10 = vpack.i.bf16 %v7747_v7, %v3826_v50 }
 0xa3f   : > { %v3825_v17 = vmax.f32 %v3820_v63, 0.0  ;;  %v3805_v6 = vpop.f32.mrf.mxu3 }
 0xa40   : > { %5509 = vrot.lane.b32.xlu1 %v5508_v10, %s8064_s11  ;;  %5504 = vrot.lane.b32.xlu0 %v5508_v10, %s8039_s29  ;;  %v3806_v33 = vadd.f32 %v3805_v6, %v3741_v27 }
 0xa41   : > { %v7754_v41 = vmul.f32 %v3825_v17, %v5897_v0  ;;  %5499 = vrot.lane.b32.xlu2 %v5508_v10, %s8065_s2 }
 0xa42   : > { %v3824_v38 = vmax.f32 %v3806_v33, 0.0 }
 0xa43   : > { %v3981_v49 = vpack.c.bf16 %v7754_v41, %v7747_v7 }
 0xa44   : > { %v3828_v16 = vmul.f32 %v3824_v38, %v5895_v62 }
 0xa46   : > { %v5538_v45 = vpack.i.bf16 %v7754_v41, %v3828_v16  ;;  %v3980_v22 = vpack.c.bf16 %v3828_v16, %v3826_v50 }
 0xa48   : > { %5524 = vrot.lane.b32.xlu1 %v5508_v10, %s8037_s5  ;;  %5519 = vrot.lane.b32.xlu0 %v5508_v10, %s8057_s7 }
 0xa49   : > { %5514 = vrot.lane.b32.xlu2 %v5508_v10, %s8055_s30 }
 0xa50   : > { %5539 = vrot.lane.b32.xlu1 %v5538_v45, %s8065_s2  ;;  %5534 = vrot.lane.b32.xlu0 %v5508_v10, %s8066_s10 }
 0xa51   : > { %5529 = vrot.lane.b32.xlu2 %v5508_v10, %s8056_s27 }
 0xa58   : > { %5554 = vrot.lane.b32.xlu1 %v5538_v45, %s8055_s30  ;;  %5549 = vrot.lane.b32.xlu0 %v5538_v45, %s8064_s11  ;;  %s4328_s30 = sshll.u32 %s8091_s25, 3 }
 0xa59   : > { %5544 = vrot.lane.b32.xlu2 %v5538_v45, %s8039_s29 }
 0xa60   : > { %5569 = vrot.lane.b32.xlu1 %v5538_v45, %s8056_s27  ;;  %5564 = vrot.lane.b32.xlu0 %v5538_v45, %s8037_s5 }
 0xa61   : > { %5559 = vrot.lane.b32.xlu2 %v5538_v45, %s8057_s7 }
 0xa69   : > { %5574 = vrot.lane.b32.xlu2 %v5538_v45, %s8066_s10 }
 0xa71   : > { %4051 = vrot.lane.b32.xlu2 %v3980_v22, %s8058_s28 }
 0xa9b   : > { %v7775_v32 = vpop.permute.xlu2 %5499 }
 0xa9c   : > { %v5502_v40 = vunpack.i.h.bf16 %v7775_v32  ;;  %v5501_v13 = vunpack.i.l.bf16 %v7775_v32 }
 0xa9e   : > { %v3953_v56 = vsel %vm8068_vm2, %v5502_v40, %v8067_v36 }
 0xaa3   : > { %v7777_v48 = vpop.permute.xlu2 %5514 }
 0xaa4   : > { %v5517_v5 = vunpack.i.h.bf16 %v7777_v48  ;;  %v5516_v23 = vunpack.i.l.bf16 %v7777_v48 }
 0xaa6   : > { %v3900_v42 = vsel %vm794_vm0, %v5516_v23, %v5517_v5 }
 0xaab   : > { %v7779_v55 = vpop.permute.xlu2 %5529 }
 0xab2   : > { %v7781_v43 = vpop.permute.xlu1 %5509  ;;  %v5505_v2 = vpop.permute.xlu0 %5504 }
 0xab3   : > { %v5507_v53 = vunpack.i.h.bf16 %v5505_v2  ;;  %v5506_v26 = vunpack.i.l.bf16 %v5505_v2  ;;  %v5545_v60 = vpop.permute.xlu2 %5544  ;;  %v5512_v54 = vunpack.i.h.bf16 %v7781_v43  ;;  %v5511_v11 = vunpack.i.l.bf16 %v7781_v43 }
 0xab4   : > { %v5547_v46 = vunpack.i.h.bf16 %v5545_v60  ;;  %v5546_v3 = vunpack.i.l.bf16 %v5545_v60 }
 0xab5   : > { %v3934_v59 = vsel %vm1077_vm8, %v5506_v26, %v5507_v53  ;;  %v3916_v8 = vsel %vm8070_vm6, %v5511_v11, %v5512_v54  ;;  %v3935_v33 = vsel %vm1077_vm8, %v5507_v53, %v6013_v28 }
 0xab6   : > { %v3936_v14 = vsel %vm1077_vm8, %v5546_v3, %v5547_v46  ;;  %v3997_v63 = vpack.c.bf16 %v5546_v3, %v5506_v26  ;;  %v3937_v38 = vsel %vm1077_vm8, %v5547_v46, %v6013_v28  ;;  %v8072_v46 = vld [vmem:[#allocation8_spill] sm:$0xff] }
 0xab7   : > { %v3998_v39 = vpack.c.bf16 %v3936_v14, %v3934_v59  ;;  %v3999_v22 = vpack.c.bf16 %v3937_v38, %v3935_v33 }
 0xab9   : > { %4087 = vrot.lane.b32.xlu2 %v3998_v39, %s8058_s28 }
 0xaba   : > { %v7786_v52 = vpop.permute.xlu1 %5524  ;;  %v7788_v20 = vpop.permute.xlu0 %5519 }
 0xabb   : > { %v5560_v44 = vpop.permute.xlu2 %5559  ;;  %v5522_v51 = vunpack.i.h.bf16 %v7788_v20  ;;  %v5521_v17 = vunpack.i.l.bf16 %v7788_v20  ;;  %v5527_v53 = vunpack.i.h.bf16 %v7786_v52  ;;  %v5526_v28 = vunpack.i.l.bf16 %v7786_v52 }
 0xabc   : > { %v5562_v34 = vunpack.i.h.bf16 %v5560_v44  ;;  %v5561_v6 = vunpack.i.l.bf16 %v5560_v44  ;;  %v5532_v52 = vunpack.i.h.bf16 %v7779_v55 }
 0xabd   : > { %v3883_v16 = vsel %vm784_vm1, %v5521_v17, %v5522_v51 }
 0xabe   : > { %v3990_v50 = vpack.c.bf16 %v5562_v34, %v5522_v51  ;;  %v3885_v45 = vsel %vm784_vm1, %v5561_v6, %v5562_v34 }
 0xabf   : > { %v3989_v2 = vpack.c.bf16 %v3885_v45, %v3883_v16 }
 0xac2   : > { %v7791_v24 = vpop.permute.xlu1 %5539  ;;  %v7793_v19 = vpop.permute.xlu0 %5534 }
 0xac3   : > { %v5542_v12 = vunpack.i.h.bf16 %v7791_v24  ;;  %v5541_v47 = vunpack.i.l.bf16 %v7791_v24  ;;  %v5575_v24 = vpop.permute.xlu2 %5574  ;;  %v5537_v51 = vunpack.i.h.bf16 %v7793_v19 }
 0xac4   : > { %v5577_v34 = vunpack.i.h.bf16 %v5575_v24 }
 0xac5   : > { %v3955_v37 = vsel %vm8069_vm5, %v5542_v12, %v8067_v36  ;;  %v4000_v15 = vpack.c.bf16 %v5541_v47, %v5501_v13  ;;  %v3865_v36 = vsel %vm8076_vm12, %v5526_v28, %v5527_v53  ;;  %vm8087_vm5 = vcmask 130048  }
 0xac6   : > { %v4002_v1 = vpack.c.bf16 %v3955_v37, %v3953_v56 }
 0xac8   : > { %4095 = vrot.lane.b32.xlu0 %v4002_v1, %s8058_s28 }
 0xaca   : > { %v5555_v25 = vpop.permute.xlu1 %5554  ;;  %v5550_v61 = vpop.permute.xlu0 %5549 }
 0xacb   : > { %v5557_v57 = vunpack.i.h.bf16 %v5555_v25  ;;  %v5552_v4 = vunpack.i.h.bf16 %v5550_v61  ;;  %v5551_v31 = vunpack.i.l.bf16 %v5550_v61  ;;  %v5556_v29 = vunpack.i.l.bf16 %v5555_v25 }
 0xacc   : > { %v3954_v25 = vsel %vm8077_vm15, %v5541_v47, %v5542_v12  ;;  %v3882_v61 = vsel %vm784_vm1, %v5822_v35, %v5521_v17  ;;  %v5576_v12 = vunpack.i.l.bf16 %v5575_v24  ;;  %v8086_v24 = vld [vmem:[#allocation9_spill] sm:$0xff] }
 0xacd   : > { %v3993_v30 = vpack.c.bf16 %v5557_v57, %v5517_v5  ;;  %v3918_v58 = vsel %vm8071_vm10, %v5551_v31, %v5552_v4  ;;  %v3901_v27 = vsel %vm794_vm0, %v5556_v29, %v5557_v57  ;;  %v3994_v43 = vpack.c.bf16 %v5551_v31, %v5511_v11  ;;  %vm8073_vm0 = vmmov %vm8070_vm6 }
 0xace   : > { %v3995_v9 = vpack.c.bf16 %v3918_v58, %v3916_v8  ;;  %v3992_v10 = vpack.c.bf16 %v3901_v27, %v3900_v42  ;;  %v3919_v3 = vsel %vm8073_vm0, %v5552_v4, %v8072_v46  ;;  %vm8074_vm8 = vmmov %vm8073_vm0  ;;  %v3991_v56 = vpack.c.bf16 %v5556_v29, %v5516_v23  ;;  %v8081_v23 = vld [vmem:[#allocation6_spill] sm:$0xff] }
 0xacf   : > { %4077 = vrot.lane.b32.xlu1 %v3993_v30, %s8058_s28  ;;  %v3917_v59 = vsel %vm8074_vm8, %v5512_v54, %v8072_v46  ;;  %v5531_v54 = vunpack.i.l.bf16 %v7779_v55  ;;  %v3884_v5 = vsel %vm784_vm1, %v5822_v35, %v5561_v6  ;;  %v3952_v57 = vsel %vm8078_vm9, %v5501_v13, %v5502_v40  ;;  %vm8079_vm1 = vmmov %vm8075_vm11  ;;  %v4052_v6 = vpop.permute.xlu2 %4051 }
 0xad0   : > { %4091 = vrot.lane.b32.xlu0 %v4000_v15, %s8058_s28  ;;  %4081 = vrot.lane.b32.xlu2 %v3995_v9, %s8058_s28  ;;  %v3996_v39 = vpack.c.bf16 %v3919_v3, %v3917_v59  ;;  %v4001_v31 = vpack.c.bf16 %v3954_v25, %v3952_v57  ;;  %v3988_v55 = vpack.c.bf16 %v3884_v5, %v3882_v61  ;;  %v5536_v35 = vunpack.i.l.bf16 %v7793_v19  ;;  %vm8080_vm7 = vmmov %vm8079_vm1 }
 0xad1   : > { %v3847_v30 = vsel %vm759_vm3, %v5531_v54, %v5532_v52  ;;  %v3864_v40 = vsel %vm8080_vm7, %v6075_v18, %v5526_v28  ;;  %v3846_v58 = vsel %vm759_vm3, %v8063_v21, %v5531_v54  ;;  %v3971_v27 = vsel %vm8082_vm14, %v5537_v51, %v8081_v23  ;;  %vm8088_vm6 = vmmov %vm8087_vm5 }
 0xad2   : > { %v5565_v48 = vpop.permute.xlu0 %5564  ;;  %v5570_v20 = vpop.permute.xlu1 %5569  ;;  %v4003_v44 = vpack.c.bf16 %v5576_v12, %v5536_v35  ;;  %vm4234_vm10 = vcmask 5120  }
 0xad3   : > { %v5567_v26 = vunpack.i.h.bf16 %v5565_v48  ;;  %v5566_v60 = vunpack.i.l.bf16 %v5565_v48  ;;  %v5572_v1 = vunpack.i.h.bf16 %v5570_v20  ;;  %v5571_v11 = vunpack.i.l.bf16 %v5570_v20 }
 0xad5   : > { %v3867_v14 = vsel %vm8075_vm11, %v5566_v60, %v5567_v26  ;;  %v3849_v4 = vsel %vm759_vm3, %v5571_v11, %v5572_v1  ;;  %v3866_v32 = vsel %vm8079_vm1, %v6075_v18, %v5566_v60  ;;  %v3987_v47 = vpack.c.bf16 %v5567_v26, %v5527_v53  ;;  %v3832_v18 = vld [vmem:[%s8034_s3] sm:$0xff] }
 0xad6   : > { %v3986_v37 = vpack.c.bf16 %v3867_v14, %v3865_v36  ;;  %v3983_v8 = vpack.c.bf16 %v3849_v4, %v3847_v30  ;;  %v3985_v13 = vpack.c.bf16 %v3866_v32, %v3864_v40  ;;  %v3848_v15 = vsel %vm759_vm3, %v8063_v21, %v5571_v11  ;;  %vm8084_vm3 = vmmov %vm8083_vm13  ;;  %v5194_v40 = vld [vmem:[%s8036_s4 + $0x4] sm:$0xf] }
 0xad7   : > { %4071 = vrot.lane.b32.xlu1 %v3990_v50, %s8058_s28  ;;  %v3984_v9 = vpack.c.bf16 %v5572_v1, %v5532_v52  ;;  %v3982_v29 = vpack.c.bf16 %v3848_v15, %v3846_v58  ;;  %v3973_v21 = vsel %vm8083_vm13, %v5577_v34, %v8081_v23  ;;  %v3970_v19 = vsel %vm8084_vm3, %v5536_v35, %v5537_v51  ;;  %vm8085_vm2 = vmmov %vm8084_vm3 }
 0xad8   : > { %4085 = vrot.lane.b32.xlu0 %v3997_v63, %s8058_s28  ;;  %4075 = vrot.lane.b32.xlu2 %v3992_v10, %s8058_s28  ;;  %v4005_v50 = vpack.c.bf16 %v3973_v21, %v3971_v27  ;;  %v3972_v42 = vsel %vm8085_vm2, %v5576_v12, %v5577_v34  ;;  %v3833_v10 = vld [vmem:[%s8034_s3 + $0x8] sm:$0xff]  ;;  %v4103_v35 = vsel %vm902_vm4, %v8086_v24, %v4052_v6 }
 0xad9   : > { %v4004_v63 = vpack.c.bf16 %v3972_v42, %v3970_v19 }
 0xadf   : > { %4089 = vrot.lane.b32.xlu1 %v3999_v22, %s8058_s28 }
 0xae0   : > { %4079 = vrot.lane.b32.xlu0 %v3994_v43, %s8058_s28  ;;  %4069 = vrot.lane.b32.xlu2 %v3989_v2, %s8058_s28 }
 0xae7   : > { %4083 = vrot.lane.b32.xlu1 %v3996_v39, %s8058_s28 }
 0xae8   : > { %4073 = vrot.lane.b32.xlu0 %v3991_v56, %s8058_s28  ;;  %4063 = vrot.lane.b32.xlu2 %v3986_v37, %s8058_s28 }
 0xaef   : > { %4093 = vrot.lane.b32.xlu1 %v4001_v31, %s8058_s28 }
 0xaf0   : > { %4067 = vrot.lane.b32.xlu0 %v3988_v55, %s8058_s28  ;;  %4057 = vrot.lane.b32.xlu2 %v3983_v8, %s8058_s28  ;;  %v5018_v55 = vld [vmem:[%s8036_s4] sm:$0xf]  ;;  %v5195_v8 = vld [vmem:[%s8036_s4 + $0x4] sm:$0xf0] }
 0xaf1   : > { %v5019_v32 = vor.u32 %v5195_v8, %v5018_v55 }
 0xaf7   : > { %4065 = vrot.lane.b32.xlu1 %v3987_v47, %s8058_s28  ;;  %v5020_v47 = vld [vmem:[%s8036_s4 + $0x8] sm:$0xf0] }
 0xaf8   : > { %4061 = vrot.lane.b32.xlu0 %v3985_v13, %s8058_s28  ;;  %4097 = vrot.lane.b32.xlu2 %v4003_v44, %s8058_s28 }
 0xaff   : > { %4059 = vrot.lane.b32.xlu1 %v3984_v9, %s8058_s28 }
 0xb00   : > { %4055 = vrot.lane.b32.xlu0 %v3982_v29, %s8058_s28  ;;  %4008 = vperm.xlu2 %5276, %v3832_v18   ;;  %v5023_v29 = vor.u32 %v5194_v40, %v5020_v47 }
 0xb07   : > { %4053 = vrot.lane.b32.xlu1 %v3981_v49, %s8058_s28 }
 0xb08   : > { %4101 = vrot.lane.b32.xlu0 %v4005_v50, %s8058_s28 }
 0xb0f   : > { %4099 = vrot.lane.b32.xlu1 %v4004_v63, %s8058_s28  ;;  %s721_s28 = scalar_lea.vmem %s7967_s23, %s4328_s30 }
 0xb13   : > { %v4088_v7 = vpop.permute.xlu2 %4087 }
 0xb17   : > { %4013 = vperm.xlu1 %5275, %v3833_v10  }
 0xb2a   : > { %v4082_v16 = vpop.permute.xlu2 %4081 }
 0xb32   : > { %v4076_v48 = vpop.permute.xlu2 %4075 }
 0xb3a   : > { %v4096_v17 = vpop.permute.xlu0 %4095  ;;  %v4070_v60 = vpop.permute.xlu2 %4069 }
 0xb41   : > { %v4078_v33 = vpop.permute.xlu1 %4077 }
 0xb42   : > { %v4092_v38 = vpop.permute.xlu0 %4091  ;;  %v4064_v36 = vpop.permute.xlu2 %4063  ;;  %v4112_v1 = vsel %vm902_vm4, %v4076_v48, %v4078_v33 }
 0xb49   : > { %v4072_v41 = vpop.permute.xlu1 %4071 }
 0xb4a   : > { %v4086_v49 = vpop.permute.xlu0 %4085  ;;  %v4110_v54 = vsel %vm902_vm4, %v4070_v60, %v4072_v41  ;;  %v4058_v25 = vpop.permute.xlu2 %4057 }
 0xb4b   : > { %v4115_v3 = vsel %vm902_vm4, %v4086_v49, %v4088_v7 }
 0xb51   : > { %v4090_v45 = vpop.permute.xlu1 %4089 }
 0xb52   : > { %v4080_v22 = vpop.permute.xlu0 %4079  ;;  %v4116_v59 = vsel %vm902_vm4, %v4088_v7, %v4090_v45  ;;  %v4098_v13 = vpop.permute.xlu2 %4097 }
 0xb53   : > { %v4113_v39 = vsel %vm902_vm4, %v4080_v22, %v4082_v16 }
 0xb59   : > { %v4084_v43 = vpop.permute.xlu1 %4083 }
 0xb5a   : > { %v4074_v2 = vpop.permute.xlu0 %4073  ;;  %v4114_v20 = vsel %vm902_vm4, %v4082_v16, %v4084_v43  ;;  %v4009_v51 = vpop.permute.xlu2 %4008 }
 0xb5b   : > { %v4111_v37 = vsel %vm902_vm4, %v4074_v2, %v4076_v48 }
 0xb61   : > { %v4094_v26 = vpop.permute.xlu1 %4093 }
 0xb62   : > { %v4117_v53 = vsel %vm902_vm4, %v4092_v38, %v4094_v26  ;;  %v4118_v28 = vsel %vm902_vm4, %v4094_v26, %v4096_v17  ;;  %v4068_v46 = vpop.permute.xlu0 %4067 }
 0xb63   : > { %4142 = vmatpush.bf16.msra.mxu1 %v4117_v53  ;;  %4170 = vmatpush.bf16.msrb.mxu3 %v4118_v28  ;;  %v4109_v52 = vsel %vm902_vm4, %v4068_v46, %v4070_v60 }
 0xb67   : > { %4143 = vmatpush.bf16.msra.mxu1 %v4115_v3  ;;  %4171 = vmatpush.bf16.msrb.mxu3 %v4116_v59 }
 0xb69   : > { %v4066_v14 = vpop.permute.xlu1 %4065 }
 0xb6a   : > { %v4062_v56 = vpop.permute.xlu0 %4061  ;;  %v4108_v5 = vsel %vm902_vm4, %v4064_v36, %v4066_v14 }
 0xb6b   : > { %4144 = vmatpush.bf16.msra.mxu1 %v4113_v39  ;;  %4172 = vmatpush.bf16.msrb.mxu3 %v4114_v20  ;;  %v4107_v61 = vsel %vm902_vm4, %v4062_v56, %v4064_v36  ;;  %v4215_v20 = vld [vmem:[%s7964_s20] sm:$0x7] }
 0xb6f   : > { %4145 = vmatpush.bf16.msra.mxu1 %v4111_v37  ;;  %4173 = vmatpush.bf16.msrb.mxu3 %v4112_v1 }
 0xb71   : > { %v4060_v11 = vpop.permute.xlu1 %4059 }
 0xb72   : > { %v4056_v57 = vpop.permute.xlu0 %4055  ;;  %v4106_v30 = vsel %vm902_vm4, %v4058_v25, %v4060_v11 }
 0xb73   : > { %4146 = vmatpush.bf16.msra.mxu1 %v4109_v52  ;;  %4174 = vmatpush.bf16.msrb.mxu3 %v4110_v54  ;;  %v4105_v31 = vsel %vm902_vm4, %v4056_v57, %v4058_v25 }
 0xb77   : > { %4147 = vmatpush.bf16.msra.mxu1 %v4107_v61  ;;  %4175 = vmatpush.bf16.msrb.mxu3 %v4108_v5 }
 0xb79   : > { %v4054_v4 = vpop.permute.xlu1 %4053 }
 0xb7a   : > { %v4104_v12 = vsel %vm902_vm4, %v4052_v6, %v4054_v4  ;;  %v4102_v44 = vpop.permute.xlu0 %4101 }
 0xb7b   : > { %4148 = vmatpush.bf16.msra.mxu1 %v4105_v31  ;;  %4176 = vmatpush.bf16.msrb.mxu3 %v4106_v30 }
 0xb7f   : > { %4149 = vmatpush.bf16.msra.mxu1 %v4103_v35  ;;  %4177 = vmatpush.bf16.msrb.mxu3 %v4104_v12 }
 0xb81   : > { %v4100_v15 = vpop.permute.xlu1 %4099 }
 0xb82   : > { %v4119_v58 = vsel %vm902_vm4, %v4098_v13, %v4100_v15  ;;  %v4120_v9 = vsel %vm902_vm4, %v4100_v15, %v4102_v44  ;;  %4150 = vmatmul.bf16.vlgmr.msra.gmra.mxu1 %v5019_v32  ;;  %4178 = vmatmul.bf16.vlgmr.msrb.gmra.mxu3 %v5019_v32  ;;  %vm8089_vm4 = vmmov %vm8087_vm5 }
 0xb83   : > { %4163 = vmatpush.bf16.msra.mxu2 %v4119_v58  ;;  %4191 = vmatpush.bf16.msrb.mxu0 %v4120_v9 }
 0xb86   : > { %5024 = vmatmul.msk.bf16.vlgmr.msra.gmra.mxu2 %vm8087_vm5, %v5023_v29  ;;  %5025 = vmatmul.msk.bf16.vlgmr.msrb.gmra.mxu0 %vm8088_vm6, %v5023_v29 }
 0xb89   : > { %v4014_v10 = vpop.permute.xlu1 %4013 }
 0xbff   : > { %v4151_v18 = vpop.f32.mrf.mxu1 }
 0xc00   : > { %v4152_v21 = vadd.f32 %v4151_v18, %v4009_v51 }
 0xc03   : > { %v4193_v34 = vpop.f32.mrf.mxu0 }
 0xc05   : > { %v4179_v23 = vpop.f32.mrf.mxu3 }
 0xc06   : > { %v4180_v27 = vadd.f32 %v4179_v23, %v4009_v51 }
 0xc07   : > { %v4153_v6 = vpop.f32.mrf.mxu1 }
 0xc08   : > { %v4194_v50 = vadd.f32 %v4193_v34, %v4180_v27  ;;  %v4154_v16 = vadd.f32 %v4153_v6, %v4014_v10 }
 0xc09   : > { %v4165_v19 = vpop.f32.mrf.mxu2 }
 0xc0a   : > { %v4199_v42 = vmax.f32 %v4194_v50, 0.0  ;;  %v4166_v63 = vadd.f32 %v4165_v19, %v4152_v21 }
 0xc0b   : > { %v4195_v49 = vpop.f32.mrf.mxu0 }
 0xc0c   : > { %v4198_v17 = vmax.f32 %v4166_v63, 0.0  ;;  %v4203_v38 = vmul.f32 %v4199_v42, %v5897_v0 }
 0xc0d   : > { %v4181_v33 = vpop.f32.mrf.mxu3 }
 0xc0e   : > { %v4202_v7 = vmul.f32 %v4198_v17, %v5895_v62  ;;  %v4182_v41 = vadd.f32 %v4181_v33, %v4014_v10 }
 0xc10   : > { %v4196_v45 = vadd.f32 %v4195_v49, %v4182_v41  ;;  %v4206_v22 = vadd.f32 %v4203_v38, %v4202_v7 }
 0xc11   : > { %v4167_v48 = vpop.f32.mrf.mxu2 }
 0xc12   : > { %v4201_v43 = vmax.f32 %v4196_v45, 0.0  ;;  %v4168_v2 = vadd.f32 %v4167_v48, %v4154_v16  ;;  %4207 = vadd.xlane.f32.xlu0 %v4206_v22 }
 0xc14   : > { %v4200_v26 = vmax.f32 %v4168_v2, 0.0  ;;  %v4205_v60 = vmul.f32 %v4201_v43, %v5897_v0  ;;  %v4216_v0 = vld [vmem:[%s7965_s21] sm:$0x3f] }
 0xc16   : > { %v4204_v53 = vmul.f32 %v4200_v26, %v5895_v62 }
 0xc18   : > { %v4209_v28 = vadd.f32 %v4205_v60, %v4204_v53 }
 0xc1a   : > { %4210 = vadd.xlane.f32.xlu2 %v4209_v28 }
 0xc85   : > { %v4208_v46 = vpop.xlane.xlu0 %4207 }
 0xc86   : > { %v4212_v59 = vmul.f32 0.015625, %v4208_v46 }
 0xc8d   : > { %v4211_v3 = vpop.xlane.xlu2 %4210 }
 0xc8e   : > { %v4213_v14 = vmul.f32 0.015625, %v4211_v3 }
 0xc90   : > { %v4214_v39 = vpack.c.bf16 %v4213_v14, %v4212_v59 }
 0xc92   : > { %4227 = vmatpush.bf16.msrb.mxu2 %v4214_v39 }
 0xc95   : > { %5026 = vmatmul.msk.bf16.vlgmr.msrb.gmra.mxu2 %vm8089_vm4, %v4215_v20 }
 0xd18   : > { %v4229_v36 = vpop.f32.mrf.mxu2 }
 0xd19   : > { %v4230_v62 = vadd.f32 %v4229_v36, %v4216_v0 }
 0xd1b   : > { %5618 = vtanh.f32 %v4230_v62 }
 0xd20   : > { %v4231_v56 = vpop.f32.mrf.mxu2 }
 0xd21   : > { %v5619_v37 = vpop.eup %5618 }
 0xd22   : > { %4235 = vst.msk [vmem:[%s721_s28] sm:$0x3f] %vm4234_vm10, %v5619_v37 }
 0xd23 PF: > { %s36_s24 = sadd.s32 1, %s5626_s24  }
 0xd24   : > { %p33_p4 = scmp.ge.s32.totalorder %s36_s24, 4  }
 0xd26   :  { %35 = sbr.rel (!%p33_p4) target bundleno = 13 (0xd), region = 153 }

</bundles_post_ra>
